<compile_context>
chip_gen: v5e
topology: v5e:2x2
jax: 0.10.0
libtpu: 0.0.40
codegen_flags: <defaults>
</compile_context>

<pallas_src>
import functools
import math

import jax
import jax.numpy as jnp
from jax.experimental import pallas as pl
from jax.experimental.pallas import tpu as pltpu


# ----------------------------- Pallas kernel --------------------------------

def _e2t_loss_kernel(value_ref, tq_ref, c_ref,
                     wq_ref, wkv_ref, woe_ref,
                     bq_ref, bkv_ref,
                     loss_ref, *, n_pos, margin):
    """One block of BB batch elements per grid step.

    value_ref: (BB, S, D)  nbes_emb + nbfs * nbrs_emb  (compute dtype)
    tq_ref:    (BB, 2L, D) [types_emb[pts] ; types_emb[nts]]  (f32; also the
               distance target)
    c_ref:     (BB, 1, D)  f32 per-batch constant  bo@We1 + es@We2 + be
    wq_ref:    (D, D)   query proj, 1/sqrt(D) pre-folded     (compute dtype)
    wkv_ref:   (D, 2D)  [Wk | Wv] fused key/value projection (compute dtype)
    woe_ref:   (D, D)   fused out-proj x e2t weight = Wo^T @ We1
    bq_ref:    (1, D)   f32 query bias (already scaled by 1/sqrt(D))
    bkv_ref:   (1, 2D)  f32 [bk | bv]
    loss_ref:  (1, BB, 1) f32 margin-ranking loss per batch element
    """
    f32 = jnp.float32
    cdt = wq_ref.dtype                       # MXU operand dtype (bf16 or f32)
    bb, s_len, d = value_ref.shape
    _, tl, _ = tq_ref.shape                  # tl == 2 * n_pos

    # ---- fused K|V projection: one (BB*S, D) x (D, 2D) MXU matmul ----------
    val2 = value_ref[...].reshape(bb * s_len, d)
    kv = (jnp.dot(val2, wkv_ref[...], preferred_element_type=f32)
          + bkv_ref[...]).reshape(bb, s_len, 2 * d)              # (BB, S, 2D) f32
    k = kv[:, :, :d]                                             # (BB, S, D)
    v = kv[:, :, d:]                                             # (BB, S, D)

    # ---- query projection (pos + neg type queries fused along the rows) ----
    tq_f32 = tq_ref[...]                                         # (BB, 2L, D) f32
    q = (jnp.dot(tq_f32.reshape(bb * tl, d).astype(cdt), wq_ref[...],
                 preferred_element_type=f32)
         + bq_ref[...]).reshape(bb, tl, d)                       # (BB, 2L, D) f32

    # ---- attention on VPU/XLU/EUP: no per-batch MXU matmuls ----------------
    # scores per key position: sum over D of q * k_j   -> (BB, 2L, 1)
    s_cols = []
    for j in range(s_len):
        s_cols.append(jnp.sum(q * k[:, j:j + 1, :], axis=-1, keepdims=True))
    m = s_cols[0]
    for sj in s_cols[1:]:
        m = jnp.maximum(m, sj)
    p_cols = [jnp.exp(sj - m) for sj in s_cols]                  # (BB, 2L, 1) f32
    denom = p_cols[0]
    for pj in p_cols[1:]:
        denom = denom + pj
    inv = pl.reciprocal(denom, approx=True)                      # (BB, 2L, 1) f32
    ao = p_cols[0] * v[:, 0:1, :]                                # unnormalized
    for j in range(1, s_len):
        ao = ao + p_cols[j] * v[:, j:j + 1, :]                   # (BB, 2L, D) f32

    # ---- fused MHA out-proj x e2t Linear; softmax norm folded in (linear) --
    e2t = (jnp.dot(ao.reshape(bb * tl, d).astype(cdt), woe_ref[...],
                   preferred_element_type=f32).reshape(bb, tl, d) * inv)

    # ---- L1 distance (f32) and max(pos) - min(neg) hinge -------------------
    tgt = tq_f32 - c_ref[...]                                    # (BB,1,D) bcast
    dist = jnp.sum(jnp.abs(e2t - tgt), axis=-1)                  # (BB, 2L)
    pmax = jnp.max(dist[:, :n_pos], axis=-1, keepdims=True)      # (BB, 1)
    nmin = jnp.min(dist[:, n_pos:], axis=-1, keepdims=True)      # (BB, 1)
    loss_ref[...] = jnp.maximum(pmax - nmin + margin, 0.0)[None] # (1, BB, 1)


# ------------------------------- wrapper -------------------------------------

def _round_up(x, m):
    return ((x + m - 1) // m) * m


def _choose_block_b(batch, requested):
    """Batch rows per grid step: multiple of 8, capped near the real batch,
    and split into >= 2 grid blocks when possible (v7x megacore sharding)."""
    bp8 = _round_up(batch, 8)
    bb = min(_round_up(max(8, int(requested)), 8), bp8)
    if bb >= bp8 and batch > 8:           # would give a single grid block
        bb = _round_up(-(-batch // 2), 8)
    return bb


def e2t_forward(params, es, nbes, nbrs, nbfs, pts, nts, *, margin=1.0,
                compute_dtype=jnp.bfloat16, block_b=512):
    # On v5e prefer compute_dtype=jnp.float32 (no native bf16 VPU/EUP).
    E = params["entities_emb"]      # (NE, D)
    R = params["relations_emb"]     # (NR, D)
    T = params["types_emb"]         # (NT, D)

    B = es.shape[0]
    S = nbes.shape[1]
    L = pts.shape[1]
    D = E.shape[1]
    assert params["we1"].shape[1] == D, "module requires entity_dim == type_dim"

    f32 = jnp.float32
    cdt = compute_dtype

    bb = _choose_block_b(B, block_b)
    nblk = -(-B // bb)
    Bp = nblk * bb
    pad = Bp - B

    # Pad the tiny index arrays BEFORE the gathers, so the gathered tensors
    # come out already padded (no full-size HBM pad copy).
    if pad:
        es = jnp.pad(es, (0, pad))
        nbes = jnp.pad(nbes, ((0, pad), (0, 0)))
        nbrs = jnp.pad(nbrs, ((0, pad), (0, 0)))
        nbfs = jnp.pad(nbfs, ((0, pad), (0, 0)))
        pts = jnp.pad(pts, ((0, pad), (0, 0)))
        nts = jnp.pad(nts, ((0, pad), (0, 0)))

    # --- constant folding (one-time, in the wrapper) -------------------------
    scale = 1.0 / math.sqrt(D)
    wq_s = params["wq_t"] * scale                       # fold q-scale into Wq
    bq_s = params["bq"] * scale                         # ...and into bq
    w_oe = params["wo_t"] @ params["we1"]               # fuse out-proj with e2t half 1
    wkv = jnp.concatenate([params["wk_t"], params["wv_t"]], axis=1)   # (D, 2D)
    bkv = jnp.concatenate([params["bk"], params["bv"]], axis=1)       # (1, 2D)
    # per-batch constant of the e2t output, rebuilt into the target in-kernel
    c = (params["bo"] @ params["we1"] + E[es] @ params["we2"]
         + params["be"])[:, None, :]                                   # (Bp, 1, D)

    # --- glue: embedding gathers + neighbour combine (plain XLA) -------------
    value = (E[nbes] + R[nbrs] * nbfs[..., None]).astype(cdt)          # (Bp, S, D)
    tq = jnp.concatenate([T[pts], T[nts]], axis=1).astype(f32)         # (Bp, 2L, D)

    kernel = functools.partial(_e2t_loss_kernel, n_pos=L, margin=float(margin))

    loss = pl.pallas_call(
        kernel,
        out_shape=jax.ShapeDtypeStruct((nblk, bb, 1), f32),
        grid=(nblk,),
        in_specs=[
            pl.BlockSpec((bb, S, D), lambda b: (b, 0, 0)),        # value (cdt)
            pl.BlockSpec((bb, 2 * L, D), lambda b: (b, 0, 0)),    # type queries (f32)
            pl.BlockSpec((bb, 1, D), lambda b: (b, 0, 0)),        # per-batch const (f32)
            pl.BlockSpec((D, D), lambda b: (0, 0)),               # wq (scaled)
            pl.BlockSpec((D, 2 * D), lambda b: (0, 0)),           # [wk | wv]
            pl.BlockSpec((D, D), lambda b: (0, 0)),               # w_oe fused
            pl.BlockSpec((1, D), lambda b: (0, 0)),               # bq (scaled)
            pl.BlockSpec((1, 2 * D), lambda b: (0, 0)),           # [bk | bv]
        ],
        out_specs=pl.BlockSpec((1, bb, 1), lambda b: (b, 0, 0)),
        compiler_params=pltpu.CompilerParams(
            dimension_semantics=("parallel",),        # batch blocks shard across TCs
            vmem_limit_bytes=32 * 1024 * 1024),
    )(value, tq, c.astype(f32),
      wq_s.astype(cdt), wkv.astype(cdt), w_oe.astype(cdt),
      bq_s.astype(f32), bkv.astype(f32))

    return loss.reshape(Bp)[:B]                          # (B,)


# ----------------------------- pure-JAX reference ----------------------------

def e2t_reference(params, es, nbes, nbrs, nbfs, pts, nts, *, margin=1.0):
    E, R, T = params["entities_emb"], params["relations_emb"], params["types_emb"]
    D = E.shape[1]
    value = E[nbes] + R[nbrs] * nbfs[..., None]          # (B, S, D)
    es_emb = E[es]                                       # (B, D)

    def dist(ts_idx):
        tq = T[ts_idx]                                   # (B, L, D)
        q = (tq @ params["wq_t"] + params["bq"]) / math.sqrt(D)
        k = value @ params["wk_t"] + params["bk"]
        v = value @ params["wv_t"] + params["bv"]
        s = jnp.einsum("bld,bsd->bls", q, k)
        a = jax.nn.softmax(s, axis=-1)
        ao = jnp.einsum("bls,bsd->bld", a, v)
        patt = ao @ params["wo_t"] + params["bo"]
        e2t = patt @ params["we1"] + (es_emb @ params["we2"])[:, None, :] + params["be"]
        return jnp.sum(jnp.abs(e2t - tq), axis=-1)       # (B, L)

    pd = dist(pts)
    nd = dist(nts)
    return jnp.maximum(pd.max(axis=1) - nd.min(axis=1) + margin, 0.0)


# --------------------------------- main --------------------------------------

if __name__ == "__main__":
    # Small synthetic shapes consistent with the module's asserts.
    B, S, L = 16, 8, 8          # nbatch, S_triplet_max, L_type_max
    D = 32                      # entity_dim == type_dim
    NE, NR, NT = 64, 16, 24     # vocab sizes
    MARGIN = 1.0

    key = jax.random.PRNGKey(0)
    keys = jax.random.split(key, 20)

    def init(k, shape, scale=0.1):
        return (scale * jax.random.normal(k, shape)).astype(jnp.float32)

    params = {
        # embedding tables
        "entities_emb": init(keys[0], (NE, D), 1.0),
        "relations_emb": init(keys[1], (NR, D), 1.0),
        "types_emb": init(keys[2], (NT, D), 1.0),
        # MultiheadAttention (num_heads=1) in/out projections, stored as (in, out)
        "wq_t": init(keys[3], (D, D)),
        "wk_t": init(keys[4], (D, D)),
        "wv_t": init(keys[5], (D, D)),
        "wo_t": init(keys[6], (D, D)),
        "bq": init(keys[7], (1, D)),
        "bk": init(keys[8], (1, D)),
        "bv": init(keys[9], (1, D)),
        "bo": init(keys[10], (1, D)),
        # e2t Linear(2D -> D), split into the two halves of the concat input
        "we1": init(keys[11], (D, D)),   # applied to patt
        "we2": init(keys[12], (D, D)),   # applied to es_emb
        "be": init(keys[13], (1, D)),
    }

    es = jax.random.randint(keys[14], (B,), 0, NE)
    nbes = jax.random.randint(keys[15], (B, S), 0, NE)
    nbrs = jax.random.randint(keys[16], (B, S), 0, NR)
    nbfs = jnp.where(jax.random.bernoulli(keys[17], 0.5, (B, S)),
                     1.0, -1.0).astype(jnp.float32)
    pts = jax.random.randint(keys[18], (B, L), 0, NT)
    nts = jax.random.randint(keys[19], (B, L), 0, NT)

    ref = e2t_reference(params, es, nbes, nbrs, nbfs, pts, nts, margin=MARGIN)

    # f32 compute path with an explicit small batch block (multi-block grid);
    # tolerance covers only the approx EUP reciprocal in the softmax.
    loss_f32 = e2t_forward(params, es, nbes, nbrs, nbfs, pts, nts, margin=MARGIN,
                           compute_dtype=jnp.float32, block_b=8)
    loss_f32 = jax.block_until_ready(loss_f32)
    assert loss_f32.shape == (B,)
    assert jnp.allclose(loss_f32, ref, rtol=5e-3, atol=5e-3), (loss_f32, ref)

    # Default fast path: bf16 MXU operands, adaptive batch block (>= 2 blocks).
    loss_bf16 = e2t_forward(params, es, nbes, nbrs, nbfs, pts, nts, margin=MARGIN)
    loss_bf16 = jax.block_until_ready(loss_bf16)
    assert loss_bf16.shape == (B,)
    assert jnp.allclose(loss_bf16, ref, rtol=5e-2, atol=1e-1), (loss_bf16, ref)

    print("KERNEL_OK")
</pallas_src>

<mosaic_0001>
module attributes {stable_mosaic.version = 11 : i64} {
  func.func @_e2t_loss_kernel(%arg0: i32, %arg1: memref<8x8x32xf32, #tpu.memory_space<vmem>>, %arg2: memref<8x16x32xf32, #tpu.memory_space<vmem>>, %arg3: memref<8x1x32xf32, #tpu.memory_space<vmem>>, %arg4: memref<32x32xf32, #tpu.memory_space<vmem>>, %arg5: memref<32x64xf32, #tpu.memory_space<vmem>>, %arg6: memref<32x32xf32, #tpu.memory_space<vmem>>, %arg7: memref<1x32xf32, #tpu.memory_space<vmem>>, %arg8: memref<1x64xf32, #tpu.memory_space<vmem>>, %arg9: memref<1x8x1xf32, #tpu.memory_space<vmem>>) attributes {dimension_semantics = [#tpu.dimension_semantics<parallel>], iteration_bounds = array<i64: 2>, scalar_prefetch = 0 : i64, scratch_operands = 0 : i64, tpu.core_type = #tpu.core_type<tc>, window_params = [{transform_indices = @transform_0, window_bounds = array<i64: 8, 8, 32>}, {transform_indices = @transform_1, window_bounds = array<i64: 8, 16, 32>}, {transform_indices = @transform_2, window_bounds = array<i64: 8, 1, 32>}, {pipeline_mode = #tpu.pipeline_mode<synchronous>, transform_indices = @transform_3, window_bounds = array<i64: 32, 32>}, {pipeline_mode = #tpu.pipeline_mode<synchronous>, transform_indices = @transform_4, window_bounds = array<i64: 32, 64>}, {pipeline_mode = #tpu.pipeline_mode<synchronous>, transform_indices = @transform_5, window_bounds = array<i64: 32, 32>}, {pipeline_mode = #tpu.pipeline_mode<synchronous>, transform_indices = @transform_6, window_bounds = array<i64: 1, 32>}, {pipeline_mode = #tpu.pipeline_mode<synchronous>, transform_indices = @transform_7, window_bounds = array<i64: 1, 64>}, {transform_indices = @transform_8, window_bounds = array<i64: 1, 8, 1>}]} {
    %c0 = arith.constant 0 : index
    %c0_0 = arith.constant 0 : index
    %c0_1 = arith.constant 0 : index
    %0 = vector.load %arg1[%c0, %c0_0, %c0_1] : memref<8x8x32xf32, #tpu.memory_space<vmem>>, vector<8x8x32xf32>
    %1 = vector.shape_cast %0 : vector<8x8x32xf32> to vector<64x32xf32>
    %c0_2 = arith.constant 0 : index
    %c0_3 = arith.constant 0 : index
    %2 = vector.load %arg5[%c0_2, %c0_3] : memref<32x64xf32, #tpu.memory_space<vmem>>, vector<32x64xf32>
    %cst = arith.constant dense<0.000000e+00> : vector<64x64xf32>
    %3 = tpu.matmul %1, %2, %cst {dimension_numbers = #tpu.dot_dimension_numbers<[1], [0], [0], [1], [0, 0, 1, 1], [], []>} : vector<64x32xf32>, vector<32x64xf32>, vector<64x64xf32> -> vector<64x64xf32>
    %c0_4 = arith.constant 0 : index
    %c0_5 = arith.constant 0 : index
    %4 = vector.load %arg8[%c0_4, %c0_5] : memref<1x64xf32, #tpu.memory_space<vmem>>, vector<1x64xf32>
    %5 = vector.broadcast %4 : vector<1x64xf32> to vector<64x64xf32>
    %6 = arith.addf %3, %5 : vector<64x64xf32>
    %7 = vector.shape_cast %6 : vector<64x64xf32> to vector<8x8x64xf32>
    %8 = vector.extract_strided_slice %7 {offsets = [0, 0, 0], sizes = [8, 8, 32], strides = [1, 1, 1]} : vector<8x8x64xf32> to vector<8x8x32xf32>
    %9 = vector.extract_strided_slice %7 {offsets = [0, 0, 32], sizes = [8, 8, 32], strides = [1, 1, 1]} : vector<8x8x64xf32> to vector<8x8x32xf32>
    %c0_6 = arith.constant 0 : index
    %c0_7 = arith.constant 0 : index
    %c0_8 = arith.constant 0 : index
    %10 = vector.load %arg2[%c0_6, %c0_7, %c0_8] : memref<8x16x32xf32, #tpu.memory_space<vmem>>, vector<8x16x32xf32>
    %11 = vector.shape_cast %10 : vector<8x16x32xf32> to vector<128x32xf32>
    %c0_9 = arith.constant 0 : index
    %c0_10 = arith.constant 0 : index
    %12 = vector.load %arg4[%c0_9, %c0_10] : memref<32x32xf32, #tpu.memory_space<vmem>>, vector<32x32xf32>
    %cst_11 = arith.constant dense<0.000000e+00> : vector<128x32xf32>
    %13 = tpu.matmul %11, %12, %cst_11 {dimension_numbers = #tpu.dot_dimension_numbers<[1], [0], [0], [1], [0, 0, 1, 1], [], []>} : vector<128x32xf32>, vector<32x32xf32>, vector<128x32xf32> -> vector<128x32xf32>
    %c0_12 = arith.constant 0 : index
    %c0_13 = arith.constant 0 : index
    %14 = vector.load %arg7[%c0_12, %c0_13] : memref<1x32xf32, #tpu.memory_space<vmem>>, vector<1x32xf32>
    %15 = vector.broadcast %14 : vector<1x32xf32> to vector<128x32xf32>
    %16 = arith.addf %13, %15 : vector<128x32xf32>
    %17 = vector.shape_cast %16 : vector<128x32xf32> to vector<8x16x32xf32>
    %18 = vector.extract_strided_slice %8 {offsets = [0, 0, 0], sizes = [8, 1, 32], strides = [1, 1, 1]} : vector<8x8x32xf32> to vector<8x1x32xf32>
    %19 = vector.broadcast %18 : vector<8x1x32xf32> to vector<8x16x32xf32>
    %20 = arith.mulf %17, %19 : vector<8x16x32xf32>
    %cst_14 = arith.constant dense<0.000000e+00> : vector<8x16xf32>
    %21 = vector.multi_reduction <add>, %20, %cst_14 [2] : vector<8x16x32xf32> to vector<8x16xf32>
    %22 = vector.shape_cast %21 : vector<8x16xf32> to vector<8x16x1xf32>
    %23 = vector.extract_strided_slice %8 {offsets = [0, 1, 0], sizes = [8, 1, 32], strides = [1, 1, 1]} : vector<8x8x32xf32> to vector<8x1x32xf32>
    %24 = vector.broadcast %23 : vector<8x1x32xf32> to vector<8x16x32xf32>
    %25 = arith.mulf %17, %24 : vector<8x16x32xf32>
    %cst_15 = arith.constant dense<0.000000e+00> : vector<8x16xf32>
    %26 = vector.multi_reduction <add>, %25, %cst_15 [2] : vector<8x16x32xf32> to vector<8x16xf32>
    %27 = vector.shape_cast %26 : vector<8x16xf32> to vector<8x16x1xf32>
    %28 = vector.extract_strided_slice %8 {offsets = [0, 2, 0], sizes = [8, 1, 32], strides = [1, 1, 1]} : vector<8x8x32xf32> to vector<8x1x32xf32>
    %29 = vector.broadcast %28 : vector<8x1x32xf32> to vector<8x16x32xf32>
    %30 = arith.mulf %17, %29 : vector<8x16x32xf32>
    %cst_16 = arith.constant dense<0.000000e+00> : vector<8x16xf32>
    %31 = vector.multi_reduction <add>, %30, %cst_16 [2] : vector<8x16x32xf32> to vector<8x16xf32>
    %32 = vector.shape_cast %31 : vector<8x16xf32> to vector<8x16x1xf32>
    %33 = vector.extract_strided_slice %8 {offsets = [0, 3, 0], sizes = [8, 1, 32], strides = [1, 1, 1]} : vector<8x8x32xf32> to vector<8x1x32xf32>
    %34 = vector.broadcast %33 : vector<8x1x32xf32> to vector<8x16x32xf32>
    %35 = arith.mulf %17, %34 : vector<8x16x32xf32>
    %cst_17 = arith.constant dense<0.000000e+00> : vector<8x16xf32>
    %36 = vector.multi_reduction <add>, %35, %cst_17 [2] : vector<8x16x32xf32> to vector<8x16xf32>
    %37 = vector.shape_cast %36 : vector<8x16xf32> to vector<8x16x1xf32>
    %38 = vector.extract_strided_slice %8 {offsets = [0, 4, 0], sizes = [8, 1, 32], strides = [1, 1, 1]} : vector<8x8x32xf32> to vector<8x1x32xf32>
    %39 = vector.broadcast %38 : vector<8x1x32xf32> to vector<8x16x32xf32>
    %40 = arith.mulf %17, %39 : vector<8x16x32xf32>
    %cst_18 = arith.constant dense<0.000000e+00> : vector<8x16xf32>
    %41 = vector.multi_reduction <add>, %40, %cst_18 [2] : vector<8x16x32xf32> to vector<8x16xf32>
    %42 = vector.shape_cast %41 : vector<8x16xf32> to vector<8x16x1xf32>
    %43 = vector.extract_strided_slice %8 {offsets = [0, 5, 0], sizes = [8, 1, 32], strides = [1, 1, 1]} : vector<8x8x32xf32> to vector<8x1x32xf32>
    %44 = vector.broadcast %43 : vector<8x1x32xf32> to vector<8x16x32xf32>
    %45 = arith.mulf %17, %44 : vector<8x16x32xf32>
    %cst_19 = arith.constant dense<0.000000e+00> : vector<8x16xf32>
    %46 = vector.multi_reduction <add>, %45, %cst_19 [2] : vector<8x16x32xf32> to vector<8x16xf32>
    %47 = vector.shape_cast %46 : vector<8x16xf32> to vector<8x16x1xf32>
    %48 = vector.extract_strided_slice %8 {offsets = [0, 6, 0], sizes = [8, 1, 32], strides = [1, 1, 1]} : vector<8x8x32xf32> to vector<8x1x32xf32>
    %49 = vector.broadcast %48 : vector<8x1x32xf32> to vector<8x16x32xf32>
    %50 = arith.mulf %17, %49 : vector<8x16x32xf32>
    %cst_20 = arith.constant dense<0.000000e+00> : vector<8x16xf32>
    %51 = vector.multi_reduction <add>, %50, %cst_20 [2] : vector<8x16x32xf32> to vector<8x16xf32>
    %52 = vector.shape_cast %51 : vector<8x16xf32> to vector<8x16x1xf32>
    %53 = vector.extract_strided_slice %8 {offsets = [0, 7, 0], sizes = [8, 1, 32], strides = [1, 1, 1]} : vector<8x8x32xf32> to vector<8x1x32xf32>
    %54 = vector.broadcast %53 : vector<8x1x32xf32> to vector<8x16x32xf32>
    %55 = arith.mulf %17, %54 : vector<8x16x32xf32>
    %cst_21 = arith.constant dense<0.000000e+00> : vector<8x16xf32>
    %56 = vector.multi_reduction <add>, %55, %cst_21 [2] : vector<8x16x32xf32> to vector<8x16xf32>
    %57 = vector.shape_cast %56 : vector<8x16xf32> to vector<8x16x1xf32>
    %58 = arith.maximumf %22, %27 : vector<8x16x1xf32>
    %59 = arith.maximumf %58, %32 : vector<8x16x1xf32>
    %60 = arith.maximumf %59, %37 : vector<8x16x1xf32>
    %61 = arith.maximumf %60, %42 : vector<8x16x1xf32>
    %62 = arith.maximumf %61, %47 : vector<8x16x1xf32>
    %63 = arith.maximumf %62, %52 : vector<8x16x1xf32>
    %64 = arith.maximumf %63, %57 : vector<8x16x1xf32>
    %65 = arith.subf %22, %64 : vector<8x16x1xf32>
    %66 = math.exp %65 : vector<8x16x1xf32>
    %67 = arith.subf %27, %64 : vector<8x16x1xf32>
    %68 = math.exp %67 : vector<8x16x1xf32>
    %69 = arith.subf %32, %64 : vector<8x16x1xf32>
    %70 = math.exp %69 : vector<8x16x1xf32>
    %71 = arith.subf %37, %64 : vector<8x16x1xf32>
    %72 = math.exp %71 : vector<8x16x1xf32>
    %73 = arith.subf %42, %64 : vector<8x16x1xf32>
    %74 = math.exp %73 : vector<8x16x1xf32>
    %75 = arith.subf %47, %64 : vector<8x16x1xf32>
    %76 = math.exp %75 : vector<8x16x1xf32>
    %77 = arith.subf %52, %64 : vector<8x16x1xf32>
    %78 = math.exp %77 : vector<8x16x1xf32>
    %79 = arith.subf %57, %64 : vector<8x16x1xf32>
    %80 = math.exp %79 : vector<8x16x1xf32>
    %81 = arith.addf %66, %68 : vector<8x16x1xf32>
    %82 = arith.addf %81, %70 : vector<8x16x1xf32>
    %83 = arith.addf %82, %72 : vector<8x16x1xf32>
    %84 = arith.addf %83, %74 : vector<8x16x1xf32>
    %85 = arith.addf %84, %76 : vector<8x16x1xf32>
    %86 = arith.addf %85, %78 : vector<8x16x1xf32>
    %87 = arith.addf %86, %80 : vector<8x16x1xf32>
    %88 = tpu.reciprocal %87 {approx = true} : vector<8x16x1xf32> -> vector<8x16x1xf32>
    %89 = vector.extract_strided_slice %9 {offsets = [0, 0, 0], sizes = [8, 1, 32], strides = [1, 1, 1]} : vector<8x8x32xf32> to vector<8x1x32xf32>
    %90 = vector.broadcast %66 : vector<8x16x1xf32> to vector<8x16x32xf32>
    %91 = vector.broadcast %89 : vector<8x1x32xf32> to vector<8x16x32xf32>
    %92 = arith.mulf %90, %91 : vector<8x16x32xf32>
    %93 = vector.extract_strided_slice %9 {offsets = [0, 1, 0], sizes = [8, 1, 32], strides = [1, 1, 1]} : vector<8x8x32xf32> to vector<8x1x32xf32>
    %94 = vector.broadcast %68 : vector<8x16x1xf32> to vector<8x16x32xf32>
    %95 = vector.broadcast %93 : vector<8x1x32xf32> to vector<8x16x32xf32>
    %96 = arith.mulf %94, %95 : vector<8x16x32xf32>
    %97 = arith.addf %92, %96 : vector<8x16x32xf32>
    %98 = vector.extract_strided_slice %9 {offsets = [0, 2, 0], sizes = [8, 1, 32], strides = [1, 1, 1]} : vector<8x8x32xf32> to vector<8x1x32xf32>
    %99 = vector.broadcast %70 : vector<8x16x1xf32> to vector<8x16x32xf32>
    %100 = vector.broadcast %98 : vector<8x1x32xf32> to vector<8x16x32xf32>
    %101 = arith.mulf %99, %100 : vector<8x16x32xf32>
    %102 = arith.addf %97, %101 : vector<8x16x32xf32>
    %103 = vector.extract_strided_slice %9 {offsets = [0, 3, 0], sizes = [8, 1, 32], strides = [1, 1, 1]} : vector<8x8x32xf32> to vector<8x1x32xf32>
    %104 = vector.broadcast %72 : vector<8x16x1xf32> to vector<8x16x32xf32>
    %105 = vector.broadcast %103 : vector<8x1x32xf32> to vector<8x16x32xf32>
    %106 = arith.mulf %104, %105 : vector<8x16x32xf32>
    %107 = arith.addf %102, %106 : vector<8x16x32xf32>
    %108 = vector.extract_strided_slice %9 {offsets = [0, 4, 0], sizes = [8, 1, 32], strides = [1, 1, 1]} : vector<8x8x32xf32> to vector<8x1x32xf32>
    %109 = vector.broadcast %74 : vector<8x16x1xf32> to vector<8x16x32xf32>
    %110 = vector.broadcast %108 : vector<8x1x32xf32> to vector<8x16x32xf32>
    %111 = arith.mulf %109, %110 : vector<8x16x32xf32>
    %112 = arith.addf %107, %111 : vector<8x16x32xf32>
    %113 = vector.extract_strided_slice %9 {offsets = [0, 5, 0], sizes = [8, 1, 32], strides = [1, 1, 1]} : vector<8x8x32xf32> to vector<8x1x32xf32>
    %114 = vector.broadcast %76 : vector<8x16x1xf32> to vector<8x16x32xf32>
    %115 = vector.broadcast %113 : vector<8x1x32xf32> to vector<8x16x32xf32>
    %116 = arith.mulf %114, %115 : vector<8x16x32xf32>
    %117 = arith.addf %112, %116 : vector<8x16x32xf32>
    %118 = vector.extract_strided_slice %9 {offsets = [0, 6, 0], sizes = [8, 1, 32], strides = [1, 1, 1]} : vector<8x8x32xf32> to vector<8x1x32xf32>
    %119 = vector.broadcast %78 : vector<8x16x1xf32> to vector<8x16x32xf32>
    %120 = vector.broadcast %118 : vector<8x1x32xf32> to vector<8x16x32xf32>
    %121 = arith.mulf %119, %120 : vector<8x16x32xf32>
    %122 = arith.addf %117, %121 : vector<8x16x32xf32>
    %123 = vector.extract_strided_slice %9 {offsets = [0, 7, 0], sizes = [8, 1, 32], strides = [1, 1, 1]} : vector<8x8x32xf32> to vector<8x1x32xf32>
    %124 = vector.broadcast %80 : vector<8x16x1xf32> to vector<8x16x32xf32>
    %125 = vector.broadcast %123 : vector<8x1x32xf32> to vector<8x16x32xf32>
    %126 = arith.mulf %124, %125 : vector<8x16x32xf32>
    %127 = arith.addf %122, %126 : vector<8x16x32xf32>
    %128 = vector.shape_cast %127 : vector<8x16x32xf32> to vector<128x32xf32>
    %c0_22 = arith.constant 0 : index
    %c0_23 = arith.constant 0 : index
    %129 = vector.load %arg6[%c0_22, %c0_23] : memref<32x32xf32, #tpu.memory_space<vmem>>, vector<32x32xf32>
    %cst_24 = arith.constant dense<0.000000e+00> : vector<128x32xf32>
    %130 = tpu.matmul %128, %129, %cst_24 {dimension_numbers = #tpu.dot_dimension_numbers<[1], [0], [0], [1], [0, 0, 1, 1], [], []>} : vector<128x32xf32>, vector<32x32xf32>, vector<128x32xf32> -> vector<128x32xf32>
    %131 = vector.shape_cast %130 : vector<128x32xf32> to vector<8x16x32xf32>
    %132 = vector.broadcast %88 : vector<8x16x1xf32> to vector<8x16x32xf32>
    %133 = arith.mulf %131, %132 : vector<8x16x32xf32>
    %c0_25 = arith.constant 0 : index
    %c0_26 = arith.constant 0 : index
    %c0_27 = arith.constant 0 : index
    %134 = vector.load %arg3[%c0_25, %c0_26, %c0_27] : memref<8x1x32xf32, #tpu.memory_space<vmem>>, vector<8x1x32xf32>
    %135 = vector.broadcast %134 : vector<8x1x32xf32> to vector<8x16x32xf32>
    %136 = arith.subf %10, %135 : vector<8x16x32xf32>
    %137 = arith.subf %133, %136 : vector<8x16x32xf32>
    %138 = math.absf %137 : vector<8x16x32xf32>
    %cst_28 = arith.constant dense<0.000000e+00> : vector<8x16xf32>
    %139 = vector.multi_reduction <add>, %138, %cst_28 [2] : vector<8x16x32xf32> to vector<8x16xf32>
    %140 = vector.extract_strided_slice %139 {offsets = [0, 0], sizes = [8, 8], strides = [1, 1]} : vector<8x16xf32> to vector<8x8xf32>
    %cst_29 = arith.constant dense<0xFF800000> : vector<8xf32>
    %141 = vector.multi_reduction <maximumf>, %140, %cst_29 [1] : vector<8x8xf32> to vector<8xf32>
    %142 = vector.shape_cast %141 : vector<8xf32> to vector<8x1xf32>
    %143 = vector.extract_strided_slice %139 {offsets = [0, 8], sizes = [8, 8], strides = [1, 1]} : vector<8x16xf32> to vector<8x8xf32>
    %cst_30 = arith.constant dense<0x7F800000> : vector<8xf32>
    %144 = vector.multi_reduction <minimumf>, %143, %cst_30 [1] : vector<8x8xf32> to vector<8xf32>
    %145 = vector.shape_cast %144 : vector<8xf32> to vector<8x1xf32>
    %146 = arith.subf %142, %145 : vector<8x1xf32>
    %cst_31 = arith.constant 1.000000e+00 : f32
    %147 = vector.broadcast %cst_31 : f32 to vector<8x1xf32>
    %148 = arith.addf %146, %147 : vector<8x1xf32>
    %cst_32 = arith.constant 0.000000e+00 : f32
    %149 = vector.broadcast %cst_32 : f32 to vector<8x1xf32>
    %150 = arith.maximumf %148, %149 : vector<8x1xf32>
    %151 = vector.shape_cast %150 : vector<8x1xf32> to vector<1x8x1xf32>
    %c0_33 = arith.constant 0 : index
    %c0_34 = arith.constant 0 : index
    %c0_35 = arith.constant 0 : index
    %152 = vector.load %arg9[%c0_33, %c0_34, %c0_35] : memref<1x8x1xf32, #tpu.memory_space<vmem>>, vector<1x8x1xf32>
    tpu.vector_store %arg9[%c0_33, %c0_34, %c0_35], %151 {strides = array<i32>} : memref<1x8x1xf32, #tpu.memory_space<vmem>>, vector<1x8x1xf32>,
    return
  }
  func.func @transform_0(%arg0: i32) -> (i32, i32, i32) {
    %c0_i32 = arith.constant 0 : i32
    %c0_i32_0 = arith.constant 0 : i32
    %c0_i32_1 = arith.constant 0 : i32
    return %arg0, %c0_i32, %c0_i32_0 : i32, i32, i32
  }
  func.func @transform_1(%arg0: i32) -> (i32, i32, i32) {
    %c0_i32 = arith.constant 0 : i32
    %c0_i32_0 = arith.constant 0 : i32
    %c0_i32_1 = arith.constant 0 : i32
    return %arg0, %c0_i32, %c0_i32_0 : i32, i32, i32
  }
  func.func @transform_2(%arg0: i32) -> (i32, i32, i32) {
    %c0_i32 = arith.constant 0 : i32
    %c0_i32_0 = arith.constant 0 : i32
    %c0_i32_1 = arith.constant 0 : i32
    return %arg0, %c0_i32, %c0_i32_0 : i32, i32, i32
  }
  func.func @transform_3(%arg0: i32) -> (i32, i32) {
    %c0_i32 = arith.constant 0 : i32
    %c0_i32_0 = arith.constant 0 : i32
    %c0_i32_1 = arith.constant 0 : i32
    return %c0_i32, %c0_i32_0 : i32, i32
  }
  func.func @transform_4(%arg0: i32) -> (i32, i32) {
    %c0_i32 = arith.constant 0 : i32
    %c0_i32_0 = arith.constant 0 : i32
    %c0_i32_1 = arith.constant 0 : i32
    return %c0_i32, %c0_i32_0 : i32, i32
  }
  func.func @transform_5(%arg0: i32) -> (i32, i32) {
    %c0_i32 = arith.constant 0 : i32
    %c0_i32_0 = arith.constant 0 : i32
    %c0_i32_1 = arith.constant 0 : i32
    return %c0_i32, %c0_i32_0 : i32, i32
  }
  func.func @transform_6(%arg0: i32) -> (i32, i32) {
    %c0_i32 = arith.constant 0 : i32
    %c0_i32_0 = arith.constant 0 : i32
    %c0_i32_1 = arith.constant 0 : i32
    return %c0_i32, %c0_i32_0 : i32, i32
  }
  func.func @transform_7(%arg0: i32) -> (i32, i32) {
    %c0_i32 = arith.constant 0 : i32
    %c0_i32_0 = arith.constant 0 : i32
    %c0_i32_1 = arith.constant 0 : i32
    return %c0_i32, %c0_i32_0 : i32, i32
  }
  func.func @transform_8(%arg0: i32) -> (i32, i32, i32) {
    %c0_i32 = arith.constant 0 : i32
    %c0_i32_0 = arith.constant 0 : i32
    %c0_i32_1 = arith.constant 0 : i32
    return %arg0, %c0_i32, %c0_i32_0 : i32, i32, i32
  }
}

</mosaic_0001>

<bundles_post_ra>
// kernel: tpu_custom_call.1
= control target key start
LH: loop header
LB: loop body
LE: loop exit
PB: predicated region body
PF: predicated region fallthrough
CT: control target
= control target key end

     0   :  { %s5169_s0 = inlined_call_operand.hbm [shape: f32[16,8,32], index: 0, kind: input, shape index: {}]   ;;  %s5170_s1 = inlined_call_operand.hbm [shape: f32[16,16,32], index: 1, kind: input, shape index: {}]   ;;  %s5171_s2 = inlined_call_operand.hbm [shape: f32[16,1,32], index: 2, kind: input, shape index: {}]   ;;  %s5172_s3 = inlined_call_operand.hbm [shape: f32[32,32], index: 3, kind: input, shape index: {}]   ;;  %s5173_s4 = inlined_call_operand.hbm [shape: f32[32,64], index: 4, kind: input, shape index: {}]   ;;  %s5174_s5 = inlined_call_operand.hbm [shape: f32[32,32], index: 5, kind: input, shape index: {}]   ;;  %s5175_s6 = inlined_call_operand.vmem [shape: f32[1,32], index: 6, kind: input, shape index: {}]   ;;  %s5176_s7 = inlined_call_operand.vmem [shape: f32[1,64], index: 7, kind: input, shape index: {}]   ;;  %s5177_s8 = inlined_call_operand.vmem [shape: f32[2,8,1], index: 8, kind: output, shape index: {}]  }
   0x1   :  { %5324 = sst [smem:[#allocation102_spill]] %s5170_s1 }
   0x2   :  { %5325 = sst [smem:[#allocation103_spill]] %s5172_s3 }
   0x3   :  { %5326 = sst [smem:[#allocation104_spill]] %s5173_s4 }
   0x4   :  { %5327 = sst [smem:[#allocation105_spill]] %s5174_s5 }
   0x5   :  { %13 = vsyncpa [#allocation3], 0 }
   0x6   :  { %15 = vsyncpa [#allocation3 + $0x1], 0 }
   0x7   :  { %16 = vsyncpa [#allocation5], 0 }
   0x8   :  { %18 = vsyncpa [#allocation5 + $0x1], 0 }
   0x9   :  { %19 = vsyncpa [#allocation8], 0 }
   0xa   :  { %20 = vsyncpa [#allocation11], 0  ;;  %s3378_s27 = smov 0   ;;  %s3380_s28 = smov 0  }
   0xb   :  { %s3382_s29 = smov 0   ;;  %s3384_s30 = smov 0  }
   0xc LB: > { %5328 = sst [smem:[#allocation16_spill]] %s3319_s29  ;;  %s3397_s9 = sadd.s32 4294967295, %s3323_s30   ;;  %s3323_s30 = sphi %s3384_s30, %s5545_s30   ;;  %s3319_s29 = sphi %s3382_s29, %s5542_s29   ;;  %s3315_s28 = sphi %s3380_s28, %s5544_s28   ;;  %s3311_s27 = sphi %s3378_s27, %s5543_s27  }
   0xd   : > { %p46_p0 = scmp.ne.s32.totalorder %s3315_s28, %s3311_s27  ;;  %p47_p1 = scmp.eq.s32.totalorder %s3397_s9, 0 }
   0xe   : > { %p2619_p2 = scmp.ge.s32.totalorder %s3323_s30, 1  ;;  %p240_p3 = scmp.lt.s32.totalorder %s3323_s30, 3 }
   0xf   : > { %p3405_p4 = por %p47_p1, %p46_p0  ;;  %s5330_s3 = sld [smem:[#allocation103_spill]] }
  0x10   : > { %p3412_p5 = pnand %p2619_p2, %p240_p3  ;;  %s3325_s15 = smov [#allocation7]  }
  0x11   : > { %s253_s16 = sshll.u32 %s3325_s15, 4  ;;  %s3425_s18 = sadd.s32 1, %s3323_s30   ;;  %s254_s16 = int_to_ptr.vmem [resolvable:$true] %s253_s16 }
  0x12   : > { %p2716_p6 = pneg %p3412_p5  ;;  %s5178_s19 = smov 128  }
  0x13   : > { %s5180_s20 = smov 8   ;;  %s30_s21 = ssub.s32 %s3323_s30, %s3425_s18 }
  0x14   : > { %p3420_p7 = pnand %p2716_p6, %p47_p1  ;;  %s33_s22 = sadd.s32 1, %s3319_s29 }
  0x15   : > { %s251_s13 = sshll.u32 %s5330_s3, 4  ;;  %p31_p8 = scmp.eq.s32.totalorder %s30_s21, 0  ;;  %s252_s13 = int_to_ptr.hbm [resolvable:$true] %s251_s13 }
  0x16   : > { %2719 = dma.hbm_to_vmem [thread:$0]  (!%p3420_p7), %s252_s13, 512, %s254_s16, [#allocation8], %s5178_s19, %s5178_s19, %s5180_s20  }
  0x17   : > { %p40_p9 = scmp.ne.s32.totalorder %s3319_s29, %s3315_s28  ;;  %p41_p10 = scmp.eq.s32.totalorder %s3323_s30, 0 }
  0x18   : > { %p2739_p11 = scmp.lt.s32.totalorder %s3323_s30, 2  ;;  %s3443_s24 = sand.u32 1, %s3319_s29  }
  0x19   : > { %s3440_s23 = scalar_select %p31_p8, %s3319_s29, %s33_s22  }
  0x1a   : > { %p42_p12 = por %p41_p10, %p40_p9  ;;  %s323_s25 = sand.u32 1, %s3323_s30  }
  0x1b   : > { %5333 = sst [smem:[#allocation17_spill]] %s3440_s23  ;;  %s2627_s26 = sshll.u32 %s3443_s24, 7 }
  0x1c   : > { %p3447_p13 = pnand %p2739_p11, %p42_p12  ;;  %s2685_s11 = sshll.u32 %s3323_s30, 7 }
  0x1d   : > { %s5335_s1 = sld [smem:[#allocation102_spill]]  ;;  %s327_s21 = scalar_lea.vmem [#allocation4], %s2627_s26 }
  0x1e   : > { %s336_s22 = sshll.u32 %s327_s21, 4  ;;  %s3455_s19 = scalar_lea.sflag [#allocation5], %s323_s25  ;;  %s337_s22 = int_to_ptr.vmem [resolvable:$true] %s336_s22 }
  0x1f   : > { %p3131_p2 = pneg %p3447_p13 }
  0x23   : > { %s333_s15 = scalar_lea.hbm %s5335_s1, %s2685_s11  ;;  %s3134_s11 = scalar_lea.hbm %s5335_s1, 256 }
  0x24   : > { %s334_s16 = sshll.u32 %s333_s15, 4  ;;  %s335_s16 = int_to_ptr.hbm [resolvable:$true] %s334_s16 }
  0x25   : > { %s3127_s20 = sshra.s32 %s335_s16, 4  ;;  %s3128_s20 = int_to_ptr.hbm [resolvable:$true] %s3127_s20 }
  0x26   : > { %s3129_s3 = scalar_lea.hbm %s3128_s20, 128  ;;  %p3135_p8 = scmp.lt.s32.totalorder %s3128_s20, %s5335_s1 }
  0x27   : > { %p3130_p0 = scmp.ne.s32.totalorder %s3128_s20, %s3129_s3  ;;  %p3136_p9 = scmp.lt.s32.totalorder %s3134_s11, %s3129_s3 }
  0x29   : > { %p3132_p3 = pnand %p3131_p2, %p3130_p0  ;;  %p3137_p10 = por %p3136_p9, %p3135_p8 }
  0x2b   : > { %p3133_p6 = pneg %p3132_p3 }
  0x2d   : > { %p3138_p11 = pnand %p3137_p10, %p3133_p6 }
  0x2f   : > { %3141 = shalt.err (!%p3138_p11)
}
  0x30   : > { %s5336_s25 = smov 8   ;;  %s5337_s15 = smov 128  }
  0x31   : > { %2732 = dma.hbm_to_vmem [thread:$0]  (!%p3447_p13), %s335_s16, 2048, %s337_s22, %s3455_s19, %s5337_s15, %s5337_s15, %s5336_s25  }
  0x32   : > { %s5338_s4 = sld [smem:[#allocation104_spill]]  ;;  %s3328_s3 = smov [#allocation9]  }
  0x33   : > { %s267_s20 = sshll.u32 %s3328_s3, 4  ;;  %s5339_s5 = sld [smem:[#allocation105_spill]]  ;;  %s268_s20 = int_to_ptr.vmem [resolvable:$true] %s267_s20 }
  0x34   : > { %s3329_s16 = smov [#allocation10]   ;;  %s2624_s23 = sshll.u32 %s3443_s24, 6 }
  0x35   : > { %s281_s22 = sshll.u32 %s3329_s16, 4  ;;  %s2683_s21 = sshll.u32 %s3323_s30, 6  ;;  %s282_s22 = int_to_ptr.vmem [resolvable:$true] %s281_s22 }
  0x36   : > { %s310_s26 = scalar_lea.hbm %s5169_s0, %s2683_s21  ;;  %s305_s1 = scalar_lea.vmem [#allocation2], %s2624_s23 }
  0x38   : > { %s265_s12 = sshll.u32 %s5338_s4, 4  ;;  %s313_s4 = sshll.u32 %s305_s1, 4  ;;  %s266_s12 = int_to_ptr.hbm [resolvable:$true] %s265_s12  ;;  %s314_s4 = int_to_ptr.vmem [resolvable:$true] %s313_s4 }
  0x39   : > { %s279_s13 = sshll.u32 %s5339_s5, 4  ;;  %s311_s5 = sshll.u32 %s310_s26, 4  ;;  %s280_s13 = int_to_ptr.hbm [resolvable:$true] %s279_s13  ;;  %s312_s5 = int_to_ptr.hbm [resolvable:$true] %s311_s5 }
  0x3a   : > { %2722 = dma.hbm_to_vmem [thread:$0]  (!%p3420_p7), %s266_s12, 512, %s268_s20, [#allocation8], %s5337_s15, %s5337_s15, %s5336_s25  }
  0x3b   : > { %2725 = dma.hbm_to_vmem [thread:$0]  (!%p3420_p7), %s280_s13, 512, %s282_s22, [#allocation11], %s5337_s15, %s5337_s15, %s5336_s25  }
  0x3c   : > { %s2631_s12 = sshll.u32 %s3443_s24, 3  ;;  %s302_s20 = scalar_lea.sflag [#allocation3], %s3443_s24 }
  0x3d   : > { %s3217_s16 = sshra.s32 %s312_s5, 4  ;;  %s3224_s22 = scalar_lea.hbm %s5169_s0, 128  ;;  %s3218_s16 = int_to_ptr.hbm [resolvable:$true] %s3217_s16 }
  0x3e   : > { %s3219_s29 = scalar_lea.hbm %s3218_s16, 64  ;;  %p3225_p3 = scmp.lt.s32.totalorder %s3218_s16, %s5169_s0 }
  0x3f   : > { %p3220_p12 = scmp.ne.s32.totalorder %s3218_s16, %s3219_s29  ;;  %p3226_p6 = scmp.lt.s32.totalorder %s3224_s22, %s3219_s29 }
  0x41   : > { %p3222_p0 = pnand %p3220_p12, %p3131_p2  ;;  %p3227_p8 = por %p3226_p6, %p3225_p3 }
  0x43   : > { %p3223_p7 = pneg %p3222_p0 }
  0x45   : > { %p3228_p9 = pnand %p3227_p8, %p3223_p7 }
  0x47   : > { %3231 = shalt.err (!%p3228_p9)
}
  0x48   : > { %2729 = dma.hbm_to_vmem [thread:$0]  (!%p3447_p13), %s312_s5, 1024, %s314_s4, %s302_s20, %s5337_s15, %s5337_s15, %s5336_s25  }
  0x49   : > { %s2632_s1 = sshll.u32 %s3323_s30, 3  ;;  %s350_s26 = scalar_lea.vmem [#allocation6], %s2631_s12 }
  0x4a   : > { %s354_s11 = scalar_lea.hbm %s5171_s2, %s2632_s1  ;;  %s357_s17 = sshll.u32 %s350_s26, 4  ;;  %s358_s17 = int_to_ptr.vmem [resolvable:$true] %s357_s17 }
  0x4b   : > { %s355_s16 = sshll.u32 %s354_s11, 4  ;;  %s3254_s5 = scalar_lea.hbm %s5171_s2, 16  ;;  %s356_s16 = int_to_ptr.hbm [resolvable:$true] %s355_s16 }
  0x4c   : > { %s3247_s29 = sshra.s32 %s356_s16, 4  ;;  %s3248_s29 = int_to_ptr.hbm [resolvable:$true] %s3247_s29 }
  0x4d   : > { %s3249_s13 = scalar_lea.hbm %s3248_s29, 8  ;;  %p3255_p0 = scmp.lt.s32.totalorder %s3248_s29, %s5171_s2 }
  0x4e   : > { %p3250_p10 = scmp.ne.s32.totalorder %s3248_s29, %s3249_s13  ;;  %p3256_p7 = scmp.lt.s32.totalorder %s3254_s5, %s3249_s13 }
  0x50   : > { %p3252_p11 = pnand %p3250_p10, %p3131_p2  ;;  %p3257_p3 = por %p3256_p7, %p3255_p0 }
  0x52   : > { %p3253_p12 = pneg %p3252_p11 }
  0x54   : > { %p3258_p6 = pnand %p3257_p3, %p3253_p12 }
  0x56   : > { %3261 = shalt.err (!%p3258_p6)
}
  0x57   : > { %s3330_s15 = smov 16   ;;  %s3331_s12 = smov 1  }
  0x58   : > { %2735 = dma.hbm_to_vmem [thread:$0]  (!%p3447_p13), %s356_s16, 128, %s358_s17, %s3455_s19, %s3330_s15, %s3330_s15, %s3331_s12  }
  0x59   : > { %369 = sbr.rel (%p3412_p5) target bundleno = 1244 (0x4dc), region = 52 }
  0x5e   : > { %s371_s20 = sand.u32 1, %s3315_s28  }
  0x5f   : > { %s2634_s21 = sshll.u32 %s371_s20, 6  ;;  %s372_s23 = scalar_lea.sflag [#allocation3], %s371_s20 }
  0x60   : > { %s3530_s1 = scalar_lea.vmem [#allocation2], %s2634_s21 }
  0x61   : > { %3294 = dma.done.wait (%p3405_p4), %s372_s23, 1024  }
  0x62   : > { %3296 = vsyncadd (%p3405_p4), %s372_s23, 4294966272  ;;  %s381_s24 = sand.u32 1, %s3397_s9   ;;  %s2635_s27 = sshll.u32 %s371_s20, 7 }
  0x63   : > { %s382_s19 = scalar_lea.sflag [#allocation5], %s381_s24  ;;  %s3537_s3 = scalar_lea.vmem [#allocation4], %s2635_s27 }
  0x64   : > { %3298 = dma.done.wait (%p3405_p4), %s382_s19, 2176  }
  0x65   : > { %3300 = vsyncadd (%p3405_p4), %s382_s19, 4294965120  ;;  %s2636_s14 = sshll.u32 %s371_s20, 3 }
  0x66   : > { %s3543_s11 = scalar_lea.vmem [#allocation6], %s2636_s14 }
  0x67   : > { %3302 = dma.done.wait (%p47_p1), [#allocation8], 1024  }
  0x68   : > { %3304 = vsyncadd (%p47_p1), [#allocation8], 4294966272 }
  0x69   : > { %3306 = dma.done.wait (%p47_p1), [#allocation11], 512  }
  0x6a   : > { %3308 = vsyncadd (%p47_p1), [#allocation11], 4294966784  ;;  %v471_v0 = vld [vmem:[#allocation9 + $0x18] sm:$0xff]  ;;  %v470_v1 = vld [vmem:[#allocation9 + $0x10] sm:$0xff]  ;;  %vm476_vm0 = vcmask 261120   ;;  %s3332_s29 = smov 96  }
  0x6b   : > { %v561_v2 = vld [vmem:[#allocation7 + $0x18] sm:$0xff]  ;;  %513 = vmatpush.msra.mxu0 %v471_v0  ;;  %v560_v3 = vld [vmem:[#allocation7 + $0x10] sm:$0xff]  ;;  %v469_v4 = vld [vmem:[#allocation9 + $0x8] sm:$0xff]  ;;  %vm2430_vm1 = vcmask 1041409   ;;  %vm2432_vm2 = vcmask 1042434   ;;  %vm2434_vm3 = vcmask 1043459  }
  0x6c   : > { %2686 = vmatpush.msra.mxu1 %v561_v2  ;;  %v559_v5 = vld [vmem:[#allocation7 + $0x8] sm:$0xff]  ;;  %2687 = vmatpush.msra.mxu3 %v561_v2  ;;  %v468_v6 = vld [vmem:[#allocation9] sm:$0xff]  ;;  %v460_v8 = vld [vmem:[%s3530_s1] sm:$0xff]  ;;  %vm2436_vm4 = vcmask 1044484   ;;  %vm2438_vm5 = vcmask 1045509   ;;  %vm2440_vm6 = vcmask 1046534  }
  0x6d   : > { %514 = vmatpush.msra.mxu0 %v470_v1  ;;  %v558_v7 = vld [vmem:[#allocation7] sm:$0xff]  ;;  %v461_v10 = vld [vmem:[%s3530_s1 + $0x8] sm:$0xff]  ;;  %v545_v11 = vld [vmem:[%s3537_s3 + $0x18] sm:$0xff]  ;;  %vm2442_vm7 = vcmask 1047559   ;;  %vm2445_vm8 = vcmask 64512   ;;  %p456_p1 = scmp.lt.s32.totalorder %s3397_s9, 1 }
  0x6e   : > { %2688 = vmatpush.msra.mxu1 %v560_v3  ;;  %2689 = vmatpush.msra.mxu3 %v560_v3  ;;  %v544_v9 = vld [vmem:[%s3537_s3 + $0x10] sm:$0xff]  ;;  %v546_v13 = vld [vmem:[%s3537_s3 + $0x20] sm:$0xff]  ;;  %v463_v14 = vld [vmem:[%s3530_s1 + $0x18] sm:$0xff]  ;;  %vm2479_vm9 = vcmask 7168  }
  0x6f   : > { %515 = vmatpush.msra.mxu0 %v469_v4  ;;  %v462_v12 = vld [vmem:[%s3530_s1 + $0x10] sm:$0xff]  ;;  %v547_v15 = vld [vmem:[%s3537_s3 + $0x28] sm:$0xff]  ;;  %v464_v16 = vld [vmem:[%s3530_s1 + $0x20] sm:$0xff]  ;;  %s5547_s9 = smov (!%p456_p1, %s3397_s9), 1 }
  0x70   : > { %2690 = vmatpush.msra.mxu1 %v559_v5  ;;  %2691 = vmatpush.msra.mxu3 %v559_v5  ;;  %v465_v17 = vld [vmem:[%s3530_s1 + $0x28] sm:$0xff]  ;;  %v548_v18 = vld [vmem:[%s3537_s3 + $0x30] sm:$0xff]  ;;  %v554_v19 = vld [vmem:[%s3537_s3 + $0x60] sm:$0xff]  ;;  %s2640_s13 = sshll.u32 %s5547_s9, 3 }
  0x71   : > { %516 = vmatpush.msra.mxu0 %v468_v6  ;;  %v466_v20 = vld [vmem:[%s3530_s1 + $0x30] sm:$0xff]  ;;  %v549_v21 = vld [vmem:[%s3537_s3 + $0x38] sm:$0xff]  ;;  %v555_v22 = vld [vmem:[%s3537_s3 + $0x68] sm:$0xff]  ;;  %s459_s5 = scalar_lea.vmem %s5177_s8, %s2640_s13 }
  0x72   : > { %2692 = vmatpush.msra.mxu1 %v558_v7  ;;  %2641 = vmatmul.msk.f32.vlgmr.msra.gmra.mxu0 %vm476_vm0, %v460_v8  ;;  %v467_v23 = vld [vmem:[%s3530_s1 + $0x38] sm:$0xff]  ;;  %v550_v24 = vld [vmem:[%s3537_s3 + $0x40] sm:$0xff]  ;;  %v551_v26 = vld [vmem:[%s3537_s3 + $0x48] sm:$0xff] }
  0x73   : > { %2651 = vmatmul.msk.f32.vlgmr.msra.gmra.mxu1 %vm476_vm0, %v544_v9  ;;  %626 = vmatpush.msrb.mxu0 %v561_v2  ;;  %v542_v25 = vld [vmem:[%s3537_s3] sm:$0xff]  ;;  %v543_v27 = vld [vmem:[%s3537_s3 + $0x8] sm:$0xff]  ;;  %v552_v28 = vld [vmem:[%s3537_s3 + $0x50] sm:$0xff] }
  0x74   : > { %2693 = vmatpush.msra.mxu3 %v558_v7  ;;  %v553_v29 = vld [vmem:[%s3537_s3 + $0x58] sm:$0xff]  ;;  %v556_v30 = vld [vmem:[%s3537_s3 + $0x70] sm:$0xff]  ;;  %v3604_v32 = vld [vmem:[%s5176_s7] ss:$0 sm:$0xff] }
  0x75   : > { %627 = vmatpush.msrb.mxu0 %v560_v3  ;;  %2661 = vmatmul.msk.f32.vlgmr.msra.gmra.mxu3 %vm476_vm0, %v554_v19  ;;  %v557_v31 = vld [vmem:[%s3537_s3 + $0x78] sm:$0xff]  ;;  %v3612_v36 = vld [vmem:[%s5175_s6] ss:$0 sm:$0xff] }
  0x77   : > { %628 = vmatpush.msrb.mxu0 %v559_v5 }
  0x79   : > { %629 = vmatpush.msrb.mxu0 %v558_v7 }
  0x7a   : > { %2642 = vmatmul.msk.f32.gmra.mxu0 %vm476_vm0, %v461_v10 }
  0x7b   : > { %2652 = vmatmul.msk.f32.gmra.mxu1 %vm476_vm0, %v545_v11 }
  0x7d   : > { %2662 = vmatmul.msk.f32.gmra.mxu3 %vm476_vm0, %v555_v22 }
  0x82   : > { %2643 = vmatmul.msk.f32.gmra.mxu0 %vm476_vm0, %v462_v12 }
  0x83   : > { %2653 = vmatmul.msk.f32.gmra.mxu1 %vm476_vm0, %v546_v13 }
  0x85   : > { %2663 = vmatmul.msk.f32.gmra.mxu3 %vm476_vm0, %v556_v30 }
  0x8a   : > { %2644 = vmatmul.msk.f32.gmra.mxu0 %vm476_vm0, %v463_v14 }
  0x8b   : > { %2654 = vmatmul.msk.f32.gmra.mxu1 %vm476_vm0, %v547_v15 }
  0x8d   : > { %2664 = vmatmul.msk.f32.gmra.mxu3 %vm476_vm0, %v557_v31 }
  0x92   : > { %2645 = vmatmul.msk.f32.gmra.mxu0 %vm476_vm0, %v464_v16 }
  0x93   : > { %2655 = vmatmul.msk.f32.gmra.mxu1 %vm476_vm0, %v548_v18 }
  0x9a   : > { %2646 = vmatmul.msk.f32.gmra.mxu0 %vm476_vm0, %v465_v17 }
  0x9b   : > { %2656 = vmatmul.msk.f32.gmra.mxu1 %vm476_vm0, %v549_v21 }
  0xa2   : > { %2647 = vmatmul.msk.f32.gmra.mxu0 %vm476_vm0, %v466_v20 }
  0xa3   : > { %2657 = vmatmul.msk.f32.gmra.mxu1 %vm476_vm0, %v550_v24 }
  0xaa   : > { %2648 = vmatmul.msk.f32.gmra.mxu0 %vm476_vm0, %v467_v23 }
  0xab   : > { %2658 = vmatmul.msk.f32.gmra.mxu1 %vm476_vm0, %v551_v26 }
  0xb2   : > { %2649 = vmatmul.msk.f32.vlgmr.msrb.gmra.mxu0 %vm476_vm0, %v542_v25 }
  0xb3   : > { %2659 = vmatmul.msk.f32.gmra.mxu1 %vm476_vm0, %v552_v28 }
  0xba   : > { %2650 = vmatmul.msk.f32.gmra.mxu0 %vm476_vm0, %v543_v27 }
  0xbb   : > { %2660 = vmatmul.msk.f32.gmra.mxu1 %vm476_vm0, %v553_v29 }
  0xef   : > { %v518_v33 = vpop.f32.mrf.mxu0 }
  0xf0   : > { %v3607_v34 = vadd.f32 %v3604_v32, %v518_v33  ;;  %v637_v35 = vpop.f32.mrf.mxu1 }
  0xf1   : > { %v3615_v38 = vadd.f32 %v3612_v36, %v637_v35 }
  0xf7   : > { %v521_v37 = vpop.f32.mrf.mxu0 }
  0xf8   : > { %v522_v39 = vadd.f32 %v3604_v32, %v521_v37  ;;  %v640_v43 = vpop.f32.mrf.mxu1 }
  0xf9   : > { %v3638_v52 = vadd.f32 %v3612_v36, %v640_v43 }
  0xfa   : > { %v3618_v40 = vperm.slane %v522_v39, 4  ;;  %v3620_v41 = vperm.slane %v522_v39, 1  ;;  %v3622_v42 = vperm.slane %v522_v39, 0  ;;  %v3630_v47 = vperm.slane %v522_v39, 6 }
  0xfb   : > { %v3635_v51 = vperm.slane %v522_v39, 3  ;;  %v3648_v58 = vperm.slane %v522_v39, 5  ;;  %v3660_v3 = vperm.slane %v522_v39, 2  ;;  %v3687_v22 = vperm.slane %v522_v39, 7 }
  0xfc   : > { %5340 = vst [vmem:[#allocation18_spill] sm:$0xff] %v3618_v40  ;;  %v977_v44 = vmul.f32 %v3618_v40, %v3615_v38  ;;  %v761_v45 = vmul.f32 %v3620_v41, %v3615_v38  ;;  %v689_v46 = vmul.f32 %v3622_v42, %v3615_v38  ;;  %v1121_v53 = vmul.f32 %v3630_v47, %v3615_v38 }
  0xfd   : > { %5341 = vst [vmem:[#allocation19_spill] sm:$0xff] %v3620_v41  ;;  %v905_v54 = vmul.f32 %v3635_v51, %v3615_v38  ;;  %v690_v55 = vmul.f32 %v3622_v42, %v3638_v52  ;;  %v978_v60 = vmul.f32 %v3618_v40, %v3638_v52  ;;  %v1049_v61 = vmul.f32 %v3648_v58, %v3615_v38 }
  0xfe   : > { %5342 = vst [vmem:[#allocation20_spill] sm:$0xff] %v3622_v42  ;;  %v997_v48 = vsel %vm476_vm0, %v977_v44, 0.0  ;;  %v781_v49 = vsel %vm476_vm0, %v761_v45, 0.0  ;;  %v709_v50 = vsel %vm476_vm0, %v689_v46, 0.0  ;;  %v1141_v56 = vsel %vm476_vm0, %v1121_v53, 0.0 }
  0xff   : > { %5343 = vst [vmem:[#allocation21_spill] sm:$0xff] %v3630_v47  ;;  %998 = vadd.xlane.f32.xlu2 %v997_v48  ;;  %782 = vadd.xlane.f32.xlu0 %v781_v49  ;;  %v925_v57 = vsel %vm476_vm0, %v905_v54, 0.0  ;;  %v712_v59 = vsel %vm476_vm0, %v690_v55, 0.0  ;;  %v762_v62 = vmul.f32 %v3620_v41, %v3638_v52  ;;  %v1000_v63 = vsel %vm476_vm0, %v978_v60, 0.0  ;;  %v524_v1 = vpop.f32.mrf.mxu0 }
 0x100   : > { %5344 = vst [vmem:[#allocation22_spill] sm:$0xff] %v3635_v51  ;;  %710 = vadd.xlane.f32.xlu1 %v709_v50  ;;  %v1069_v0 = vsel %vm476_vm0, %v1049_v61, 0.0  ;;  %v525_v4 = vadd.f32 %v3604_v32, %v524_v1  ;;  %v1122_v5 = vmul.f32 %v3630_v47, %v3638_v52  ;;  %v906_v6 = vmul.f32 %v3635_v51, %v3638_v52  ;;  %v643_v7 = vpop.f32.mrf.mxu1 }
 0x101   : > { %5345 = vst [vmem:[#allocation23_spill] sm:$0xff] %v3648_v58  ;;  %v784_v2 = vsel %vm476_vm0, %v762_v62, 0.0  ;;  %v833_v8 = vmul.f32 %v3660_v3, %v3615_v38  ;;  %v644_v9 = vadd.f32 %v3612_v36, %v643_v7  ;;  %v1050_v15 = vmul.f32 %v3648_v58, %v3638_v52 }
 0x102   : > { %5346 = vst [vmem:[#allocation24_spill] sm:$0xff] %v3660_v3  ;;  %v3670_v10 = vperm.slane %v525_v4, 0  ;;  %v1144_v11 = vsel %vm476_vm0, %v1122_v5, 0.0  ;;  %v928_v12 = vsel %vm476_vm0, %v906_v6, 0.0  ;;  %v834_v16 = vmul.f32 %v3660_v3, %v3638_v52 }
 0x103   : > { %v853_v13 = vsel %vm476_vm0, %v833_v8, 0.0  ;;  %v1072_v18 = vsel %vm476_vm0, %v1050_v15, 0.0  ;;  %v3682_v19 = vperm.slane %v525_v4, 1  ;;  %v3684_v20 = vperm.slane %v525_v4, 3  ;;  %5347 = vst [vmem:[#allocation25_spill] sm:$0xff] %v3687_v22 }
 0x104   : > { %v691_v14 = vmul.f32 %v3670_v10, %v644_v9  ;;  %v856_v21 = vsel %vm476_vm0, %v834_v16, 0.0  ;;  %v1193_v25 = vmul.f32 %v3687_v22, %v3615_v38  ;;  %v3695_v28 = vperm.slane %v525_v4, 5 }
 0x105   : > { %v763_v23 = vmul.f32 %v3682_v19, %v644_v9  ;;  %v907_v24 = vmul.f32 %v3684_v20, %v644_v9  ;;  %v3697_v29 = vperm.slane %v525_v4, 4  ;;  %v1194_v35 = vmul.f32 %v3687_v22, %v3638_v52 }
 0x106   : > { %v715_v17 = vsel %vm476_vm0, %v691_v14, 0.0  ;;  %v1213_v30 = vsel %vm476_vm0, %v1193_v25, 0.0  ;;  %v1051_v31 = vmul.f32 %v3695_v28, %v644_v9  ;;  %v3706_v39 = vperm.slane %v525_v4, 6 }
 0x107   : > { %1142 = vadd.xlane.f32.xlu2 %v1141_v56  ;;  %926 = vadd.xlane.f32.xlu0 %v925_v57  ;;  %v787_v26 = vsel %vm476_vm0, %v763_v23, 0.0  ;;  %v931_v27 = vsel %vm476_vm0, %v907_v24, 0.0  ;;  %v979_v33 = vmul.f32 %v3697_v29, %v644_v9  ;;  %v3708_v43 = vperm.slane %v525_v4, 7  ;;  %v527_v56 = vpop.f32.mrf.mxu0 }
 0x108   : > { %713 = vadd.xlane.f32.xlu1 %v712_v59  ;;  %v1075_v37 = vsel %vm476_vm0, %v1051_v31, 0.0  ;;  %v1216_v44 = vsel %vm476_vm0, %v1194_v35, 0.0  ;;  %v3711_v45 = vperm.slane %v525_v4, 2  ;;  %v1123_v46 = vmul.f32 %v3706_v39, %v644_v9  ;;  %v646_v49 = vpop.f32.mrf.mxu1 }
 0x109   : > { %v1003_v38 = vsel %vm476_vm0, %v979_v33, 0.0  ;;  %v1195_v48 = vmul.f32 %v3708_v43, %v644_v9  ;;  %v647_v52 = vadd.f32 %v3612_v36, %v646_v49  ;;  %v3940_v40 = vperm.slane %v3607_v34, 6 }
 0x10a   : > { %v835_v50 = vmul.f32 %v3711_v45, %v644_v9  ;;  %v1147_v53 = vsel %vm476_vm0, %v1123_v46, 0.0  ;;  %v3943_v51 = vperm.slane %v3607_v34, 2 }
 0x10b   : > { %v1219_v54 = vsel %vm476_vm0, %v1195_v48, 0.0  ;;  %v692_v57 = vmul.f32 %v3670_v10, %v647_v52  ;;  %v764_v59 = vmul.f32 %v3682_v19, %v647_v52  ;;  %v836_v60 = vmul.f32 %v3711_v45, %v647_v52  ;;  %5375 = vst [vmem:[#allocation53_spill] sm:$0xff] %v3940_v40 }
 0x10c   : > { %v859_v55 = vsel %vm476_vm0, %v835_v50, 0.0  ;;  %v980_v4 = vmul.f32 %v3697_v29, %v647_v52  ;;  %v1196_v6 = vmul.f32 %v3708_v43, %v647_v52  ;;  %v1052_v16 = vmul.f32 %v3695_v28, %v647_v52  ;;  %5376 = vst [vmem:[#allocation54_spill] sm:$0xff] %v3943_v51 }
 0x10d   : > { %v718_v61 = vsel %vm476_vm0, %v692_v57, 0.0  ;;  %v790_v62 = vsel %vm476_vm0, %v764_v59, 0.0 }
 0x10e   : > { %v1078_v25 = vsel %vm476_vm0, %v1052_v16, 0.0 }
 0x10f   : > { %1001 = vadd.xlane.f32.xlu2 %v1000_v63  ;;  %1070 = vadd.xlane.f32.xlu0 %v1069_v0  ;;  %v862_v63 = vsel %vm476_vm0, %v836_v60, 0.0  ;;  %v3727_v0 = vadd.f32 %v3604_v32, %v527_v56  ;;  %v530_v5 = vpop.f32.mrf.mxu0 }
 0x110   : > { %785 = vadd.xlane.f32.xlu1 %v784_v2  ;;  %v649_v1 = vpop.f32.mrf.mxu1  ;;  %v908_v2 = vmul.f32 %v3684_v20, %v647_v52 }
 0x111   : > { %v3733_v7 = vadd.f32 %v3612_v36, %v649_v1  ;;  %v3736_v8 = vperm.slane %v3727_v0, 2  ;;  %v3739_v9 = vperm.slane %v3727_v0, 1  ;;  %v3777_v48 = vperm.slane %v3727_v0, 0 }
 0x113   : > { %5348 = vst [vmem:[#allocation26_spill] sm:$0xff] %v3736_v8  ;;  %v837_v14 = vmul.f32 %v3736_v8, %v3733_v7  ;;  %v765_v15 = vmul.f32 %v3739_v9, %v3733_v7  ;;  %v693_v56 = vmul.f32 %v3777_v48, %v3733_v7 }
 0x114   : > { %5349 = vst [vmem:[#allocation27_spill] sm:$0xff] %v3739_v9 }
 0x115   : > { %v793_v23 = vsel %vm476_vm0, %v765_v15, 0.0  ;;  %5354 = vst [vmem:[#allocation32_spill] sm:$0xff] %v3777_v48 }
 0x117   : > { %1145 = vadd.xlane.f32.xlu2 %v1144_v11  ;;  %929 = vadd.xlane.f32.xlu0 %v928_v12  ;;  %v934_v11 = vsel %vm476_vm0, %v908_v2, 0.0  ;;  %v1006_v12 = vsel %vm476_vm0, %v980_v4, 0.0 }
 0x118   : > { %854 = vadd.xlane.f32.xlu1 %v853_v13  ;;  %v1222_v13 = vsel %vm476_vm0, %v1196_v6, 0.0 }
 0x11f   : > { %716 = vadd.xlane.f32.xlu2 %v715_v17  ;;  %1073 = vadd.xlane.f32.xlu0 %v1072_v18  ;;  %v652_v17 = vpop.f32.mrf.mxu1  ;;  %v865_v18 = vsel %vm476_vm0, %v837_v14, 0.0 }
 0x120   : > { %857 = vadd.xlane.f32.xlu1 %v856_v21  ;;  %v3750_v21 = vpop.f32.mrf.mxu0  ;;  %v3754_v24 = vadd.f32 %v3612_v36, %v652_v17 }
 0x122   : > { %v766_v31 = vmul.f32 %v3739_v9, %v3754_v24 }
 0x127   : > { %788 = vadd.xlane.f32.xlu2 %v787_v26  ;;  %932 = vadd.xlane.f32.xlu0 %v931_v27  ;;  %v3758_v26 = vperm.slane %v3727_v0, 4  ;;  %v1124_v27 = vmul.f32 %v3706_v39, %v647_v52  ;;  %v655_v35 = vpop.f32.mrf.mxu1  ;;  %v3781_v52 = vperm.slane %v3727_v0, 5 }
 0x128   : > { %1214 = vadd.xlane.f32.xlu1 %v1213_v30  ;;  %v3762_v30 = vadd.f32 %v3604_v32, %v530_v5  ;;  %v536_v49 = vpop.f32.mrf.mxu0  ;;  %v694_v5 = vmul.f32 %v3777_v48, %v3754_v24 }
 0x129   : > { %5350 = vst [vmem:[#allocation28_spill] sm:$0xff] %v3758_v26  ;;  %v981_v33 = vmul.f32 %v3758_v26, %v3733_v7  ;;  %v1053_v57 = vmul.f32 %v3781_v52, %v3733_v7 }
 0x12a   : > { %5351 = vst [vmem:[#allocation29_spill] sm:$0xff] %v3762_v30  ;;  %v3774_v46 = vperm.slane %v3762_v30, 0  ;;  %v3816_v14 = vperm.slane %v3762_v30, 1  ;;  %v724_v16 = vsel %vm476_vm0, %v694_v5, 0.0 }
 0x12b   : > { %v1009_v50 = vsel %vm476_vm0, %v981_v33, 0.0  ;;  %5355 = vst [vmem:[#allocation33_spill] sm:$0xff] %v3781_v52  ;;  %v1081_v1 = vsel %vm476_vm0, %v1053_v57, 0.0 }
 0x12c   : > { %5353 = vst [vmem:[#allocation31_spill] sm:$0xff] %v3774_v46 }
 0x12d   : > { %5361 = vst [vmem:[#allocation39_spill] sm:$0xff] %v3816_v14 }
 0x12f   : > { %1076 = vadd.xlane.f32.xlu2 %v1075_v37  ;;  %1004 = vadd.xlane.f32.xlu0 %v1003_v38  ;;  %v1150_v37 = vsel %vm476_vm0, %v1124_v27, 0.0  ;;  %v3770_v38 = vadd.f32 %v3612_v36, %v655_v35 }
 0x130   : > { %1217 = vadd.xlane.f32.xlu1 %v1216_v44  ;;  %v796_v44 = vsel %vm476_vm0, %v766_v31, 0.0  ;;  %v539_v35 = vpop.f32.mrf.mxu0 }
 0x131   : > { %5352 = vst [vmem:[#allocation30_spill] sm:$0xff] %v3770_v38 }
 0x137   : > { %1148 = vadd.xlane.f32.xlu2 %v1147_v53  ;;  %1220 = vadd.xlane.f32.xlu0 %v1219_v54  ;;  %v3784_v53 = vadd.f32 %v3604_v32, %v536_v49  ;;  %v667_v54 = vpop.f32.mrf.mxu3  ;;  %v3841_v49 = vadd.f32 %v3604_v32, %v539_v35 }
 0x138   : > { %860 = vadd.xlane.f32.xlu1 %v859_v55  ;;  %v695_v55 = vmul.f32 %v3774_v46, %v3770_v38  ;;  %v3793_v59 = vadd.f32 %v3612_v36, %v667_v54 }
 0x139   : > { %5356 = vst [vmem:[#allocation34_spill] sm:$0xff] %v3784_v53  ;;  %v3796_v60 = vperm.slane %v3784_v53, 2  ;;  %v3823_v17 = vperm.slane %v3784_v53, 0  ;;  %v3834_v33 = vperm.slane %v3784_v53, 4 }
 0x13a   : > { %5357 = vst [vmem:[#allocation35_spill] sm:$0xff] %v3793_v59 }
 0x13b   : > { %5358 = vst [vmem:[#allocation36_spill] sm:$0xff] %v3796_v60  ;;  %v843_v2 = vmul.f32 %v3796_v60, %v3793_v59  ;;  %v699_v57 = vmul.f32 %v3823_v17, %v3793_v59 }
 0x13c   : > { %5363 = vst [vmem:[#allocation41_spill] sm:$0xff] %v3823_v17 }
 0x13d   : > { %5364 = vst [vmem:[#allocation42_spill] sm:$0xff] %v3834_v33 }
 0x13e   : > { %5366 = vst [vmem:[#allocation44_spill] sm:$0xff] %v3841_v49 }
 0x13f   : > { %719 = vadd.xlane.f32.xlu2 %v718_v61  ;;  %791 = vadd.xlane.f32.xlu0 %v790_v62  ;;  %v727_v61 = vsel %vm476_vm0, %v695_v55, 0.0  ;;  %v721_v62 = vsel %vm476_vm0, %v693_v56, 0.0  ;;  %v670_v6 = vpop.f32.mrf.mxu3  ;;  %v987_v56 = vmul.f32 %v3834_v33, %v3793_v59  ;;  %v3970_v33 = vperm.slane %v3607_v34, 5 }
 0x140   : > { %863 = vadd.xlane.f32.xlu1 %v862_v63  ;;  %v3801_v63 = vperm.slane %v3727_v0, 3  ;;  %v3819_v15 = vadd.f32 %v3612_v36, %v670_v6 }
 0x141   : > { %v1027_v6 = vsel %vm476_vm0, %v987_v56, 0.0  ;;  %5379 = vst [vmem:[#allocation57_spill] sm:$0xff] %v3970_v33 }
 0x142   : > { %5359 = vst [vmem:[#allocation37_spill] sm:$0xff] %v3801_v63  ;;  %v909_v4 = vmul.f32 %v3801_v63, %v3733_v7 }
 0x143   : > { %5362 = vst [vmem:[#allocation40_spill] sm:$0xff] %v3819_v15 }
 0x147   : > { %935 = vadd.xlane.f32.xlu2 %v934_v11  ;;  %1007 = vadd.xlane.f32.xlu0 %v1006_v12  ;;  %v883_v11 = vsel %vm476_vm0, %v843_v2, 0.0  ;;  %v937_v12 = vsel %vm476_vm0, %v909_v4, 0.0  ;;  %v3859_v4 = vperm.slane %v3841_v49, 0 }
 0x148   : > { %1223 = vadd.xlane.f32.xlu1 %v1222_v13  ;;  %v3813_v13 = vperm.slane %v3784_v53, 3 }
 0x149   : > { %5368 = vst [vmem:[#allocation46_spill] sm:$0xff] %v3859_v4 }
 0x14a   : > { %5360 = vst [vmem:[#allocation38_spill] sm:$0xff] %v3813_v13 }
 0x14f   : > { %866 = vadd.xlane.f32.xlu2 %v865_v18  ;;  %1079 = vadd.xlane.f32.xlu0 %v1078_v25  ;;  %v915_v18 = vmul.f32 %v3813_v13, %v3793_v59  ;;  %v700_v25 = vmul.f32 %v3823_v17, %v3819_v15  ;;  %v3921_v17 = vperm.slane %v3607_v34, 1 }
 0x150   : > { %794 = vadd.xlane.f32.xlu1 %v793_v23  ;;  %v767_v23 = vmul.f32 %v3816_v14, %v3770_v38 }
 0x151   : > { %v955_v27 = vsel %vm476_vm0, %v915_v18, 0.0  ;;  %v3871_v18 = vadd.f32 %v3604_v32, %v3750_v21  ;;  %5374 = vst [vmem:[#allocation52_spill] sm:$0xff] %v3921_v17 }
 0x152   : > { %v799_v31 = vsel %vm476_vm0, %v767_v23, 0.0 }
 0x153   : > { %v3995_v30 = vperm.slane %v3871_v18, 4 }
 0x155   : > { %5381 = vst [vmem:[#allocation59_spill] sm:$0xff] %v3995_v30 }
 0x157   : > { %797 = vadd.xlane.f32.xlu2 %v796_v44  ;;  %1151 = vadd.xlane.f32.xlu0 %v1150_v37  ;;  %v742_v37 = vsel %vm476_vm0, %v700_v25, 0.0  ;;  %v3838_v44 = vperm.slane %v3784_v53, 1  ;;  %v4033_v53 = vperm.slane %v3871_v18, 7 }
 0x158   : > { %1010 = vadd.xlane.f32.xlu1 %v1009_v50  ;;  %v673_v50 = vpop.f32.mrf.mxu3 }
 0x159   : > { %5365 = vst [vmem:[#allocation43_spill] sm:$0xff] %v3838_v44  ;;  %v3856_v2 = vadd.f32 %v3612_v36, %v673_v50 }
 0x15b   : > { %5367 = vst [vmem:[#allocation45_spill] sm:$0xff] %v3856_v2 }
 0x15f   : > { %728 = vadd.xlane.f32.xlu2 %v727_v61  ;;  %722 = vadd.xlane.f32.xlu0 %v721_v62  ;;  %v658_v61 = vpop.f32.mrf.mxu1 }
 0x160   : > { %1082 = vadd.xlane.f32.xlu1 %v1081_v1  ;;  %v771_v1 = vmul.f32 %v3838_v44, %v3793_v59  ;;  %v3862_v5 = vadd.f32 %v3612_v36, %v658_v61  ;;  %v676_v35 = vpop.f32.mrf.mxu3  ;;  %v3892_v61 = vperm.slane %v3871_v18, 1 }
 0x161   : > { %v3888_v32 = vadd.f32 %v3612_v36, %v676_v35  ;;  %v631_v35 = vpop.f32.mrf.mxu0 }
 0x162   : > { %5369 = vst [vmem:[#allocation47_spill] sm:$0xff] %v3862_v5 }
 0x163   : > { %5370 = vst [vmem:[#allocation48_spill] sm:$0xff] %v3888_v32 }
 0x164   : > { %5371 = vst [vmem:[#allocation49_spill] sm:$0xff] %v3892_v61 }
 0x167   : > { %884 = vadd.xlane.f32.xlu2 %v883_v11  ;;  %938 = vadd.xlane.f32.xlu0 %v937_v12  ;;  %v739_v11 = vsel %vm476_vm0, %v699_v57, 0.0  ;;  %v811_v12 = vsel %vm476_vm0, %v771_v1, 0.0  ;;  %v661_v56 = vpop.f32.mrf.mxu1 }
 0x168   : > { %725 = vadd.xlane.f32.xlu1 %v724_v16  ;;  %v701_v16 = vmul.f32 %v3859_v4, %v3856_v2  ;;  %v3885_v57 = vadd.f32 %v3612_v36, %v661_v56  ;;  %v3966_v2 = vperm.slane %v3871_v18, 2 }
 0x16a   : > { %v745_v50 = vsel %vm476_vm0, %v701_v16, 0.0  ;;  %v769_v16 = vmul.f32 %v3892_v61, %v3885_v57  ;;  %5378 = vst [vmem:[#allocation56_spill] sm:$0xff] %v3966_v2 }
 0x16f   : > { %956 = vadd.xlane.f32.xlu2 %v955_v27  ;;  %800 = vadd.xlane.f32.xlu0 %v799_v31  ;;  %v696_v27 = vmul.f32 %v3774_v46, %v3862_v5  ;;  %v3915_v46 = vperm.slane %v3607_v34, 4 }
 0x170   : > { %743 = vadd.xlane.f32.xlu1 %v742_v37  ;;  %v768_v37 = vmul.f32 %v3816_v14, %v3862_v5 }
 0x171   : > { %v730_v21 = vsel %vm476_vm0, %v696_v27, 0.0  ;;  %v702_v27 = vmul.f32 %v3859_v4, %v3888_v32  ;;  %v3918_v4 = vperm.slane %v3607_v34, 0 }
 0x172   : > { %v3843_v54 = vpop.xlane.xlu2 %998  ;;  %v3845_v55 = vpop.xlane.xlu0 %782  ;;  %v802_v1 = vsel %vm476_vm0, %v768_v37, 0.0 }
 0x173   : > { %v3851_v62 = vpop.xlane.xlu1 %710  ;;  %5373 = vst [vmem:[#allocation51_spill] sm:$0xff] %v3918_v4 }
 0x177   : > { %1028 = vadd.xlane.f32.xlu2 %v1027_v6  ;;  %740 = vadd.xlane.f32.xlu0 %v739_v11  ;;  %v3896_v6 = vperm.slane %v3871_v18, 0 }
 0x178   : > { %812 = vadd.xlane.f32.xlu1 %v811_v12 }
 0x179   : > { %5372 = vst [vmem:[#allocation50_spill] sm:$0xff] %v3896_v6  ;;  %v697_v37 = vmul.f32 %v3896_v6, %v3885_v57 }
 0x17a   : > { %v3873_v23 = vpop.xlane.xlu2 %1142  ;;  %v3875_v25 = vpop.xlane.xlu0 %926 }
 0x17b   : > { %v3879_v31 = vpop.xlane.xlu1 %713  ;;  %v733_v14 = vsel %vm476_vm0, %v697_v37, 0.0 }
 0x17f   : > { %746 = vadd.xlane.f32.xlu2 %v745_v50  ;;  %731 = vadd.xlane.f32.xlu0 %v730_v21  ;;  %v632_v50 = vadd.f32 %v3612_v36, %v631_v35  ;;  %v805_v21 = vsel %vm476_vm0, %v769_v16, 0.0  ;;  %v1257_v35 = vmax.f32 %v3851_v62, %v3845_v55 }
 0x180   : > { %803 = vadd.xlane.f32.xlu1 %v802_v1  ;;  %v748_v1 = vsel %vm476_vm0, %v702_v27, 0.0 }
 0x181   : > { %v1119_v3 = vmul.f32 %v3940_v40, %v632_v50 }
 0x182   : > { %v3898_v11 = vpop.xlane.xlu2 %1001  ;;  %v3900_v12 = vpop.xlane.xlu0 %1070 }
 0x183   : > { %v3906_v56 = vpop.xlane.xlu1 %785  ;;  %v1135_v42 = vsel %vm476_vm0, %v1119_v3, 0.0 }
 0x187   : > { %806 = vadd.xlane.f32.xlu2 %v805_v21  ;;  %749 = vadd.xlane.f32.xlu0 %v748_v1  ;;  %v975_v21 = vmul.f32 %v3915_v46, %v632_v50  ;;  %v759_v1 = vmul.f32 %v3921_v17, %v632_v50 }
 0x188   : > { %734 = vadd.xlane.f32.xlu1 %v733_v14  ;;  %v687_v14 = vmul.f32 %v3918_v4, %v632_v50 }
 0x189   : > { %v991_v22 = vsel %vm476_vm0, %v975_v21, 0.0  ;;  %v775_v58 = vsel %vm476_vm0, %v759_v1, 0.0 }
 0x18a   : > { %v3925_v16 = vpop.xlane.xlu2 %1145  ;;  %v3927_v27 = vpop.xlane.xlu0 %929  ;;  %v703_v47 = vsel %vm476_vm0, %v687_v14, 0.0  ;;  %v831_v14 = vmul.f32 %v3943_v51, %v632_v50 }
 0x18b   : > { %v3931_v37 = vpop.xlane.xlu1 %854 }
 0x18c   : > { %v1273_v9 = vmax.f32 %v1257_v35, %v3931_v37  ;;  %v3947_v35 = vperm.slane %v3607_v34, 3  ;;  %v847_v5 = vsel %vm476_vm0, %v831_v14, 0.0 }
 0x18e   : > { %v1289_v48 = vmax.f32 %v1273_v9, %v3875_v25  ;;  %5377 = vst [vmem:[#allocation55_spill] sm:$0xff] %v3947_v35  ;;  %v1258_v9 = vmax.f32 %v3879_v31, %v3906_v56  ;;  %v903_v1 = vmul.f32 %v3947_v35, %v632_v50 }
 0x18f   : > { %992 = vadd.xlane.f32.xlu2 %v991_v22  ;;  %704 = vadd.xlane.f32.xlu0 %v703_v47 }
 0x190   : > { %776 = vadd.xlane.f32.xlu1 %v775_v58  ;;  %v1305_v22 = vmax.f32 %v1289_v48, %v3843_v54  ;;  %v919_v49 = vsel %vm476_vm0, %v903_v1, 0.0 }
 0x192   : > { %v3952_v21 = vpop.xlane.xlu2 %716  ;;  %v3954_v47 = vpop.xlane.xlu0 %1073  ;;  %v1321_v48 = vmax.f32 %v1305_v22, %v3900_v12 }
 0x193   : > { %v3957_v58 = vpop.xlane.xlu1 %857 }
 0x194   : > { %v1274_v41 = vmax.f32 %v1258_v9, %v3957_v58  ;;  %v3973_v9 = vperm.slane %v3607_v34, 7 }
 0x196   : > { %v1290_v32 = vmax.f32 %v1274_v41, %v3927_v27  ;;  %5380 = vst [vmem:[#allocation58_spill] sm:$0xff] %v3973_v9  ;;  %v1047_v41 = vmul.f32 %v3970_v33, %v632_v50 }
 0x197   : > { %1136 = vadd.xlane.f32.xlu2 %v1135_v42  ;;  %848 = vadd.xlane.f32.xlu0 %v847_v5  ;;  %v1337_v42 = vmax.f32 %v1321_v48, %v3873_v23  ;;  %v841_v5 = vmul.f32 %v3966_v2, %v3885_v57 }
 0x198   : > { %920 = vadd.xlane.f32.xlu1 %v919_v49  ;;  %v1306_v3 = vmax.f32 %v1290_v32, %v3898_v11  ;;  %v1191_v49 = vmul.f32 %v3973_v9, %v632_v50  ;;  %v1063_v38 = vsel %vm476_vm0, %v1047_v41, 0.0  ;;  %v3992_v32 = vperm.slane %v3871_v18, 6 }
 0x199   : > { %v877_v48 = vsel %vm476_vm0, %v841_v5, 0.0  ;;  %v4005_v41 = vperm.slane %v3871_v18, 3 }
 0x19a   : > { %v3977_v14 = vpop.xlane.xlu2 %788  ;;  %v3979_v22 = vpop.xlane.xlu0 %932  ;;  %v1322_v13 = vmax.f32 %v1306_v3, %v3954_v47 }
 0x19b   : > { %v3984_v1 = vpop.xlane.xlu1 %1214  ;;  %5382 = vst [vmem:[#allocation60_spill] sm:$0xff] %v4005_v41  ;;  %v634_v3 = vpop.f32.mrf.mxu0 }
 0x19c   : > { %v3988_v34 = vmax.f32 %v1337_v42, %v3984_v1  ;;  %v1207_v42 = vsel %vm476_vm0, %v1191_v49, 0.0  ;;  %v1338_v59 = vmax.f32 %v1322_v13, %v3925_v16  ;;  %v4027_v63 = vadd.f32 %v3612_v36, %v634_v3 }
 0x19e   : > { %v1369_v52 = vsub.f32 %v3851_v62, %v3988_v34  ;;  %v1417_v50 = vsub.f32 %v3845_v55, %v3988_v34  ;;  %v1465_v60 = vsub.f32 %v3931_v37, %v3988_v34  ;;  %v1129_v62 = vmul.f32 %v3992_v32, %v3885_v57 }
 0x19f   : > { %878 = vadd.xlane.f32.xlu2 %v877_v48  ;;  %1064 = vadd.xlane.f32.xlu0 %v1063_v38  ;;  %v985_v55 = vmul.f32 %v3995_v30, %v3885_v57  ;;  %v1513_v49 = vsub.f32 %v3875_v25, %v3988_v34  ;;  %v1609_v15 = vsub.f32 %v3900_v12, %v3988_v34 }
 0x1a0   : > { %1208 = vadd.xlane.f32.xlu1 %v1207_v42  ;;  %v1387_v5 = vmul.f32 1.442695, %v1369_v52  ;;  %v1435_v26 = vmul.f32 1.442695, %v1417_v50  ;;  %v1561_v52 = vsub.f32 %v3843_v54, %v3988_v34  ;;  %v913_v50 = vmul.f32 %v4005_v41, %v3885_v57 }
 0x1a1   : > { %v1483_v42 = vmul.f32 1.442695, %v1465_v60  ;;  %v1165_v13 = vsel %vm476_vm0, %v1129_v62, 0.0  ;;  %v1021_v54 = vsel %vm476_vm0, %v985_v55, 0.0  ;;  %v1531_v44 = vmul.f32 1.442695, %v1513_v49 }
 0x1a2   : > { %v4015_v38 = vpop.xlane.xlu2 %1076  ;;  %v4017_v48 = vpop.xlane.xlu0 %1004  ;;  %2793 = vpow2.f32 %v1387_v5  ;;  %v1579_v5 = vmul.f32 1.442695, %v1561_v52  ;;  %v1657_v60 = vsub.f32 %v3873_v23, %v3988_v34  ;;  %v4047_v62 = vperm.slane %v3871_v18, 5 }
 0x1a3   : > { %v4022_v37 = vpop.xlane.xlu1 %1217  ;;  %2795 = vpow2.f32 %v1435_v26  ;;  %v949_v26 = vsel %vm476_vm0, %v913_v50, 0.0  ;;  %v688_v23 = vmul.f32 %v3918_v4, %v4027_v63  ;;  %v1201_v52 = vmul.f32 %v4033_v53, %v3885_v57 }
 0x1a4   : > { %v4030_v25 = vmax.f32 %v1338_v59, %v4022_v37  ;;  %2797 = vpow2.f32 %v1483_v42  ;;  %v1627_v50 = vmul.f32 1.442695, %v1609_v15  ;;  %v1259_v42 = vmax.f32 %v3952_v21, %v3977_v14 }
 0x1a5   : > { %2799 = vpow2.f32 %v1531_v44  ;;  %v706_v4 = vsel %vm476_vm0, %v688_v23, 0.0 }
 0x1a6   : > { %v1370_v59 = vsub.f32 %v3879_v31, %v4030_v25  ;;  %v1418_v3 = vsub.f32 %v3906_v56, %v4030_v25  ;;  %v1466_v12 = vsub.f32 %v3957_v58, %v4030_v25  ;;  %v664_v56 = vpop.f32.mrf.mxu1  ;;  %2801 = vpow2.f32 %v1579_v5 }
 0x1a7   : > { %1166 = vadd.xlane.f32.xlu2 %v1165_v13  ;;  %1022 = vadd.xlane.f32.xlu0 %v1021_v54  ;;  %v1675_v54 = vmul.f32 1.442695, %v1657_v60  ;;  %v4076_v5 = vadd.f32 %v3612_v36, %v664_v56  ;;  %v1705_v60 = vsub.f32 %v3984_v1, %v3988_v34  ;;  %v1562_v1 = vsub.f32 %v3898_v11, %v4030_v25 }
 0x1a8   : > { %950 = vadd.xlane.f32.xlu1 %v949_v26  ;;  %v1389_v55 = vmul.f32 1.442695, %v1370_v59  ;;  %v1437_v31 = vmul.f32 1.442695, %v1418_v3  ;;  %v4053_v49 = vpop.eup %2793  ;;  %v1057_v3 = vmul.f32 %v4047_v62, %v3885_v57  ;;  %v1485_v26 = vmul.f32 1.442695, %v1466_v12 }
 0x1a9   : > { %v4057_v18 = vpop.eup %2795  ;;  %v1237_v57 = vsel %vm476_vm0, %v1201_v52, 0.0  ;;  %v1610_v11 = vsub.f32 %v3954_v47, %v4030_v25 }
 0x1aa   : > { %v4061_v58 = vpop.xlane.xlu2 %1148  ;;  %v4063_v13 = vpop.xlane.xlu0 %1220  ;;  %2803 = vpow2.f32 %v1389_v55  ;;  %v1753_v15 = vadd.f32 %v4057_v18, %v4053_v49  ;;  %v1514_v55 = vsub.f32 %v3927_v27, %v4030_v25  ;;  %v1093_v36 = vsel %vm476_vm0, %v1057_v3, 0.0 }
 0x1ab   : > { %v4065_v59 = vpop.xlane.xlu1 %860  ;;  %2805 = vpow2.f32 %v1437_v31  ;;  %v4073_v8 = vpop.eup %2797  ;;  %v904_v27 = vmul.f32 %v3947_v35, %v4027_v63  ;;  %v1581_v35 = vmul.f32 1.442695, %v1562_v1 }
 0x1ac   : > { %v1275_v44 = vmax.f32 %v1259_v42, %v4065_v59  ;;  %5383 = vst [vmem:[#allocation61_spill] sm:$0xff] %v4073_v8  ;;  %2807 = vpow2.f32 %v1627_v50  ;;  %v1769_v23 = vadd.f32 %v4073_v8, %v1753_v15  ;;  %v4085_v31 = vpop.eup %2799  ;;  %v1723_v42 = vmul.f32 1.442695, %v1705_v60 }
 0x1ad   : > { %2809 = vpow2.f32 %v1675_v54  ;;  %5384 = vst [vmem:[#allocation62_spill] sm:$0xff] %v4085_v31  ;;  %v4090_v34 = vpop.eup %2801  ;;  %v832_v54 = vmul.f32 %v3943_v51, %v4027_v63  ;;  %v760_v60 = vmul.f32 %v3921_v17, %v4027_v63 }
 0x1ae   : > { %v1291_v12 = vmax.f32 %v1275_v44, %v3979_v22  ;;  %2811 = vpow2.f32 %v1485_v26  ;;  %5385 = vst [vmem:[#allocation63_spill] sm:$0xff] %v4090_v34  ;;  %v1785_v52 = vadd.f32 %v4085_v31, %v1769_v23 }
 0x1af   : > { %1238 = vadd.xlane.f32.xlu2 %v1237_v57  ;;  %707 = vadd.xlane.f32.xlu0 %v706_v4  ;;  %v698_v4 = vmul.f32 %v3896_v6, %v4076_v5  ;;  %v1533_v57 = vmul.f32 1.442695, %v1514_v55  ;;  %2813 = vpow2.f32 %v1723_v42  ;;  %v1629_v6 = vmul.f32 1.442695, %v1610_v11 }
 0x1b0   : > { %v1307_v56 = vmax.f32 %v1291_v12, %v4017_v48  ;;  %1094 = vadd.xlane.f32.xlu1 %v1093_v36  ;;  %v4096_v50 = vpop.eup %2803  ;;  %v1801_v12 = vadd.f32 %v4090_v34, %v1785_v52  ;;  %v922_v52 = vsel %vm476_vm0, %v904_v27, 0.0  ;;  %v1048_v34 = vmul.f32 %v3970_v33, %v4027_v63 }
 0x1b1   : > { %v4104_v3 = vpop.eup %2805  ;;  %2815 = vpow2.f32 %v1533_v57  ;;  %v1706_v33 = vsub.f32 %v4022_v37, %v4030_v25 }
 0x1b2   : > { %5386 = vst [vmem:[#allocation64_spill] sm:$0xff] %v4104_v3  ;;  %v1323_v26 = vmax.f32 %v1307_v56, %v4015_v38  ;;  %v4107_v15 = vpop.xlane.xlu2 %719  ;;  %v4109_v44 = vpop.xlane.xlu0 %791  ;;  %v1658_v56 = vsub.f32 %v3925_v16, %v4030_v25  ;;  %v1754_v51 = vadd.f32 %v4104_v3, %v4096_v50  ;;  %v736_v16 = vsel %vm476_vm0, %v698_v4, 0.0 }
 0x1b3   : > { %v4114_v23 = vpop.eup %2807  ;;  %v1260_v36 = vmax.f32 %v4107_v15, %v4109_v44  ;;  %v4118_v47 = vpop.xlane.xlu1 %863  ;;  %2817 = vpow2.f32 %v1581_v35 }
 0x1b4   : > { %v4124_v31 = vpop.eup %2809  ;;  %v1339_v55 = vmax.f32 %v1323_v26, %v4061_v58  ;;  %v1817_v8 = vadd.f32 %v4114_v23, %v1801_v12  ;;  %v850_v12 = vsel %vm476_vm0, %v832_v54, 0.0  ;;  %v1677_v42 = vmul.f32 1.442695, %v1658_v56 }
 0x1b5   : > { %v4131_v17 = vpop.eup %2811  ;;  %v1276_v1 = vmax.f32 %v1260_v36, %v4118_v47  ;;  %2819 = vpow2.f32 %v1629_v6 }
 0x1b6   : > { %5387 = vst [vmem:[#allocation65_spill] sm:$0xff] %v4131_v17  ;;  %v1355_v3 = vmax.f32 %v1339_v55, %v4063_v13  ;;  %v1833_v26 = vadd.f32 %v4124_v31, %v1817_v8  ;;  %v1770_v27 = vadd.f32 %v4131_v17, %v1754_v51  ;;  %2821 = vpow2.f32 %v1677_v42  ;;  %v5455_v17 = vld [vmem:[#allocation51_spill] sm:$0xff] }
 0x1b7   : > { %737 = vadd.xlane.f32.xlu2 %v736_v16  ;;  %923 = vadd.xlane.f32.xlu0 %v922_v52 }
 0x1b8   : > { %v1371_v36 = vsub.f32 %v3952_v21, %v1355_v3  ;;  %v1419_v4 = vsub.f32 %v3977_v14, %v1355_v3  ;;  %v1467_v11 = vsub.f32 %v4065_v59, %v1355_v3  ;;  %v1515_v57 = vsub.f32 %v3979_v22, %v1355_v3  ;;  %851 = vadd.xlane.f32.xlu1 %v850_v12  ;;  %v4153_v59 = vpop.eup %2813 }
 0x1b9   : > { %v1563_v51 = vsub.f32 %v4017_v48, %v1355_v3  ;;  %v1611_v8 = vsub.f32 %v4015_v38, %v1355_v3  ;;  %v1659_v37 = vsub.f32 %v4061_v58, %v1355_v3  ;;  %v1707_v14 = vsub.f32 %v4063_v13, %v1355_v3  ;;  %5388 = vst [vmem:[#allocation66_spill] sm:$0xff] %v4153_v59  ;;  %v4160_v6 = vpop.eup %2815 }
 0x1ba   : > { %v1391_v25 = vmul.f32 1.442695, %v1371_v36  ;;  %v1439_v54 = vmul.f32 1.442695, %v1419_v4  ;;  %v1487_v35 = vmul.f32 1.442695, %v1467_v11  ;;  %v4148_v56 = vpop.xlane.xlu2 %935  ;;  %v4150_v21 = vpop.xlane.xlu0 %1007  ;;  %v1192_v38 = vmul.f32 %v3973_v9, %v4027_v63 }
 0x1bb   : > { %v1535_v22 = vmul.f32 1.442695, %v1515_v57  ;;  %v1292_v55 = vmax.f32 %v1276_v1, %v4148_v56  ;;  %v4156_v48 = vpop.xlane.xlu1 %1223  ;;  %5389 = vst [vmem:[#allocation67_spill] sm:$0xff] %v4160_v6  ;;  %v1725_v58 = vmul.f32 1.442695, %v1706_v33  ;;  %v4162_v52 = vpop.eup %2817  ;;  %v4168_v3 = vadd.f32 %v4153_v59, %v1833_v26 }
 0x1bc   : > { %2823 = vpow2.f32 %v1391_v25  ;;  %5390 = vst [vmem:[#allocation68_spill] sm:$0xff] %v4162_v52  ;;  %v1583_v16 = vmul.f32 1.442695, %v1563_v51  ;;  %v778_v1 = vsel %vm476_vm0, %v760_v60, 0.0  ;;  %v1066_v12 = vsel %vm476_vm0, %v1048_v34, 0.0  ;;  %v4173_v36 = vpop.eup %2819 }
 0x1bd   : > { %2825 = vpow2.f32 %v1439_v54  ;;  %v4165_v13 = vmax.f32 %v1292_v55, %v4150_v21  ;;  %5391 = vst [vmem:[#allocation69_spill] sm:$0xff] %v4168_v3  ;;  %v1786_v42 = vadd.f32 %v4160_v6, %v1770_v27  ;;  %v1210_v33 = vsel %vm476_vm0, %v1192_v38, 0.0  ;;  %v4177_v57 = vpop.eup %2821 }
 0x1be   : > { %2827 = vpow2.f32 %v1487_v35  ;;  %5392 = vst [vmem:[#allocation70_spill] sm:$0xff] %v4173_v36  ;;  %v1631_v4 = vmul.f32 1.442695, %v1611_v8  ;;  %v1679_v11 = vmul.f32 1.442695, %v1659_v37  ;;  %v976_v34 = vmul.f32 %v3915_v46, %v4027_v63 }
 0x1bf   : > { %2829 = vpow2.f32 %v1535_v22  ;;  %779 = vadd.xlane.f32.xlu2 %v778_v1  ;;  %1067 = vadd.xlane.f32.xlu0 %v1066_v12  ;;  %v1802_v26 = vadd.f32 %v4162_v52, %v1786_v42  ;;  %5393 = vst [vmem:[#allocation71_spill] sm:$0xff] %v4177_v57  ;;  %v1727_v60 = vmul.f32 1.442695, %v1707_v14  ;;  %v770_v8 = vmul.f32 %v3892_v61, %v4076_v5 }
 0x1c0   : > { %2831 = vpow2.f32 %v1725_v58  ;;  %1211 = vadd.xlane.f32.xlu1 %v1210_v33  ;;  %v842_v14 = vmul.f32 %v3966_v2, %v4076_v5  ;;  %v994_v12 = vsel %vm476_vm0, %v976_v34, 0.0 }
 0x1c1   : > { %2833 = vpow2.f32 %v1583_v16  ;;  %v1818_v54 = vadd.f32 %v4173_v36, %v1802_v26  ;;  %v808_v36 = vsel %vm476_vm0, %v770_v8, 0.0  ;;  %v914_v8 = vmul.f32 %v4005_v41, %v4076_v5 }
 0x1c2   : > { %v2824_v27 = vpop.eup %2823  ;;  %v4181_v51 = vpop.xlane.xlu2 %866  ;;  %2835 = vpow2.f32 %v1631_v4 }
 0x1c3   : > { %v4183_v25 = vpop.xlane.xlu0 %1079  ;;  %v2826_v37 = vpop.eup %2825  ;;  %v1883_v35 = vmul.f32 %v2824_v27, %v3670_v10  ;;  %2837 = vpow2.f32 %v1679_v11  ;;  %v1834_v42 = vadd.f32 %v4177_v57, %v1818_v54 }
 0x1c4   : > { %v1324_v22 = vmax.f32 %v4165_v13, %v4183_v25  ;;  %v4191_v55 = vpop.xlane.xlu1 %794  ;;  %v2828_v38 = vpop.eup %2827  ;;  %v1755_v58 = vadd.f32 %v2826_v37, %v2824_v27  ;;  %v1899_v16 = vmul.f32 %v2826_v37, %v3682_v19  ;;  %2839 = vpow2.f32 %v1727_v60 }
 0x1c5   : > { %v2830_v1 = vpop.eup %2829  ;;  %v1931_v3 = vmul.f32 %v2828_v38, %v3711_v45  ;;  %v880_v27 = vsel %vm476_vm0, %v842_v14, 0.0 }
 0x1c6   : > { %v4198_v33 = vpop.eup %2831  ;;  %v1771_v13 = vadd.f32 %v2828_v38, %v1755_v58  ;;  %v1915_v26 = vadd.f32 %v1899_v16, %v1883_v35  ;;  %v1963_v54 = vmul.f32 %v2830_v1, %v3684_v20  ;;  %v1120_v35 = vmul.f32 %v3940_v40, %v4027_v63 }
 0x1c7   : > { %5394 = vst [vmem:[#allocation72_spill] sm:$0xff] %v4198_v33  ;;  %v2834_v4 = vpop.eup %2833  ;;  %995 = vadd.xlane.f32.xlu2 %v994_v12  ;;  %809 = vadd.xlane.f32.xlu0 %v808_v36  ;;  %v4204_v11 = vadd.f32 %v4198_v33, %v1834_v42  ;;  %v1130_v38 = vmul.f32 %v3992_v32, %v4076_v5 }
 0x1c8   : > { %v1787_v34 = vadd.f32 %v2830_v1, %v1771_v13  ;;  %v1947_v60 = vadd.f32 %v1931_v3, %v1915_v26  ;;  %881 = vadd.xlane.f32.xlu1 %v880_v27  ;;  %v2836_v37 = vpop.eup %2835  ;;  %v1995_v3 = vmul.f32 %v2834_v4, %v3697_v29  ;;  %v1138_v33 = vsel %vm476_vm0, %v1120_v35, 0.0 }
 0x1c9   : > { %5395 = vst [vmem:[#allocation73_spill] sm:$0xff] %v4204_v11  ;;  %v2838_v14 = vpop.eup %2837  ;;  %v2027_v63 = vmul.f32 %v2836_v37, %v3695_v28 }
 0x1ca   : > { %v1803_v36 = vadd.f32 %v2834_v4, %v1787_v34  ;;  %v4213_v58 = vpop.xlane.xlu2 %797  ;;  %v1979_v12 = vadd.f32 %v1963_v54, %v1947_v60  ;;  %v2840_v42 = vpop.eup %2839  ;;  %v952_v34 = vsel %vm476_vm0, %v914_v8, 0.0  ;;  %v2059_v60 = vmul.f32 %v2838_v14, %v3706_v39 }
 0x1cb   : > { %5396 = vst [vmem:[#allocation74_spill] sm:$0xff] %v4213_v58  ;;  %v1152_v16 = vpop.xlane.xlu0 %1151  ;;  %v1168_v58 = vsel %vm476_vm0, %v1130_v38, 0.0  ;;  %v2091_v4 = vmul.f32 %v2840_v42, %v3708_v43 }
 0x1cc   : > { %v1340_v1 = vmax.f32 %v1324_v22, %v1152_v16  ;;  %v4216_v13 = vpop.xlane.xlu1 %1010  ;;  %v2011_v26 = vadd.f32 %v1995_v3, %v1979_v12  ;;  %v1819_v27 = vadd.f32 %v2836_v37, %v1803_v36 }
 0x1cd   : > { %5397 = vst [vmem:[#allocation75_spill] sm:$0xff] %v4216_v13 }
 0x1ce   : > { %v1356_v11 = vmax.f32 %v1340_v1, %v4156_v48  ;;  %v2043_v57 = vadd.f32 %v2027_v63, %v2011_v26  ;;  %v1835_v22 = vadd.f32 %v2838_v14, %v1819_v27  ;;  %v4249_v27 = vperm.slane %v3727_v0, 6 }
 0x1cf   : > { %1139 = vadd.xlane.f32.xlu2 %v1138_v33  ;;  %1169 = vadd.xlane.f32.xlu0 %v1168_v58  ;;  %v1202_v33 = vmul.f32 %v4033_v53, %v4076_v5 }
 0x1d0   : > { %v1372_v54 = vsub.f32 %v4107_v15, %v1356_v11  ;;  %v1420_v12 = vsub.f32 %v4109_v44, %v1356_v11  ;;  %v1468_v37 = vsub.f32 %v4118_v47, %v1356_v11  ;;  %v1516_v36 = vsub.f32 %v4148_v56, %v1356_v11  ;;  %953 = vadd.xlane.f32.xlu1 %v952_v34 }
 0x1d1   : > { %v1564_v35 = vsub.f32 %v4150_v21, %v1356_v11  ;;  %v1612_v8 = vsub.f32 %v4183_v25, %v1356_v11  ;;  %v1660_v38 = vsub.f32 %v1152_v16, %v1356_v11  ;;  %v2075_v14 = vadd.f32 %v2059_v60, %v2043_v57  ;;  %5402 = vst [vmem:[#allocation80_spill] sm:$0xff] %v4249_v27 }
 0x1d2   : > { %v1393_v3 = vmul.f32 1.442695, %v1372_v54  ;;  %v1441_v1 = vmul.f32 1.442695, %v1420_v12  ;;  %v1489_v26 = vmul.f32 1.442695, %v1468_v37  ;;  %v4231_v15 = vpop.xlane.xlu2 %728  ;;  %v1058_v47 = vmul.f32 %v4047_v62, %v4076_v5 }
 0x1d3   : > { %v1537_v63 = vmul.f32 1.442695, %v1516_v36  ;;  %5398 = vst [vmem:[#allocation76_spill] sm:$0xff] %v4231_v15  ;;  %v4233_v44 = vpop.xlane.xlu0 %722  ;;  %v1708_v56 = vsub.f32 %v4156_v48, %v1356_v11  ;;  %v986_v25 = vmul.f32 %v3995_v30, %v4076_v5  ;;  %v4244_v57 = vadd.f32 %v2091_v4, %v2075_v14  ;;  %v5436_v15 = vld [vmem:[#allocation44_spill] sm:$0xff] }
 0x1d4   : > { %2841 = vpow2.f32 %v1393_v3  ;;  %v4238_v21 = vpop.xlane.xlu1 %1082  ;;  %v1585_v58 = vmul.f32 1.442695, %v1564_v35  ;;  %v4246_v16 = vadd.f32 %v2840_v42, %v1835_v22  ;;  %v1633_v48 = vmul.f32 1.442695, %v1612_v8  ;;  %v5403_v22 = vld [vmem:[#allocation26_spill] sm:$0xff]  ;;  %v5405_v35 = vld [vmem:[#allocation40_spill] sm:$0xff] }
 0x1d5   : > { %5399 = vst [vmem:[#allocation77_spill] sm:$0xff] %v4238_v21  ;;  %2843 = vpow2.f32 %v1441_v1  ;;  %v1096_v11 = vsel %vm476_vm0, %v1058_v47, 0.0  ;;  %v1024_v34 = vsel %vm476_vm0, %v986_v25, 0.0  ;;  %v1240_v60 = vsel %vm476_vm0, %v1202_v33, 0.0  ;;  %v5406_v8 = vld [vmem:[#allocation43_spill] sm:$0xff] }
 0x1d6   : > { %5400 = vst [vmem:[#allocation78_spill] sm:$0xff] %v4244_v57  ;;  %2845 = vpow2.f32 %v1489_v26  ;;  %v1681_v5 = vmul.f32 1.442695, %v1660_v38  ;;  %v1125_v42 = vmul.f32 %v4249_v27, %v3733_v7  ;;  %v838_v54 = vmul.f32 %v5403_v22, %v3754_v24 }
 0x1d7   : > { %5401 = vst [vmem:[#allocation79_spill] sm:$0xff] %v4246_v16  ;;  %2847 = vpow2.f32 %v1537_v63  ;;  %1097 = vadd.xlane.f32.xlu2 %v1096_v11  ;;  %1241 = vadd.xlane.f32.xlu0 %v1240_v60  ;;  %v772_v3 = vmul.f32 %v5406_v8, %v5405_v35  ;;  %v1729_v1 = vmul.f32 1.442695, %v1708_v56 }
 0x1d8   : > { %2849 = vpow2.f32 %v1585_v58  ;;  %1025 = vadd.xlane.f32.xlu1 %v1024_v34  ;;  %v4269_v58 = vperm.slane %v3727_v0, 7  ;;  %v868_v60 = vsel %vm476_vm0, %v838_v54, 0.0 }
 0x1d9   : > { %2851 = vpow2.f32 %v1633_v48  ;;  %v814_v56 = vsel %vm476_vm0, %v772_v3, 0.0 }
 0x1da   : > { %v2842_v4 = vpop.eup %2841  ;;  %v4258_v37 = vpop.xlane.xlu2 %884  ;;  %2853 = vpow2.f32 %v1681_v5  ;;  %5408 = vst [vmem:[#allocation82_spill] sm:$0xff] %v4269_v58 }
 0x1db   : > { %v2844_v12 = vpop.eup %2843  ;;  %5404 = vst [vmem:[#allocation81_spill] sm:$0xff] %v4258_v37  ;;  %v4260_v36 = vpop.xlane.xlu0 %938  ;;  %v1884_v38 = vmul.f32 %v2842_v4, %v3670_v10  ;;  %v1153_v10 = vsel %vm476_vm0, %v1125_v42, 0.0  ;;  %2855 = vpow2.f32 %v1729_v1  ;;  %v1197_v1 = vmul.f32 %v4269_v58, %v3733_v7 }
 0x1dc   : > { %v2846_v26 = vpop.eup %2845  ;;  %v1756_v14 = vadd.f32 %v2844_v12, %v2842_v4  ;;  %v4265_v63 = vpop.xlane.xlu1 %725  ;;  %v1900_v47 = vmul.f32 %v2844_v12, %v3682_v19  ;;  %v5409_v19 = vld [vmem:[#allocation34_spill] sm:$0xff] }
 0x1dd   : > { %5407 = vst [vmem:[#allocation40_spill] sm:$0xff] %v4265_v63  ;;  %v2848_v25 = vpop.eup %2847  ;;  %v1932_v11 = vmul.f32 %v2846_v26, %v3711_v45  ;;  %v4276_v12 = vperm.slane %v5409_v19, 5 }
 0x1de   : > { %v1772_v33 = vadd.f32 %v2846_v26, %v1756_v14  ;;  %v1916_v48 = vadd.f32 %v1900_v47, %v1884_v38  ;;  %v2850_v34 = vpop.eup %2849  ;;  %v1964_v0 = vmul.f32 %v2848_v25, %v3684_v20  ;;  %v5413_v47 = vld [vmem:[#allocation37_spill] sm:$0xff] }
 0x1df   : > { %815 = vadd.xlane.f32.xlu2 %v814_v56  ;;  %5410 = vst [vmem:[#allocation34_spill] sm:$0xff] %v4276_v12  ;;  %v2852_v14 = vpop.eup %2851  ;;  %869 = vadd.xlane.f32.xlu0 %v868_v60  ;;  %v1996_v3 = vmul.f32 %v2850_v34, %v3697_v29 }
 0x1e0   : > { %v1788_v4 = vadd.f32 %v2848_v25, %v1772_v33  ;;  %v1948_v5 = vadd.f32 %v1932_v11, %v1916_v48  ;;  %1154 = vadd.xlane.f32.xlu1 %v1153_v10  ;;  %v2854_v26 = vpop.eup %2853  ;;  %v910_v33 = vmul.f32 %v5413_v47, %v3754_v24  ;;  %v5415_v25 = vld [vmem:[#allocation35_spill] sm:$0xff]  ;;  %v2028_v29 = vmul.f32 %v2852_v14, %v3695_v28 }
 0x1e1   : > { %v1059_v11 = vmul.f32 %v4276_v12, %v5415_v25  ;;  %v4390_v47 = vperm.slane %v5436_v15, 3 }
 0x1e2   : > { %v1804_v45 = vadd.f32 %v2850_v34, %v1788_v4  ;;  %v1980_v38 = vadd.f32 %v1964_v0, %v1948_v5  ;;  %v4280_v42 = vpop.xlane.xlu2 %956  ;;  %v2856_v34 = vpop.eup %2855  ;;  %v2060_v4 = vmul.f32 %v2854_v26, %v3706_v39  ;;  %v1225_v5 = vsel %vm476_vm0, %v1197_v1, 0.0 }
 0x1e3   : > { %5411 = vst [vmem:[#allocation83_spill] sm:$0xff] %v4280_v42  ;;  %v4282_v54 = vpop.xlane.xlu0 %800  ;;  %v940_v7 = vsel %vm476_vm0, %v910_v33, 0.0  ;;  %v4297_v0 = vperm.slane %v5409_v19, 6 }
 0x1e4   : > { %5412 = vst [vmem:[#allocation84_spill] sm:$0xff] %v4282_v54  ;;  %v1820_v48 = vadd.f32 %v2852_v14, %v1804_v45  ;;  %v4288_v20 = vpop.xlane.xlu1 %743  ;;  %v2012_v56 = vadd.f32 %v1996_v3, %v1980_v38  ;;  %v1099_v45 = vsel %vm476_vm0, %v1059_v11, 0.0  ;;  %v2092_v38 = vmul.f32 %v2856_v34, %v3708_v43  ;;  %v5423_v43 = vld [vmem:[#allocation36_spill] sm:$0xff] }
 0x1e5   : > { %5414 = vst [vmem:[#allocation85_spill] sm:$0xff] %v4288_v20  ;;  %v844_v11 = vmul.f32 %v5423_v43, %v5405_v35  ;;  %v4362_v54 = vperm.slane %v5436_v15, 1  ;;  %v1060_v20 = vmul.f32 %v4276_v12, %v5405_v35  ;;  %v1132_v12 = vmul.f32 %v4297_v0, %v5405_v35 }
 0x1e6   : > { %v1836_v10 = vadd.f32 %v2854_v26, %v1820_v48  ;;  %v2044_v60 = vadd.f32 %v2028_v29, %v2012_v56  ;;  %5416 = vst [vmem:[#allocation35_spill] sm:$0xff] %v4297_v0  ;;  %v5421_v26 = vld [vmem:[#allocation28_spill] sm:$0xff]  ;;  %v1131_v48 = vmul.f32 %v4297_v0, %v5415_v25 }
 0x1e7   : > { %1226 = vadd.xlane.f32.xlu2 %v1225_v5  ;;  %1100 = vadd.xlane.f32.xlu0 %v1099_v45  ;;  %v982_v1 = vmul.f32 %v5421_v26, %v3754_v24  ;;  %v886_v29 = vsel %vm476_vm0, %v844_v11, 0.0  ;;  %5437 = vst [vmem:[#allocation44_spill] sm:$0xff] %v4362_v54  ;;  %v1102_v43 = vsel %vm476_vm0, %v1060_v20, 0.0  ;;  %v1198_v20 = vmul.f32 %v4269_v58, %v3754_v24 }
 0x1e8   : > { %v2076_v16 = vadd.f32 %v2060_v4, %v2044_v60  ;;  %v4301_v3 = vadd.f32 %v2856_v34, %v1836_v10  ;;  %941 = vadd.xlane.f32.xlu1 %v940_v7  ;;  %v4321_v34 = vperm.slane %v5409_v19, 7  ;;  %v5427_v4 = vld [vmem:[#allocation33_spill] sm:$0xff]  ;;  %5440 = vst [vmem:[#allocation96_spill] sm:$0xff] %v4390_v47 }
 0x1e9   : > { %v1012_v56 = vsel %vm476_vm0, %v982_v1, 0.0  ;;  %v1054_v5 = vmul.f32 %v5427_v4, %v3754_v24 }
 0x1ea   : > { %5417 = vst [vmem:[#allocation86_spill] sm:$0xff] %v4301_v3  ;;  %v4303_v28 = vadd.f32 %v2092_v38, %v2076_v16  ;;  %v4305_v39 = vpop.xlane.xlu2 %1028  ;;  %v1171_v16 = vsel %vm476_vm0, %v1131_v48, 0.0  ;;  %v1203_v45 = vmul.f32 %v4321_v34, %v5415_v25  ;;  %v5429_v38 = vld [vmem:[#allocation38_spill] sm:$0xff]  ;;  %v1126_v25 = vmul.f32 %v4249_v27, %v3754_v24 }
 0x1eb   : > { %5419 = vst [vmem:[#allocation88_spill] sm:$0xff] %v4305_v39  ;;  %v4307_v14 = vpop.xlane.xlu0 %740  ;;  %v916_v1 = vmul.f32 %v5429_v38, %v5405_v35  ;;  %v1084_v19 = vsel %vm476_vm0, %v1054_v5, 0.0  ;;  %v5433_v5 = vld [vmem:[#allocation30_spill] sm:$0xff] }
 0x1ec   : > { %5418 = vst [vmem:[#allocation87_spill] sm:$0xff] %v4303_v28  ;;  %v4311_v33 = vpop.xlane.xlu1 %812  ;;  %v1243_v48 = vsel %vm476_vm0, %v1203_v45, 0.0  ;;  %v5434_v45 = vld [vmem:[#allocation42_spill] sm:$0xff] }
 0x1ed   : > { %5420 = vst [vmem:[#allocation89_spill] sm:$0xff] %v4307_v14  ;;  %v958_v11 = vsel %vm476_vm0, %v916_v1, 0.0  ;;  %v988_v1 = vmul.f32 %v5434_v45, %v5405_v35 }
 0x1ee   : > { %5422 = vst [vmem:[#allocation90_spill] sm:$0xff] %v4311_v33 }
 0x1ef   : > { %1013 = vadd.xlane.f32.xlu2 %v1012_v56  ;;  %5424 = vst [vmem:[#allocation91_spill] sm:$0xff] %v4321_v34  ;;  %887 = vadd.xlane.f32.xlu0 %v886_v29  ;;  %v5430_v56 = vld [vmem:[#allocation29_spill] sm:$0xff] }
 0x1f0   : > { %1172 = vadd.xlane.f32.xlu1 %v1171_v16  ;;  %v4339_v16 = vperm.slane %v5430_v56, 2  ;;  %v4393_v0 = vperm.slane %v5430_v56, 4 }
 0x1f2   : > { %v4323_v10 = vpop.xlane.xlu2 %746  ;;  %5431 = vst [vmem:[#allocation29_spill] sm:$0xff] %v4339_v16 }
 0x1f3   : > { %5425 = vst [vmem:[#allocation92_spill] sm:$0xff] %v4323_v10  ;;  %v4325_v60 = vpop.xlane.xlu0 %731  ;;  %v1030_v10 = vsel %vm476_vm0, %v988_v1, 0.0 }
 0x1f4   : > { %5426 = vst [vmem:[#allocation93_spill] sm:$0xff] %v4325_v60  ;;  %v4329_v7 = vpop.xlane.xlu1 %803 }
 0x1f5   : > { %5428 = vst [vmem:[#allocation94_spill] sm:$0xff] %v4329_v7 }
 0x1f6   : > { %5441 = vst [vmem:[#allocation97_spill] sm:$0xff] %v4393_v0 }
 0x1f7   : > { %1085 = vadd.xlane.f32.xlu2 %v1084_v19  ;;  %959 = vadd.xlane.f32.xlu0 %v958_v11  ;;  %v839_v19 = vmul.f32 %v4339_v16, %v5433_v5  ;;  %v4357_v11 = vperm.slane %v5430_v56, 3 }
 0x1f8   : > { %1244 = vadd.xlane.f32.xlu1 %v1243_v48  ;;  %v1156_v48 = vsel %vm476_vm0, %v1126_v25, 0.0 }
 0x1f9   : > { %5435 = vst [vmem:[#allocation30_spill] sm:$0xff] %v4357_v11  ;;  %v911_v7 = vmul.f32 %v4357_v11, %v5433_v5 }
 0x1fa   : > { %v4341_v29 = vpop.xlane.xlu2 %806 }
 0x1fb   : > { %v4343_v3 = vpop.xlane.xlu0 %749  ;;  %v943_v1 = vsel %vm476_vm0, %v911_v7, 0.0 }
 0x1fc   : > { %5432 = vst [vmem:[#allocation95_spill] sm:$0xff] %v4343_v3  ;;  %v4347_v60 = vpop.xlane.xlu1 %734  ;;  %v871_v3 = vsel %vm476_vm0, %v839_v19, 0.0 }
 0x1ff   : > { %1157 = vadd.xlane.f32.xlu2 %v1156_v48  ;;  %1031 = vadd.xlane.f32.xlu0 %v1030_v10  ;;  %v5438_v48 = vld [vmem:[#allocation45_spill] sm:$0xff]  ;;  %v4376_v10 = vperm.slane %v5436_v15, 2 }
 0x200   : > { %872 = vadd.xlane.f32.xlu1 %v871_v3  ;;  %v773_v19 = vmul.f32 %v4362_v54, %v5438_v48 }
 0x201   : > { %5439 = vst [vmem:[#allocation45_spill] sm:$0xff] %v4376_v10  ;;  %v845_v7 = vmul.f32 %v4376_v10, %v5438_v48 }
 0x202   : > { %v4364_v38 = vpop.xlane.xlu2 %992  ;;  %v817_v3 = vsel %vm476_vm0, %v773_v19, 0.0 }
 0x203   : > { %v705_v45 = vpop.xlane.xlu0 %704 }
 0x204   : > { %v777_v25 = vpop.xlane.xlu1 %776 }
 0x205   : > { %v1255_v8 = vmax.f32 %v705_v45, %v777_v25 }
 0x207   : > { %944 = vadd.xlane.f32.xlu2 %v943_v1  ;;  %818 = vadd.xlane.f32.xlu0 %v817_v3  ;;  %v1174_v1 = vsel %vm476_vm0, %v1132_v12, 0.0  ;;  %v1228_v3 = vsel %vm476_vm0, %v1198_v20, 0.0  ;;  %v1204_v12 = vmul.f32 %v4321_v34, %v5405_v35  ;;  %v917_v20 = vmul.f32 %v4390_v47, %v5438_v48 }
 0x208   : > { %1103 = vadd.xlane.f32.xlu1 %v1102_v43  ;;  %v889_v43 = vsel %vm476_vm0, %v845_v7, 0.0 }
 0x209   : > { %v961_v22 = vsel %vm476_vm0, %v917_v20, 0.0 }
 0x20a   : > { %v4378_v63 = vpop.xlane.xlu2 %1136 }
 0x20b   : > { %v849_v27 = vpop.xlane.xlu0 %848 }
 0x20c   : > { %v921_v4 = vpop.xlane.xlu1 %920  ;;  %v1271_v26 = vmax.f32 %v1255_v8, %v849_v27 }
 0x20e   : > { %v1287_v19 = vmax.f32 %v1271_v26, %v921_v4 }
 0x20f   : > { %1175 = vadd.xlane.f32.xlu2 %v1174_v1  ;;  %1229 = vadd.xlane.f32.xlu0 %v1228_v3  ;;  %v983_v1 = vmul.f32 %v4393_v0, %v5433_v5 }
 0x210   : > { %890 = vadd.xlane.f32.xlu1 %v889_v43  ;;  %v1303_v8 = vmax.f32 %v1287_v19, %v4364_v38  ;;  %v1246_v43 = vsel %vm476_vm0, %v1204_v12, 0.0  ;;  %v4407_v19 = vperm.slane %v5430_v56, 5 }
 0x211   : > { %v1015_v35 = vsel %vm476_vm0, %v983_v1, 0.0 }
 0x212   : > { %v4396_v28 = vpop.xlane.xlu2 %878  ;;  %5442 = vst [vmem:[#allocation98_spill] sm:$0xff] %v4407_v19 }
 0x213   : > { %v1065_v24 = vpop.xlane.xlu0 %1064 }
 0x214   : > { %v1209_v26 = vpop.xlane.xlu1 %1208  ;;  %v1319_v7 = vmax.f32 %v1303_v8, %v1065_v24  ;;  %v4412_v8 = vperm.slane %v5436_v15, 4 }
 0x216   : > { %v1335_v58 = vmax.f32 %v1319_v7, %v4378_v63  ;;  %5443 = vst [vmem:[#allocation99_spill] sm:$0xff] %v4412_v8  ;;  %v5444_v7 = vld [vmem:[#allocation47_spill] sm:$0xff]  ;;  %v989_v1 = vmul.f32 %v4412_v8, %v5438_v48 }
 0x217   : > { %1247 = vadd.xlane.f32.xlu2 %v1246_v43  ;;  %1016 = vadd.xlane.f32.xlu0 %v1015_v35  ;;  %v840_v12 = vmul.f32 %v4339_v16, %v5444_v7 }
 0x218   : > { %v1351_v3 = vmax.f32 %v1335_v58, %v1209_v26  ;;  %962 = vadd.xlane.f32.xlu1 %v961_v22  ;;  %v1055_v22 = vmul.f32 %v4407_v19, %v5433_v5  ;;  %v1033_v6 = vsel %vm476_vm0, %v989_v1, 0.0 }
 0x21a   : > { %v1367_v34 = vsub.f32 %v705_v45, %v1351_v3  ;;  %v1415_v57 = vsub.f32 %v777_v25, %v1351_v3  ;;  %v1463_v39 = vsub.f32 %v849_v27, %v1351_v3  ;;  %v1511_v42 = vsub.f32 %v921_v4, %v1351_v3  ;;  %v4416_v21 = vpop.xlane.xlu2 %1166 }
 0x21b   : > { %v4418_v58 = vpop.xlane.xlu0 %1022  ;;  %v5445_v27 = vmax.f32 %v4347_v60, %v4341_v29  ;;  %v1559_v25 = vsub.f32 %v4364_v38, %v1351_v3  ;;  %v1607_v16 = vsub.f32 %v1065_v24, %v1351_v3  ;;  %v1087_v59 = vsel %vm476_vm0, %v1055_v22, 0.0 }
 0x21c   : > { %v1383_v43 = vmul.f32 1.442695, %v1367_v34  ;;  %v1431_v20 = vmul.f32 1.442695, %v1415_v57  ;;  %v4420_v37 = vpop.xlane.xlu1 %950  ;;  %v1479_v4 = vmul.f32 1.442695, %v1463_v39 }
 0x21d   : > { %v1281_v45 = vmax.f32 %v5445_v27, %v4396_v28  ;;  %v874_v34 = vsel %vm476_vm0, %v840_v12, 0.0  ;;  %v4433_v57 = vperm.slane %v5436_v15, 5  ;;  %v1527_v35 = vmul.f32 1.442695, %v1511_v42 }
 0x21e   : > { %2857 = vpow2.f32 %v1383_v43  ;;  %v4439_v39 = vperm.slane %v5430_v56, 6  ;;  %v1575_v38 = vmul.f32 1.442695, %v1559_v25  ;;  %v1655_v12 = vsub.f32 %v4378_v63, %v1351_v3 }
 0x21f   : > { %2859 = vpow2.f32 %v1431_v20  ;;  %v1297_v52 = vmax.f32 %v1281_v45, %v4420_v37  ;;  %875 = vadd.xlane.f32.xlu2 %v874_v34  ;;  %1088 = vadd.xlane.f32.xlu0 %v1087_v59  ;;  %v1703_v43 = vsub.f32 %v1209_v26, %v1351_v3  ;;  %v1623_v42 = vmul.f32 1.442695, %v1607_v16 }
 0x220   : > { %5446 = vst [vmem:[#allocation47_spill] sm:$0xff] %v4439_v39  ;;  %2861 = vpow2.f32 %v1479_v4  ;;  %1034 = vadd.xlane.f32.xlu1 %v1033_v6  ;;  %v1061_v1 = vmul.f32 %v4433_v57, %v5438_v48  ;;  %v5447_v6 = vld [vmem:[#allocation48_spill] sm:$0xff]  ;;  %v1127_v63 = vmul.f32 %v4439_v39, %v5433_v5  ;;  %v1671_v26 = vmul.f32 1.442695, %v1655_v12 }
 0x221   : > { %2863 = vpow2.f32 %v1527_v35  ;;  %v1313_v24 = vmax.f32 %v1297_v52, %v4418_v58  ;;  %v774_v59 = vmul.f32 %v4362_v54, %v5447_v6  ;;  %v4463_v4 = vperm.slane %v5430_v56, 7 }
 0x222   : > { %v4443_v20 = vpop.xlane.xlu2 %1238  ;;  %2865 = vpow2.f32 %v1575_v38  ;;  %v1719_v25 = vmul.f32 1.442695, %v1703_v43  ;;  %v1105_v54 = vsel %vm476_vm0, %v1061_v1, 0.0  ;;  %v1159_v12 = vsel %vm476_vm0, %v1127_v63, 0.0 }
 0x223   : > { %v4445_v27 = vpop.xlane.xlu0 %707  ;;  %2867 = vpow2.f32 %v1623_v42  ;;  %v820_v38 = vsel %vm476_vm0, %v774_v59, 0.0  ;;  %v912_v43 = vmul.f32 %v4357_v11, %v5444_v7  ;;  %v1199_v1 = vmul.f32 %v4463_v4, %v5433_v5 }
 0x224   : > { %v4449_v22 = vpop.eup %2857  ;;  %v4451_v45 = vpop.xlane.xlu1 %1094  ;;  %2869 = vpow2.f32 %v1671_v26 }
 0x225   : > { %v4457_v16 = vpop.eup %2859  ;;  %v1329_v52 = vmax.f32 %v1313_v24, %v4451_v45  ;;  %2871 = vpow2.f32 %v1719_v25 }
 0x226   : > { %v1751_v3 = vadd.f32 %v4457_v16, %v4449_v22  ;;  %v4465_v34 = vpop.eup %2861 }
 0x227   : > { %v1345_v35 = vmax.f32 %v1329_v52, %v4416_v21  ;;  %1106 = vadd.xlane.f32.xlu2 %v1105_v54  ;;  %v4472_v24 = vpop.eup %2863  ;;  %1160 = vadd.xlane.f32.xlu0 %v1159_v12  ;;  %v846_v54 = vmul.f32 %v4376_v10, %v5447_v6 }
 0x228   : > { %v1767_v9 = vadd.f32 %v4465_v34, %v1751_v3  ;;  %821 = vadd.xlane.f32.xlu1 %v820_v38  ;;  %v4484_v59 = vpop.eup %2865 }
 0x229   : > { %v4475_v56 = vmax.f32 %v1345_v35, %v4443_v20 }
 0x22a   : > { %v1783_v42 = vadd.f32 %v4472_v24, %v1767_v9  ;;  %v4494_v3 = vpop.xlane.xlu2 %737 }
 0x22b   : > { %v1377_v63 = vsub.f32 %v4347_v60, %v4475_v56  ;;  %v1425_v52 = vsub.f32 %v4341_v29, %v4475_v56  ;;  %v1473_v26 = vsub.f32 %v4396_v28, %v4475_v56  ;;  %v1521_v9 = vsub.f32 %v4420_v37, %v4475_v56  ;;  %v4496_v35 = vpop.xlane.xlu0 %923  ;;  %v4503_v60 = vpop.eup %2867 }
 0x22c   : > { %v1799_v5 = vadd.f32 %v4484_v59, %v1783_v42  ;;  %v1569_v25 = vsub.f32 %v4418_v58, %v4475_v56  ;;  %v4501_v38 = vpop.xlane.xlu1 %851  ;;  %v984_v28 = vmul.f32 %v4393_v0, %v5444_v7  ;;  %v1617_v14 = vsub.f32 %v4451_v45, %v4475_v56  ;;  %v4511_v33 = vpop.eup %2869 }
 0x22d   : > { %v1403_v29 = vmul.f32 1.442695, %v1377_v63  ;;  %v1451_v12 = vmul.f32 1.442695, %v1425_v52  ;;  %v1499_v10 = vmul.f32 1.442695, %v1473_v26  ;;  %v4518_v26 = vpop.eup %2871  ;;  %v1665_v45 = vsub.f32 %v4416_v21, %v4475_v56 }
 0x22e   : > { %v1815_v37 = vadd.f32 %v4503_v60, %v1799_v5  ;;  %v1547_v11 = vmul.f32 1.442695, %v1521_v9  ;;  %v946_v42 = vsel %vm476_vm0, %v912_v43, 0.0  ;;  %5448 = vst [vmem:[#allocation48_spill] sm:$0xff] %v4511_v33  ;;  %v892_v58 = vsel %vm476_vm0, %v846_v54, 0.0 }
 0x22f   : > { %2873 = vpow2.f32 %v1403_v29  ;;  %v1231_v63 = vsel %vm476_vm0, %v1199_v1, 0.0  ;;  %v4516_v52 = vperm.slane %v5436_v15, 6  ;;  %5450 = vst [vmem:[#allocation101_spill] sm:$0xff] %v4518_v26  ;;  %v1595_v5 = vmul.f32 1.442695, %v1569_v25  ;;  %893 = vadd.xlane.f32.xlu2 %v892_v58  ;;  %947 = vadd.xlane.f32.xlu0 %v946_v42  ;;  %v5451_v1 = vld [vmem:[#allocation20_spill] sm:$0xff] }
 0x230   : > { %2875 = vpow2.f32 %v1451_v12  ;;  %v1831_v43 = vadd.f32 %v4511_v33, %v1815_v37  ;;  %1232 = vadd.xlane.f32.xlu1 %v1231_v63  ;;  %v918_v54 = vmul.f32 %v4390_v47, %v5447_v6  ;;  %v1881_v9 = vmul.f32 %v4053_v49, %v5451_v1  ;;  %v5452_v29 = vld [vmem:[#allocation19_spill] sm:$0xff] }
 0x231   : > { %5449 = vst [vmem:[#allocation100_spill] sm:$0xff] %v4516_v52  ;;  %2877 = vpow2.f32 %v1499_v10  ;;  %v1897_v0 = vmul.f32 %v4057_v18, %v5452_v29  ;;  %v1643_v25 = vmul.f32 1.442695, %v1617_v14  ;;  %v1713_v12 = vsub.f32 %v4443_v20, %v4475_v56 }
 0x232   : > { %2879 = vpow2.f32 %v1547_v11  ;;  %v4532_v21 = vadd.f32 %v4518_v26, %v1831_v43  ;;  %v4534_v10 = vpop.xlane.xlu2 %779  ;;  %v1133_v18 = vmul.f32 %v4516_v52, %v5438_v48  ;;  %v1691_v14 = vmul.f32 1.442695, %v1665_v45  ;;  %v5456_v45 = vld [vmem:[#allocation52_spill] sm:$0xff] }
 0x233   : > { %v4536_v37 = vpop.xlane.xlu0 %1067  ;;  %2881 = vpow2.f32 %v1595_v5  ;;  %v1256_v42 = vmax.f32 %v4445_v27, %v4534_v10  ;;  %v964_v20 = vsel %vm476_vm0, %v918_v54, 0.0  ;;  %v1018_v56 = vsel %vm476_vm0, %v984_v28, 0.0 }
 0x234   : > { %5453 = vst [vmem:[#allocation20_spill] sm:$0xff] %v4532_v21  ;;  %v4540_v49 = vpop.xlane.xlu1 %1211  ;;  %v4547_v58 = vperm.slane %v5436_v15, 7  ;;  %2883 = vpow2.f32 %v1643_v25  ;;  %v1913_v5 = vadd.f32 %v1897_v0, %v1881_v9  ;;  %v1739_v43 = vmul.f32 1.442695, %v1713_v12  ;;  %v5454_v21 = vld [vmem:[#allocation50_spill] sm:$0xff]  ;;  %v5457_v0 = vld [vmem:[#allocation24_spill] sm:$0xff] }
 0x235   : > { %v2874_v11 = vpop.eup %2873  ;;  %v1879_v33 = vmul.f32 %v4449_v22, %v5455_v17  ;;  %v1895_v40 = vmul.f32 %v4457_v16, %v5456_v45  ;;  %v1272_v15 = vmax.f32 %v1256_v42, %v4501_v38  ;;  %v1177_v25 = vsel %vm476_vm0, %v1133_v18, 0.0  ;;  %v5458_v9 = vld [vmem:[#allocation61_spill] sm:$0xff] }
 0x236   : > { %v2876_v63 = vpop.eup %2875  ;;  %v1889_v47 = vmul.f32 %v2874_v11, %v5454_v21  ;;  %v1929_v12 = vmul.f32 %v5458_v9, %v5457_v0  ;;  %2885 = vpow2.f32 %v1691_v14  ;;  %v990_v16 = vmul.f32 %v4412_v8, %v5447_v6 }
 0x237   : > { %v2878_v26 = vpop.eup %2877  ;;  %v1761_v13 = vadd.f32 %v2876_v63, %v2874_v11  ;;  %v1905_v54 = vmul.f32 %v2876_v63, %v3892_v61  ;;  %965 = vadd.xlane.f32.xlu2 %v964_v20  ;;  %1178 = vadd.xlane.f32.xlu0 %v1177_v25  ;;  %v1056_v42 = vmul.f32 %v4407_v19, %v5444_v7  ;;  %2887 = vpow2.f32 %v1739_v43  ;;  %v5460_v43 = vld [vmem:[#allocation62_spill] sm:$0xff] }
 0x238   : > { %v2880_v28 = vpop.eup %2879  ;;  %1019 = vadd.xlane.f32.xlu1 %v1018_v56  ;;  %v1937_v22 = vmul.f32 %v2878_v26, %v3966_v2  ;;  %v1945_v20 = vadd.f32 %v1929_v12, %v1913_v5  ;;  %v1205_v25 = vmul.f32 %v4547_v58, %v5438_v48  ;;  %v1128_v5 = vmul.f32 %v4439_v39, %v5444_v7  ;;  %v5461_v19 = vld [vmem:[#allocation54_spill] sm:$0xff] }
 0x239   : > { %v1777_v21 = vadd.f32 %v2878_v26, %v1761_v13  ;;  %v1921_v11 = vadd.f32 %v1905_v54, %v1889_v47  ;;  %v2882_v17 = vpop.eup %2881  ;;  %v1911_v13 = vadd.f32 %v1895_v40, %v1879_v33  ;;  %v1969_v47 = vmul.f32 %v2880_v28, %v4005_v41 }
 0x23a   : > { %v4564_v63 = vpop.xlane.xlu2 %995  ;;  %v2884_v56 = vpop.eup %2883  ;;  %v1288_v26 = vmax.f32 %v1272_v15, %v4496_v35  ;;  %v1927_v40 = vmul.f32 %v4465_v34, %v5461_v19  ;;  %v1200_v48 = vmul.f32 %v4463_v4, %v5444_v7  ;;  %v1090_v34 = vsel %vm476_vm0, %v1056_v42, 0.0 }
 0x23b   : > { %v1793_v18 = vadd.f32 %v2880_v28, %v1777_v21  ;;  %v4566_v9 = vpop.xlane.xlu0 %809  ;;  %v1953_v14 = vadd.f32 %v1937_v22, %v1921_v11  ;;  %v5459_v21 = vld [vmem:[#allocation22_spill] sm:$0xff]  ;;  %v2001_v28 = vmul.f32 %v2882_v17, %v3995_v30  ;;  %v1036_v22 = vsel %vm476_vm0, %v990_v16, 0.0  ;;  %v5464_v16 = vld [vmem:[#allocation63_spill] sm:$0xff] }
 0x23c   : > { %v4570_v54 = vpop.xlane.xlu1 %881  ;;  %v1961_v12 = vmul.f32 %v5460_v43, %v5459_v21  ;;  %v2886_v11 = vpop.eup %2885  ;;  %v1304_v15 = vmax.f32 %v1288_v26, %v4564_v63  ;;  %v2033_v2 = vmul.f32 %v2884_v56, %v4047_v62  ;;  %v1943_v43 = vadd.f32 %v1927_v40, %v1911_v13  ;;  %v5463_v26 = vld [vmem:[#allocation18_spill] sm:$0xff] }
 0x23d   : > { %v1809_v8 = vadd.f32 %v2882_v17, %v1793_v18  ;;  %v1985_v33 = vadd.f32 %v1969_v47, %v1953_v14  ;;  %v2888_v61 = vpop.eup %2887  ;;  %v1249_v17 = vsel %vm476_vm0, %v1205_v25, 0.0  ;;  %v5462_v14 = vld [vmem:[#allocation55_spill] sm:$0xff]  ;;  %v1993_v30 = vmul.f32 %v5464_v16, %v5463_v26 }
 0x23e   : > { %v1977_v41 = vadd.f32 %v1961_v12, %v1945_v20  ;;  %v1959_v47 = vmul.f32 %v4472_v24, %v5462_v14  ;;  %v1320_v13 = vmax.f32 %v1304_v15, %v4536_v37  ;;  %v1162_v42 = vsel %vm476_vm0, %v1128_v5, 0.0  ;;  %v5466_v15 = vld [vmem:[#allocation23_spill] sm:$0xff] }
 0x23f   : > { %v1825_v39 = vadd.f32 %v2884_v56, %v1809_v8  ;;  %v2017_v18 = vadd.f32 %v2001_v28, %v1985_v33  ;;  %1037 = vadd.xlane.f32.xlu2 %v1036_v22  ;;  %1250 = vadd.xlane.f32.xlu0 %v1249_v17  ;;  %v2065_v8 = vmul.f32 %v2886_v11, %v3992_v32  ;;  %v1234_v5 = vsel %vm476_vm0, %v1200_v48, 0.0 }
 0x240   : > { %1091 = vadd.xlane.f32.xlu1 %v1090_v34  ;;  %v1062_v56 = vmul.f32 %v4433_v57, %v5447_v6  ;;  %v2009_v25 = vadd.f32 %v1993_v30, %v1977_v41  ;;  %v1975_v24 = vadd.f32 %v1959_v47, %v1943_v43  ;;  %v2097_v33 = vmul.f32 %v2888_v61, %v4033_v53  ;;  %v5467_v47 = vld [vmem:[#allocation21_spill] sm:$0xff] }
 0x241   : > { %v2049_v7 = vadd.f32 %v2033_v2, %v2017_v18  ;;  %v1841_v20 = vadd.f32 %v2886_v11, %v1825_v39  ;;  %v1134_v11 = vmul.f32 %v4516_v52, %v5447_v6  ;;  %v1206_v30 = vmul.f32 %v4547_v58, %v5447_v6 }
 0x242   : > { %v4597_v12 = vpop.xlane.xlu2 %1139  ;;  %v1266_v41 = vmax.f32 %v4494_v3, %v4566_v9  ;;  %v2025_v43 = vmul.f32 %v4114_v23, %v5466_v15  ;;  %v1261_v34 = vmax.f32 %v4233_v44, %v4191_v55  ;;  %v1108_v48 = vsel %vm476_vm0, %v1062_v56, 0.0  ;;  %v5469_v56 = vld [vmem:[#allocation57_spill] sm:$0xff] }
 0x243   : > { %v2081_v40 = vadd.f32 %v2065_v8, %v2049_v7  ;;  %v4600_v28 = vadd.f32 %v2888_v61, %v1841_v20  ;;  %v1336_v2 = vmax.f32 %v1320_v13, %v4597_v12  ;;  %v4605_v39 = vpop.xlane.xlu0 %1169  ;;  %v1991_v61 = vmul.f32 %v4484_v59, %v3915_v46  ;;  %v5468_v8 = vld [vmem:[#allocation64_spill] sm:$0xff] }
 0x244   : > { %v4603_v22 = vpop.xlane.xlu1 %953  ;;  %v2057_v6 = vmul.f32 %v4124_v31, %v5467_v47  ;;  %v2041_v7 = vadd.f32 %v2025_v43, %v2009_v25  ;;  %v1882_v59 = vmul.f32 %v4096_v50, %v5451_v1  ;;  %v1898_v23 = vmul.f32 %v5468_v8, %v5452_v29 }
 0x245   : > { %5465 = vst [vmem:[#allocation19_spill] sm:$0xff] %v4600_v28  ;;  %v4618_v18 = vadd.f32 %v2097_v33, %v2081_v40  ;;  %v1352_v17 = vmax.f32 %v1336_v2, %v4540_v49  ;;  %v2007_v16 = vadd.f32 %v1991_v61, %v1975_v24  ;;  %v2023_v31 = vmul.f32 %v4503_v60, %v5469_v56 }
 0x246   : > { %v1282_v50 = vmax.f32 %v1266_v41, %v4570_v54  ;;  %v1277_v1 = vmax.f32 %v1261_v34, %v4181_v51  ;;  %v1914_v43 = vadd.f32 %v1898_v23, %v1882_v59  ;;  %v5471_v34 = vld [vmem:[#allocation48_spill] sm:$0xff]  ;;  %v2073_v59 = vadd.f32 %v2057_v6, %v2041_v7  ;;  %v5472_v23 = vld [vmem:[#allocation65_spill] sm:$0xff] }
 0x247   : > { %v1368_v20 = vsub.f32 %v4445_v27, %v1352_v17  ;;  %v1416_v13 = vsub.f32 %v4534_v10, %v1352_v17  ;;  %v1464_v40 = vsub.f32 %v4501_v38, %v1352_v17  ;;  %v1512_v33 = vsub.f32 %v4496_v35, %v1352_v17  ;;  %1109 = vadd.xlane.f32.xlu2 %v1108_v48  ;;  %v5477_v7 = vld [vmem:[#allocation101_spill] sm:$0xff] }
 0x248   : > { %v1560_v25 = vsub.f32 %v4564_v63, %v1352_v17  ;;  %v1608_v24 = vsub.f32 %v4536_v37, %v1352_v17  ;;  %1163 = vadd.xlane.f32.xlu1 %v1162_v42  ;;  %v1298_v38 = vmax.f32 %v1282_v50, %v4603_v22  ;;  %v2039_v61 = vadd.f32 %v2023_v31, %v2007_v16  ;;  %v5470_v42 = vld [vmem:[#allocation53_spill] sm:$0xff]  ;;  %v5473_v50 = vld [vmem:[#allocation75_spill] sm:$0xff] }
 0x249   : > { %v1385_v27 = vmul.f32 1.442695, %v1368_v20  ;;  %v1433_v29 = vmul.f32 1.442695, %v1416_v13  ;;  %v1481_v10 = vmul.f32 1.442695, %v1464_v40  ;;  %v1293_v60 = vmax.f32 %v1277_v1, %v4260_v36 }
 0x24a   : > { %v1529_v2 = vmul.f32 1.442695, %v1512_v33  ;;  %v4641_v35 = vpop.xlane.xlu2 %1097  ;;  %v1577_v63 = vmul.f32 1.442695, %v1560_v25  ;;  %v2055_v48 = vmul.f32 %v5471_v34, %v5470_v42  ;;  %v1625_v8 = vmul.f32 1.442695, %v1608_v24 }
 0x24b   : > { %2889 = vpow2.f32 %v1385_v27  ;;  %v4646_v41 = vpop.xlane.xlu0 %1241  ;;  %v1656_v20 = vsub.f32 %v4597_v12, %v1352_v17  ;;  %v1180_v16 = vsel %vm476_vm0, %v1134_v11, 0.0  ;;  %v1930_v40 = vmul.f32 %v5472_v23, %v5457_v0  ;;  %v5474_v24 = vld [vmem:[#allocation90_spill] sm:$0xff]  ;;  %v5475_v27 = vld [vmem:[#allocation89_spill] sm:$0xff] }
 0x24c   : > { %v4644_v37 = vpop.xlane.xlu1 %1025  ;;  %2891 = vpow2.f32 %v1433_v29  ;;  %v2071_v31 = vadd.f32 %v2055_v48, %v2039_v61  ;;  %v1704_v25 = vsub.f32 %v4540_v49, %v1352_v17  ;;  %v1309_v1 = vmax.f32 %v1293_v60, %v5473_v50  ;;  %v5476_v0 = vld [vmem:[#allocation58_spill] sm:$0xff]  ;;  %v5478_v49 = vld [vmem:[#allocation25_spill] sm:$0xff]  ;;  %v5480_v60 = vld [vmem:[#allocation67_spill] sm:$0xff] }
 0x24d   : > { %v1314_v13 = vmax.f32 %v1298_v38, %v4644_v37  ;;  %2893 = vpow2.f32 %v1481_v10  ;;  %v1267_v12 = vmax.f32 %v5475_v27, %v5474_v24  ;;  %v1946_v29 = vadd.f32 %v1930_v40, %v1914_v43  ;;  %v5479_v17 = vld [vmem:[#allocation66_spill] sm:$0xff] }
 0x24e   : > { %2895 = vpow2.f32 %v1529_v2  ;;  %v1673_v11 = vmul.f32 1.442695, %v1656_v20  ;;  %v2087_v10 = vmul.f32 %v5477_v7, %v5476_v0  ;;  %v1252_v38 = vsel %vm476_vm0, %v1206_v30, 0.0  ;;  %v5481_v20 = vld [vmem:[#allocation51_spill] sm:$0xff] }
 0x24f   : > { %v1330_v33 = vmax.f32 %v1314_v13, %v4641_v35  ;;  %2897 = vpow2.f32 %v1577_v63  ;;  %1181 = vadd.xlane.f32.xlu2 %v1180_v16  ;;  %v2089_v61 = vmul.f32 %v5479_v17, %v5478_v49  ;;  %v1962_v34 = vmul.f32 %v5480_v60, %v5459_v21  ;;  %v5482_v21 = vld [vmem:[#allocation68_spill] sm:$0xff]  ;;  %v5483_v60 = vld [vmem:[#allocation81_spill] sm:$0xff] }
 0x250   : > { %2899 = vpow2.f32 %v1625_v8  ;;  %1235 = vadd.xlane.f32.xlu1 %v1234_v5  ;;  %v2103_v8 = vadd.f32 %v2087_v10, %v2071_v31  ;;  %v1721_v5 = vmul.f32 1.442695, %v1704_v25  ;;  %v1994_v17 = vmul.f32 %v5482_v21, %v5463_v26  ;;  %v5484_v31 = vld [vmem:[#allocation77_spill] sm:$0xff] }
 0x251   : > { %v1346_v6 = vmax.f32 %v1330_v33, %v4605_v39  ;;  %v2890_v2 = vpop.eup %2889  ;;  %v2105_v33 = vadd.f32 %v2089_v61, %v2073_v59  ;;  %v4682_v28 = vmax.f32 %v1267_v12, %v5483_v60  ;;  %2901 = vpow2.f32 %v1673_v11 }
 0x252   : > { %v2892_v63 = vpop.eup %2891  ;;  %v4671_v48 = vpop.xlane.xlu2 %815  ;;  %v1880_v13 = vmul.f32 %v2890_v2, %v5481_v20  ;;  %v1325_v25 = vmax.f32 %v1309_v1, %v5484_v31  ;;  %v1978_v10 = vadd.f32 %v1962_v34, %v1946_v29  ;;  %2903 = vpow2.f32 %v1721_v5 }
 0x253   : > { %v4669_v43 = vmax.f32 %v1346_v6, %v4646_v41  ;;  %v2894_v16 = vpop.eup %2893  ;;  %v1752_v23 = vadd.f32 %v2892_v63, %v2890_v2  ;;  %v4676_v30 = vpop.xlane.xlu0 %869  ;;  %v1896_v7 = vmul.f32 %v2892_v63, %v5456_v45  ;;  %2139 = vrot.lane.b32.xlu0 %v2103_v8, %s3332_s29 }
 0x254   : > { %v4674_v40 = vpop.xlane.xlu1 %1154  ;;  %v2896_v6 = vpop.eup %2895  ;;  %v1928_v59 = vmul.f32 %v2894_v16, %v5461_v19 }
 0x255   : > { %v2898_v2 = vpop.eup %2897  ;;  %v1768_v20 = vadd.f32 %v2894_v16, %v1752_v23  ;;  %v1912_v52 = vadd.f32 %v1896_v7, %v1880_v13  ;;  %v1378_v45 = vsub.f32 %v4494_v3, %v4669_v43  ;;  %v1714_v12 = vsub.f32 %v4646_v41, %v4669_v43 }
 0x256   : > { %v2900_v26 = vpop.eup %2899  ;;  %v1426_v1 = vsub.f32 %v4566_v9, %v4669_v43  ;;  %v1474_v11 = vsub.f32 %v4570_v54, %v4669_v43  ;;  %v1960_v34 = vmul.f32 %v2896_v6, %v5462_v14  ;;  %v1341_v19 = vmax.f32 %v1325_v25, %v4674_v40 }
 0x257   : > { %v1784_v29 = vadd.f32 %v2896_v6, %v1768_v20  ;;  %v1944_v61 = vadd.f32 %v1928_v59, %v1912_v52  ;;  %v1405_v63 = vmul.f32 1.442695, %v1378_v45  ;;  %v1992_v3 = vmul.f32 %v2898_v2, %v3915_v46  ;;  %v2902_v9 = vpop.eup %2901 }
 0x258   : > { %1253 = vadd.xlane.f32.xlu1 %v1252_v38  ;;  %v1453_v8 = vmul.f32 1.442695, %v1426_v1  ;;  %v1501_v13 = vmul.f32 1.442695, %v1474_v11  ;;  %v2024_v16 = vmul.f32 %v2900_v26, %v5469_v56  ;;  %v1522_v52 = vsub.f32 %v4603_v22, %v4669_v43  ;;  %v2904_v6 = vpop.eup %2903 }
 0x259   : > { %v1800_v41 = vadd.f32 %v2898_v2, %v1784_v29  ;;  %v1976_v5 = vadd.f32 %v1960_v34, %v1944_v61  ;;  %2905 = vpow2.f32 %v1405_v63  ;;  %v1570_v54 = vsub.f32 %v4644_v37, %v4669_v43  ;;  %v5486_v29 = vld [vmem:[#allocation70_spill] sm:$0xff] }
 0x25a   : > { %v4699_v23 = vpop.xlane.xlu2 %1226  ;;  %2907 = vpow2.f32 %v1453_v8  ;;  %v1618_v46 = vsub.f32 %v4641_v35, %v4669_v43  ;;  %v1741_v25 = vmul.f32 1.442695, %v1714_v12  ;;  %v2010_v22 = vadd.f32 %v1994_v17, %v1978_v10  ;;  %v5487_v63 = vld [vmem:[#allocation50_spill] sm:$0xff] }
 0x25b   : > { %v1816_v14 = vadd.f32 %v2900_v26, %v1800_v41  ;;  %v4708_v38 = vmax.f32 %v1341_v19, %v4699_v23  ;;  %v4712_v56 = vpop.xlane.xlu0 %1100  ;;  %v2008_v21 = vadd.f32 %v1992_v3, %v1976_v5  ;;  %2909 = vpow2.f32 %v1501_v13  ;;  %2143 = vrot.lane.b32.xlu0 %v2105_v33, %s3332_s29  ;;  %v5485_v33 = vld [vmem:[#allocation83_spill] sm:$0xff] }
 0x25c   : > { %v4710_v7 = vpop.xlane.xlu1 %941  ;;  %v1549_v2 = vmul.f32 1.442695, %v1522_v52  ;;  %v1597_v37 = vmul.f32 1.442695, %v1570_v54  ;;  %v2056_v35 = vmul.f32 %v2902_v9, %v5470_v42  ;;  %v1645_v45 = vmul.f32 1.442695, %v1618_v46 }
 0x25d   : > { %v1832_v20 = vadd.f32 %v2902_v9, %v1816_v14  ;;  %v2040_v59 = vadd.f32 %v2024_v16, %v2008_v21  ;;  %v1666_v26 = vsub.f32 %v4605_v39, %v4669_v43  ;;  %v1373_v1 = vsub.f32 %v4233_v44, %v4708_v38  ;;  %v5489_v52 = vld [vmem:[#allocation56_spill] sm:$0xff] }
 0x25e   : > { %2911 = vpow2.f32 %v1549_v2  ;;  %v1421_v12 = vsub.f32 %v4191_v55, %v4708_v38  ;;  %v1299_v17 = vmax.f32 %v4682_v28, %v5485_v33  ;;  %v2026_v61 = vmul.f32 %v5486_v29, %v5466_v15  ;;  %v5488_v55 = vld [vmem:[#allocation49_spill] sm:$0xff]  ;;  %v5490_v14 = vld [vmem:[#allocation88_spill] sm:$0xff]  ;;  %v5493_v29 = vld [vmem:[#allocation59_spill] sm:$0xff] }
 0x25f   : > { %v2906_v11 = vpop.eup %2905  ;;  %v2072_v10 = vadd.f32 %v2056_v35, %v2040_v59  ;;  %2913 = vpow2.f32 %v1597_v37  ;;  %v1693_v34 = vmul.f32 1.442695, %v1666_v26  ;;  %v1395_v43 = vmul.f32 1.442695, %v1373_v1  ;;  %v5492_v37 = vld [vmem:[#allocation60_spill] sm:$0xff] }
 0x260   : > { %v2908_v42 = vpop.eup %2907  ;;  %2915 = vpow2.f32 %v1645_v45  ;;  %v1890_v39 = vmul.f32 %v2906_v11, %v5487_v63  ;;  %v2042_v44 = vadd.f32 %v2026_v61, %v2010_v22  ;;  %v1443_v8 = vmul.f32 1.442695, %v1421_v12 }
 0x261   : > { %v4727_v19 = vpop.eup %2909  ;;  %2917 = vpow2.f32 %v1741_v25  ;;  %v1906_v3 = vmul.f32 %v2908_v42, %v5488_v55  ;;  %v2088_v28 = vmul.f32 %v2904_v6, %v5476_v0  ;;  %v1469_v15 = vsub.f32 %v4181_v51, %v4708_v38  ;;  %v5491_v51 = vld [vmem:[#allocation78_spill] sm:$0xff] }
 0x262   : > { %v4730_v13 = vpop.xlane.xlu2 %1013  ;;  %2919 = vpow2.f32 %v1693_v34  ;;  %v1517_v41 = vsub.f32 %v4260_v36, %v4708_v38  ;;  %v1938_v54 = vmul.f32 %v4727_v19, %v5489_v52  ;;  %v1565_v46 = vsub.f32 %v5473_v50, %v4708_v38 }
 0x263   : > { %v4739_v16 = vpop.xlane.xlu0 %887  ;;  %v1922_v9 = vadd.f32 %v1906_v3, %v1890_v39  ;;  %2921 = vpow2.f32 %v1395_v43  ;;  %v1315_v21 = vmax.f32 %v1299_v17, %v5490_v14  ;;  %2147 = vrot.lane.b32.xlu0 %v5491_v51, %s3332_s29  ;;  %v2104_v36 = vadd.f32 %v2088_v28, %v2072_v10 }
 0x264   : > { %v4737_v5 = vpop.xlane.xlu1 %1172  ;;  %v4745_v0 = vpop.eup %2911  ;;  %2923 = vpow2.f32 %v1443_v8  ;;  %v1491_v25 = vmul.f32 1.442695, %v1469_v15  ;;  %v1539_v35 = vmul.f32 1.442695, %v1517_v41  ;;  %v1587_v45 = vmul.f32 1.442695, %v1565_v46 }
 0x265   : > { %v4750_v22 = vpop.eup %2913  ;;  %v1954_v2 = vadd.f32 %v1938_v54, %v1922_v9  ;;  %v1970_v59 = vmul.f32 %v4745_v0, %v5492_v37  ;;  %v1709_v50 = vsub.f32 %v4699_v23, %v4708_v38  ;;  %v1613_v1 = vsub.f32 %v5484_v31, %v4708_v38  ;;  %v5495_v41 = vld [vmem:[#allocation32_spill] sm:$0xff] }
 0x266   : > { %v4754_v26 = vpop.eup %2915  ;;  %2925 = vpow2.f32 %v1491_v25  ;;  %v1661_v12 = vsub.f32 %v4674_v40, %v4708_v38  ;;  %v2002_v61 = vmul.f32 %v4750_v22, %v5493_v29  ;;  %v4767_v34 = vadd.f32 %v2904_v6, %v1832_v20  ;;  %v5494_v40 = vld [vmem:[#allocation71_spill] sm:$0xff]  ;;  %v5497_v37 = vld [vmem:[#allocation72_spill] sm:$0xff]  ;;  %v5500_v29 = vld [vmem:[#allocation37_spill] sm:$0xff] }
 0x267   : > { %v4762_v17 = vpop.eup %2917  ;;  %2141 = vrot.lane.b32.xlu2 %v2104_v36, %s3332_s29  ;;  %v1986_v10 = vadd.f32 %v1970_v59, %v1954_v2  ;;  %2927 = vpow2.f32 %v1539_v35  ;;  %v1331_v23 = vmax.f32 %v1315_v21, %v4712_v56  ;;  %v1635_v31 = vmul.f32 1.442695, %v1613_v1  ;;  %v5498_v35 = vld [vmem:[#allocation26_spill] sm:$0xff] }
 0x268   : > { %v4769_v63 = vpop.eup %2919  ;;  %2929 = vpow2.f32 %v1587_v45  ;;  %v1683_v39 = vmul.f32 1.442695, %v1661_v12  ;;  %v2058_v38 = vmul.f32 %v5494_v40, %v5467_v47  ;;  %v2034_v3 = vmul.f32 %v4754_v26, %v4047_v62  ;;  %v5496_v47 = vld [vmem:[#allocation27_spill] sm:$0xff] }
 0x269   : > { %v2922_v43 = vpop.eup %2921  ;;  %v2018_v55 = vadd.f32 %v2002_v61, %v1986_v10  ;;  %v1762_v8 = vadd.f32 %v2908_v42, %v2906_v11  ;;  %v1731_v15 = vmul.f32 1.442695, %v1709_v50  ;;  %v1347_v6 = vmax.f32 %v1331_v23, %v4737_v5  ;;  %v5499_v10 = vld [vmem:[#allocation87_spill] sm:$0xff] }
 0x26a   : > { %v2924_v28 = vpop.eup %2923  ;;  %v4777_v20 = vpop.xlane.xlu2 %1085  ;;  %2931 = vpow2.f32 %v1635_v31  ;;  %v1885_v9 = vmul.f32 %v2922_v43, %v5495_v41  ;;  %v2074_v46 = vadd.f32 %v2058_v38, %v2042_v44  ;;  %v2066_v11 = vmul.f32 %v4769_v63, %v3992_v32  ;;  %v5501_v38 = vld [vmem:[#allocation28_spill] sm:$0xff] }
 0x26b   : > { %v4780_v54 = vpop.xlane.xlu0 %959  ;;  %v2050_v21 = vadd.f32 %v2034_v3, %v2018_v55  ;;  %2933 = vpow2.f32 %v1683_v39  ;;  %v1901_v51 = vmul.f32 %v2924_v28, %v5496_v47  ;;  %2159 = vrot.lane.b32.xlu0 %v4618_v18, %s3332_s29  ;;  %v1778_v42 = vadd.f32 %v4727_v19, %v1762_v8 }
 0x26c   : > { %v1245_v52 = vpop.xlane.xlu1 %1244  ;;  %v2926_v36 = vpop.eup %2925  ;;  %v1757_v25 = vadd.f32 %v2924_v28, %v2922_v43  ;;  %v2090_v59 = vmul.f32 %v5497_v37, %v5478_v49  ;;  %2935 = vpow2.f32 %v1731_v15  ;;  %v2098_v31 = vmul.f32 %v4762_v17, %v4033_v53  ;;  %v5503_v37 = vld [vmem:[#allocation80_spill] sm:$0xff] }
 0x26d   : > { %v1363_v62 = vmax.f32 %v1347_v6, %v1245_v52  ;;  %v2928_v2 = vpop.eup %2927  ;;  %v1917_v44 = vadd.f32 %v1901_v51, %v1885_v9  ;;  %v1933_v45 = vmul.f32 %v2926_v36, %v5498_v35  ;;  %v2082_v1 = vadd.f32 %v2066_v11, %v2050_v21  ;;  %v5502_v21 = vld [vmem:[#allocation33_spill] sm:$0xff] }
 0x26e   : > { %v2930_v50 = vpop.eup %2929  ;;  %v2106_v32 = vadd.f32 %v2090_v59, %v2074_v46  ;;  %v1965_v61 = vmul.f32 %v2928_v2, %v5500_v29 }
 0x26f   : > { %v1379_v12 = vsub.f32 %v5475_v27, %v1363_v62  ;;  %v1427_v18 = vsub.f32 %v5474_v24, %v1363_v62  ;;  %2149 = vrot.lane.b32.xlu2 %v5499_v10, %s3332_s29  ;;  %v1949_v19 = vadd.f32 %v1933_v45, %v1917_v44  ;;  %v1475_v23 = vsub.f32 %v5483_v60, %v1363_v62  ;;  %v5504_v10 = vld [vmem:[#allocation82_spill] sm:$0xff] }
 0x270   : > { %v2932_v49 = vpop.eup %2931  ;;  %v1523_v40 = vsub.f32 %v5485_v33, %v1363_v62  ;;  %v1997_v55 = vmul.f32 %v2930_v50, %v5501_v38  ;;  %v1571_v8 = vsub.f32 %v5490_v14, %v1363_v62  ;;  %v2114_v60 = vadd.f32 %v2098_v31, %v2082_v1 }
 0x271   : > { %v1407_v39 = vmul.f32 1.442695, %v1379_v12  ;;  %v1455_v43 = vmul.f32 1.442695, %v1427_v18  ;;  %v4800_v27 = vpop.eup %2933  ;;  %2145 = vrot.lane.b32.xlu1 %v2106_v32, %s3332_s29  ;;  %v1981_v24 = vadd.f32 %v1965_v61, %v1949_v19  ;;  %v1503_v3 = vmul.f32 1.442695, %v1475_v23 }
 0x272   : > { %v4805_v28 = vpop.xlane.xlu2 %1157  ;;  %v1551_v15 = vmul.f32 1.442695, %v1523_v40  ;;  %v1619_v53 = vsub.f32 %v4712_v56, %v1363_v62  ;;  %v1715_v6 = vsub.f32 %v1245_v52, %v1363_v62  ;;  %v2029_v51 = vmul.f32 %v2932_v49, %v5502_v21  ;;  %v2936_v11 = vpop.eup %2935  ;;  %v5505_v61 = vld [vmem:[#allocation74_spill] sm:$0xff]  ;;  %v5506_v23 = vld [vmem:[#allocation40_spill] sm:$0xff] }
 0x273   : > { %v4810_v33 = vpop.xlane.xlu0 %1031  ;;  %v2013_v46 = vadd.f32 %v1997_v55, %v1981_v24  ;;  %2937 = vpow2.f32 %v1407_v39  ;;  %2161 = vrot.lane.b32.xlu0 %v2114_v60, %s3332_s29  ;;  %v2061_v14 = vmul.f32 %v4800_v27, %v5503_v37  ;;  %v1599_v59 = vmul.f32 1.442695, %v1571_v8  ;;  %v5508_v8 = vld [vmem:[#allocation43_spill] sm:$0xff] }
 0x274   : > { %v4808_v9 = vpop.xlane.xlu1 %872  ;;  %2939 = vpow2.f32 %v1455_v43  ;;  %v1667_v56 = vsub.f32 %v4737_v5, %v1363_v62  ;;  %v1794_v52 = vadd.f32 %v4745_v0, %v1778_v42  ;;  %v1647_v45 = vmul.f32 1.442695, %v1619_v53  ;;  %v5507_v42 = vld [vmem:[#allocation41_spill] sm:$0xff] }
 0x275   : > { %v2045_v44 = vadd.f32 %v2029_v51, %v2013_v46  ;;  %2941 = vpow2.f32 %v1503_v3  ;;  %v1773_v1 = vadd.f32 %v2926_v36, %v1757_v25  ;;  %v1743_v12 = vmul.f32 1.442695, %v1715_v6 }
 0x276   : > { %2943 = vpow2.f32 %v1551_v15  ;;  %v2093_v32 = vmul.f32 %v2936_v11, %v5504_v10  ;;  %v1810_v19 = vadd.f32 %v4750_v22, %v1794_v52  ;;  %v1262_v31 = vmax.f32 %v5506_v23, %v5505_v61 }
 0x277   : > { %v2077_v18 = vadd.f32 %v2061_v14, %v2045_v44  ;;  %2945 = vpow2.f32 %v1599_v59  ;;  %v1695_v39 = vmul.f32 1.442695, %v1667_v56  ;;  %v1789_v43 = vadd.f32 %v2928_v2, %v1773_v1 }
 0x278   : > { %v1826_v5 = vadd.f32 %v4754_v26, %v1810_v19  ;;  %v1278_v62 = vmax.f32 %v1262_v31, %v4676_v30  ;;  %2947 = vpow2.f32 %v1647_v45 }
 0x279   : > { %v2938_v40 = vpop.eup %2937  ;;  %v2109_v24 = vadd.f32 %v2093_v32, %v2077_v18  ;;  %v1805_v55 = vadd.f32 %v2930_v50, %v1789_v43  ;;  %2949 = vpow2.f32 %v1743_v12  ;;  %v5509_v50 = vld [vmem:[#allocation36_spill] sm:$0xff]  ;;  %v5511_v18 = vld [vmem:[#allocation38_spill] sm:$0xff] }
 0x27a   : > { %v2940_v0 = vpop.eup %2939  ;;  %v4824_v36 = vpop.xlane.xlu2 %944  ;;  %v1891_v25 = vmul.f32 %v2938_v40, %v5507_v42  ;;  %v1842_v26 = vadd.f32 %v4769_v63, %v1826_v5  ;;  %v1294_v6 = vmax.f32 %v1278_v62, %v4710_v7  ;;  %2951 = vpow2.f32 %v1695_v39  ;;  %v5510_v63 = vld [vmem:[#allocation85_spill] sm:$0xff] }
 0x27b   : > { %v2942_v22 = vpop.eup %2941  ;;  %2151 = vrot.lane.b32.xlu2 %v2109_v24, %s3332_s29  ;;  %v4830_v2 = vpop.xlane.xlu0 %818  ;;  %v1907_v60 = vmul.f32 %v2940_v0, %v5508_v8  ;;  %v1763_v15 = vadd.f32 %v2940_v0, %v2938_v40  ;;  %v1821_v46 = vadd.f32 %v2932_v49, %v1805_v55  ;;  %v1268_v1 = vmax.f32 %v5510_v63, %v4671_v48  ;;  %v5512_v24 = vld [vmem:[#allocation42_spill] sm:$0xff] }
 0x27c   : > { %v4828_v3 = vpop.xlane.xlu1 %1103  ;;  %v2944_v53 = vpop.eup %2943  ;;  %v1939_v14 = vmul.f32 %v2942_v22, %v5509_v50  ;;  %v4837_v59 = vadd.f32 %v4762_v17, %v1842_v26  ;;  %v1310_v52 = vmax.f32 %v1294_v6, %v4730_v13 }
 0x27d   : > { %v1923_v51 = vadd.f32 %v1907_v60, %v1891_v25  ;;  %v1779_v44 = vadd.f32 %v2942_v22, %v1763_v15  ;;  %v2946_v56 = vpop.eup %2945  ;;  %v1837_v45 = vadd.f32 %v4800_v27, %v1821_v46  ;;  %v1971_v32 = vmul.f32 %v2944_v53, %v5511_v18 }
 0x27e   : > { %v2948_v49 = vpop.eup %2947  ;;  %v1326_v31 = vmax.f32 %v1310_v52, %v4777_v20  ;;  %v1284_v43 = vmax.f32 %v1268_v1, %v4739_v16  ;;  %v2003_v5 = vmul.f32 %v2946_v56, %v5512_v24  ;;  %v5515_v52 = vld [vmem:[#allocation91_spill] sm:$0xff] }
 0x27f   : > { %v1955_v12 = vadd.f32 %v1939_v14, %v1923_v51  ;;  %v1795_v19 = vadd.f32 %v2944_v53, %v1779_v44  ;;  %v4845_v39 = vadd.f32 %v2936_v11, %v1837_v45  ;;  %v2950_v17 = vpop.eup %2949  ;;  %v5513_v11 = vld [vmem:[#allocation34_spill] sm:$0xff]  ;;  %v5514_v14 = vld [vmem:[#allocation35_spill] sm:$0xff] }
 0x280   : > { %v2952_v27 = vpop.eup %2951  ;;  %v1342_v62 = vmax.f32 %v1326_v31, %v4805_v28  ;;  %v1300_v55 = vmax.f32 %v1284_v43, %v4780_v54  ;;  %v2035_v15 = vmul.f32 %v2948_v49, %v5513_v11  ;;  %v2099_v45 = vmul.f32 %v2950_v17, %v5515_v52 }
 0x281   : > { %v1987_v40 = vadd.f32 %v1971_v32, %v1955_v12  ;;  %v1811_v0 = vadd.f32 %v2946_v56, %v1795_v19  ;;  %v2067_v44 = vmul.f32 %v2952_v27, %v5514_v14 }
 0x282   : > { %v4850_v25 = vpop.xlane.xlu2 %1175  ;;  %v1316_v46 = vmax.f32 %v1300_v55, %v4810_v33 }
 0x283   : > { %v1230_v60 = vpop.xlane.xlu0 %1229  ;;  %v2019_v26 = vadd.f32 %v2003_v5, %v1987_v40  ;;  %v1827_v53 = vadd.f32 %v2948_v49, %v1811_v0 }
 0x284   : > { %v4853_v22 = vpop.xlane.xlu1 %890  ;;  %v1358_v6 = vmax.f32 %v1342_v62, %v1230_v60  ;;  %v1332_v19 = vmax.f32 %v1316_v46, %v4828_v3 }
 0x285   : > { %v2051_v51 = vadd.f32 %v2035_v15, %v2019_v26  ;;  %v1843_v56 = vadd.f32 %v2952_v27, %v1827_v53 }
 0x286   : > { %v1374_v1 = vsub.f32 %v5506_v23, %v1358_v6  ;;  %v1422_v12 = vsub.f32 %v5505_v61, %v1358_v6  ;;  %v1470_v32 = vsub.f32 %v4676_v30, %v1358_v6  ;;  %v1710_v31 = vsub.f32 %v1230_v60, %v1358_v6 }
 0x287   : > { %v2083_v43 = vadd.f32 %v2067_v44, %v2051_v51  ;;  %v1518_v49 = vsub.f32 %v4710_v7, %v1358_v6  ;;  %v1566_v0 = vsub.f32 %v4730_v13, %v1358_v6  ;;  %v1348_v27 = vmax.f32 %v1332_v19, %v4850_v25 }
 0x288   : > { %v1397_v40 = vmul.f32 1.442695, %v1374_v1  ;;  %v1445_v5 = vmul.f32 1.442695, %v1422_v12  ;;  %v1493_v55 = vmul.f32 1.442695, %v1470_v32  ;;  %v1614_v23 = vsub.f32 %v4777_v20, %v1358_v6 }
 0x289   : > { %v2115_v62 = vadd.f32 %v2099_v45, %v2083_v43  ;;  %v1541_v61 = vmul.f32 1.442695, %v1518_v49  ;;  %v1662_v30 = vsub.f32 %v4805_v28, %v1358_v6  ;;  %v4870_v15 = vadd.f32 %v2950_v17, %v1843_v56 }
 0x28a   : > { %v4867_v26 = vpop.xlane.xlu2 %1247  ;;  %v1733_v60 = vmul.f32 1.442695, %v1710_v31  ;;  %2953 = vpow2.f32 %v1397_v40  ;;  %v1589_v46 = vmul.f32 1.442695, %v1566_v0  ;;  %v1637_v20 = vmul.f32 1.442695, %v1614_v23 }
 0x28b   : > { %2163 = vrot.lane.b32.xlu1 %v2115_v62, %s3332_s29  ;;  %v1364_v7 = vmax.f32 %v1348_v27, %v4867_v26  ;;  %v4876_v13 = vpop.xlane.xlu0 %1016  ;;  %2955 = vpow2.f32 %v1445_v5  ;;  %v1685_v17 = vmul.f32 1.442695, %v1662_v30 }
 0x28c   : > { %v4874_v53 = vpop.xlane.xlu1 %962  ;;  %2957 = vpow2.f32 %v1493_v55 }
 0x28d   : > { %v1380_v51 = vsub.f32 %v5510_v63, %v1364_v7  ;;  %v1428_v28 = vsub.f32 %v4671_v48, %v1364_v7  ;;  %2959 = vpow2.f32 %v1541_v61  ;;  %v1476_v6 = vsub.f32 %v4739_v16, %v1364_v7 }
 0x28e   : > { %v1524_v44 = vsub.f32 %v4780_v54, %v1364_v7  ;;  %2961 = vpow2.f32 %v1733_v60  ;;  %v1572_v1 = vsub.f32 %v4810_v33, %v1364_v7  ;;  %v1620_v16 = vsub.f32 %v4828_v3, %v1364_v7  ;;  %v5517_v60 = vld [vmem:[#allocation76_spill] sm:$0xff] }
 0x28f   : > { %v1409_v56 = vmul.f32 1.442695, %v1380_v51  ;;  %2963 = vpow2.f32 %v1589_v46  ;;  %v1457_v45 = vmul.f32 1.442695, %v1428_v28  ;;  %v1505_v32 = vmul.f32 1.442695, %v1476_v6 }
 0x290   : > { %v2954_v12 = vpop.eup %2953  ;;  %2965 = vpow2.f32 %v1637_v20  ;;  %v1553_v63 = vmul.f32 1.442695, %v1524_v44  ;;  %v1601_v5 = vmul.f32 1.442695, %v1572_v1  ;;  %v1668_v0 = vsub.f32 %v4850_v25, %v1364_v7 }
 0x291   : > { %v2956_v19 = vpop.eup %2955  ;;  %2967 = vpow2.f32 %v1685_v17  ;;  %v1886_v48 = vmul.f32 %v2954_v12, %v5495_v41  ;;  %v1716_v55 = vsub.f32 %v4867_v26, %v1364_v7  ;;  %v1649_v23 = vmul.f32 1.442695, %v1620_v16 }
 0x292   : > { %v4883_v31 = vpop.xlane.xlu2 %875  ;;  %v2958_v43 = vpop.eup %2957  ;;  %v1902_v40 = vmul.f32 %v2956_v19, %v5496_v47  ;;  %2969 = vpow2.f32 %v1409_v56  ;;  %v1758_v61 = vadd.f32 %v2956_v19, %v2954_v12  ;;  %v5516_v47 = vld [vmem:[#allocation84_spill] sm:$0xff]  ;;  %v1697_v28 = vmul.f32 1.442695, %v1668_v0  ;;  %v2122_v0 = vld [vmem:[#allocation10 + $0x18] sm:$0xff] }
 0x293   : > { %v4889_v49 = vpop.xlane.xlu0 %1088  ;;  %v2960_v33 = vpop.eup %2959  ;;  %2971 = vpow2.f32 %v1457_v45  ;;  %v1934_v41 = vmul.f32 %v2958_v43, %v5498_v35  ;;  %v1263_v46 = vmax.f32 %v5517_v60, %v5516_v47  ;;  %v1745_v56 = vmul.f32 1.442695, %v1716_v55  ;;  %2215 = vmatpush.msra.mxu2 %v2122_v0  ;;  %2694 = vmatpush.msrb.mxu3 %v2122_v0 }
 0x294   : > { %v4887_v54 = vpop.xlane.xlu1 %1034  ;;  %v4893_v27 = vpop.eup %2961  ;;  %v1918_v62 = vadd.f32 %v1902_v40, %v1886_v48  ;;  %2973 = vpow2.f32 %v1505_v32  ;;  %v1966_v51 = vmul.f32 %v2960_v33, %v5500_v29  ;;  %v1774_v17 = vadd.f32 %v2958_v43, %v1758_v61 }
 0x295   : > { %v2964_v3 = vpop.eup %2963  ;;  %2975 = vpow2.f32 %v1553_v63  ;;  %v1279_v35 = vmax.f32 %v1263_v46, %v4808_v9  ;;  %v2094_v46 = vmul.f32 %v4893_v27, %v5504_v10 }
 0x296   : > { %v2966_v30 = vpop.eup %2965  ;;  %v1950_v20 = vadd.f32 %v1934_v41, %v1918_v62  ;;  %2977 = vpow2.f32 %v1601_v5  ;;  %v1998_v26 = vmul.f32 %v2964_v3, %v5501_v38  ;;  %v1790_v12 = vadd.f32 %v2960_v33, %v1774_v17 }
 0x297   : > { %v2968_v25 = vpop.eup %2967  ;;  %2979 = vpow2.f32 %v1649_v23  ;;  %v2030_v63 = vmul.f32 %v2966_v30, %v5502_v21  ;;  %v1295_v40 = vmax.f32 %v1279_v35, %v4824_v36 }
 0x298   : > { %v2970_v6 = vpop.eup %2969  ;;  %v1982_v44 = vadd.f32 %v1966_v51, %v1950_v20  ;;  %v2062_v5 = vmul.f32 %v2968_v25, %v5503_v37  ;;  %2981 = vpow2.f32 %v1697_v28 }
 0x299   : > { %v2972_v7 = vpop.eup %2971  ;;  %v1892_v1 = vmul.f32 %v2970_v6, %v5507_v42  ;;  %v1806_v42 = vadd.f32 %v2964_v3, %v1790_v12  ;;  %2983 = vpow2.f32 %v1745_v56  ;;  %v1311_v21 = vmax.f32 %v1295_v40, %v4876_v13  ;;  %v2121_v12 = vld [vmem:[#allocation10 + $0x10] sm:$0xff] }
 0x29a   : > { %v4902_v45 = vpop.xlane.xlu2 %1106  ;;  %v2974_v32 = vpop.eup %2973  ;;  %v2014_v48 = vadd.f32 %v1998_v26, %v1982_v44  ;;  %v1908_v16 = vmul.f32 %v2972_v7, %v5508_v8  ;;  %v1764_v43 = vadd.f32 %v2972_v7, %v2970_v6  ;;  %2216 = vmatpush.msra.mxu2 %v2121_v12  ;;  %2695 = vmatpush.msrb.mxu3 %v2121_v12  ;;  %v5518_v40 = vld [vmem:[#allocation92_spill] sm:$0xff]  ;;  %v5520_v12 = vld [vmem:[#allocation39_spill] sm:$0xff] }
 0x29b   : > { %v4907_v19 = vpop.xlane.xlu0 %1160  ;;  %v2976_v38 = vpop.eup %2975  ;;  %v1940_v41 = vmul.f32 %v2974_v32, %v5509_v50  ;;  %v1822_v23 = vadd.f32 %v2966_v30, %v1806_v42  ;;  %v1327_v51 = vmax.f32 %v1311_v21, %v4889_v49 }
 0x29c   : > { %v4905_v29 = vpop.xlane.xlu1 %821  ;;  %v2046_v33 = vadd.f32 %v2030_v63, %v2014_v48  ;;  %v1924_v62 = vadd.f32 %v1908_v16, %v1892_v1  ;;  %v2978_v55 = vpop.eup %2977  ;;  %v1780_v8 = vadd.f32 %v2974_v32, %v1764_v43  ;;  %v1972_v20 = vmul.f32 %v2976_v38, %v5511_v18 }
 0x29d   : > { %v2980_v3 = vpop.eup %2979  ;;  %v1838_v50 = vadd.f32 %v2968_v25, %v1822_v23  ;;  %v2004_v35 = vmul.f32 %v2978_v55, %v5512_v24  ;;  %v1343_v26 = vmax.f32 %v1327_v51, %v4907_v19  ;;  %v2119_v23 = vld [vmem:[#allocation10] sm:$0xff] }
 0x29e   : > { %v2078_v61 = vadd.f32 %v2062_v5, %v2046_v33  ;;  %v1956_v37 = vadd.f32 %v1940_v41, %v1924_v62  ;;  %v1796_v28 = vadd.f32 %v2976_v38, %v1780_v8  ;;  %v2982_v44 = vpop.eup %2981  ;;  %v2036_v25 = vmul.f32 %v2980_v3, %v5513_v11  ;;  %v2120_v8 = vld [vmem:[#allocation10 + $0x8] sm:$0xff] }
 0x29f   : > { %v4924_v10 = vadd.f32 %v4893_v27, %v1838_v50  ;;  %v2984_v32 = vpop.eup %2983  ;;  %v2068_v16 = vmul.f32 %v2982_v44, %v5514_v14  ;;  %v1269_v5 = vmax.f32 %v5518_v40, %v4830_v2  ;;  %2217 = vmatpush.msra.mxu2 %v2120_v8  ;;  %2696 = vmatpush.msrb.mxu3 %v2120_v8 }
 0x2a0   : > { %v2110_v17 = vadd.f32 %v2094_v46, %v2078_v61  ;;  %v1988_v6 = vadd.f32 %v1972_v20, %v1956_v37  ;;  %v1812_v7 = vadd.f32 %v2978_v55, %v1796_v28  ;;  %v2100_v11 = vmul.f32 %v2984_v32, %v5515_v52 }
 0x2a1   : > { %v1285_v14 = vmax.f32 %v1269_v5, %v4853_v22  ;;  %2218 = vmatpush.msra.mxu2 %v2119_v23  ;;  %2697 = vmatpush.msrb.mxu3 %v2119_v23 }
 0x2a2   : > { %v4921_v30 = vpop.xlane.xlu2 %893  ;;  %2153 = vrot.lane.b32.xlu0 %v2110_v17, %s3332_s29  ;;  %v2020_v1 = vadd.f32 %v2004_v35, %v1988_v6  ;;  %v1828_v48 = vadd.f32 %v2980_v3, %v1812_v7 }
 0x2a3   : > { %v4927_v56 = vpop.xlane.xlu0 %947  ;;  %v1301_v52 = vmax.f32 %v1285_v14, %v4874_v53 }
 0x2a4   : > { %v1233_v18 = vpop.xlane.xlu1 %1232  ;;  %v2052_v63 = vadd.f32 %v2036_v25, %v2020_v1  ;;  %v1844_v61 = vadd.f32 %v2982_v44, %v1828_v48 }
 0x2a5   : > { %v1359_v24 = vmax.f32 %v1343_v26, %v1233_v18  ;;  %v1317_v51 = vmax.f32 %v1301_v52, %v4887_v54  ;;  %v5519_v26 = vld [vmem:[#allocation31_spill] sm:$0xff] }
 0x2a6   : > { %v2084_v0 = vadd.f32 %v2068_v16, %v2052_v63  ;;  %v4950_v37 = vadd.f32 %v2984_v32, %v1844_v61 }
 0x2a7   : > { %v1375_v27 = vsub.f32 %v5517_v60, %v1359_v24  ;;  %v1423_v43 = vsub.f32 %v5516_v47, %v1359_v24  ;;  %v1471_v38 = vsub.f32 %v4808_v9, %v1359_v24  ;;  %v1519_v42 = vsub.f32 %v4824_v36, %v1359_v24 }
 0x2a8   : > { %v1567_v41 = vsub.f32 %v4876_v13, %v1359_v24  ;;  %v2116_v55 = vadd.f32 %v2100_v11, %v2084_v0  ;;  %v1615_v47 = vsub.f32 %v4889_v49, %v1359_v24  ;;  %v1663_v49 = vsub.f32 %v4907_v19, %v1359_v24  ;;  %v5522_v0 = vld [vmem:[#allocation94_spill] sm:$0xff]  ;;  %v5523_v11 = vld [vmem:[#allocation93_spill] sm:$0xff] }
 0x2a9   : > { %v1399_v33 = vmul.f32 1.442695, %v1375_v27  ;;  %v1447_v62 = vmul.f32 1.442695, %v1423_v43  ;;  %v1495_v60 = vmul.f32 1.442695, %v1471_v38  ;;  %v1711_v20 = vsub.f32 %v1233_v18, %v1359_v24 }
 0x2aa   : > { %v4941_v21 = vpop.xlane.xlu2 %965  ;;  %v1543_v9 = vmul.f32 1.442695, %v1519_v42  ;;  %2165 = vrot.lane.b32.xlu2 %v2116_v55, %s3332_s29  ;;  %v1591_v13 = vmul.f32 1.442695, %v1567_v41  ;;  %v1639_v3 = vmul.f32 1.442695, %v1615_v47  ;;  %v1333_v28 = vmax.f32 %v1317_v51, %v4902_v45 }
 0x2ab   : > { %v4947_v46 = vpop.xlane.xlu0 %1178  ;;  %2985 = vpow2.f32 %v1399_v33  ;;  %v1687_v50 = vmul.f32 1.442695, %v1663_v49  ;;  %v1735_v6 = vmul.f32 1.442695, %v1711_v20  ;;  %v5521_v27 = vld [vmem:[#allocation29_spill] sm:$0xff]  ;;  %v1264_v42 = vmax.f32 %v5523_v11, %v5522_v0  ;;  %v5524_v33 = vld [vmem:[#allocation30_spill] sm:$0xff] }
 0x2ac   : > { %v4945_v36 = vpop.xlane.xlu1 %1019  ;;  %2987 = vpow2.f32 %v1447_v62  ;;  %v1349_v19 = vmax.f32 %v1333_v28, %v4947_v46  ;;  %v5525_v49 = vld [vmem:[#allocation97_spill] sm:$0xff] }
 0x2ad   : > { %2989 = vpow2.f32 %v1495_v60  ;;  %v1280_v23 = vmax.f32 %v1264_v42, %v4883_v31 }
 0x2ae   : > { %2991 = vpow2.f32 %v1543_v9 }
 0x2af   : > { %2993 = vpow2.f32 %v1591_v13 }
 0x2b0   : > { %2995 = vpow2.f32 %v1639_v3 }
 0x2b1   : > { %v2986_v17 = vpop.eup %2985  ;;  %2997 = vpow2.f32 %v1687_v50 }
 0x2b2   : > { %v2988_v35 = vpop.eup %2987  ;;  %v4955_v44 = vpop.xlane.xlu2 %1037  ;;  %v1887_v7 = vmul.f32 %v2986_v17, %v5519_v26  ;;  %2999 = vpow2.f32 %v1735_v6 }
 0x2b3   : > { %v2990_v18 = vpop.eup %2989  ;;  %v1251_v25 = vpop.xlane.xlu0 %1250  ;;  %v1903_v32 = vmul.f32 %v2988_v35, %v5520_v12  ;;  %v1759_v24 = vadd.f32 %v2988_v35, %v2986_v17 }
 0x2b4   : > { %v4958_v1 = vpop.xlane.xlu1 %1091  ;;  %v2992_v48 = vpop.eup %2991  ;;  %v1365_v63 = vmax.f32 %v1349_v19, %v1251_v25  ;;  %v1935_v43 = vmul.f32 %v2990_v18, %v5521_v27 }
 0x2b5   : > { %v1919_v16 = vadd.f32 %v1903_v32, %v1887_v7  ;;  %v1775_v38 = vadd.f32 %v2990_v18, %v1759_v24  ;;  %v2994_v5 = vpop.eup %2993  ;;  %v1967_v62 = vmul.f32 %v2992_v48, %v5524_v33  ;;  %v1296_v32 = vmax.f32 %v1280_v23, %v4927_v56 }
 0x2b6   : > { %v1381_v41 = vsub.f32 %v5518_v40, %v1365_v63  ;;  %v1429_v14 = vsub.f32 %v4830_v2, %v1365_v63  ;;  %v2996_v55 = vpop.eup %2995  ;;  %v1717_v60 = vsub.f32 %v1251_v25, %v1365_v63  ;;  %v1477_v9 = vsub.f32 %v4853_v22, %v1365_v63  ;;  %v5526_v2 = vld [vmem:[#allocation98_spill] sm:$0xff]  ;;  %v5527_v25 = vld [vmem:[#allocation95_spill] sm:$0xff] }
 0x2b7   : > { %v1951_v47 = vadd.f32 %v1935_v43, %v1919_v16  ;;  %v1525_v8 = vsub.f32 %v4874_v53, %v1365_v63  ;;  %v1999_v20 = vmul.f32 %v2994_v5, %v5525_v49  ;;  %v1573_v51 = vsub.f32 %v4887_v54, %v1365_v63  ;;  %v2998_v40 = vpop.eup %2997  ;;  %v5528_v43 = vld [vmem:[#allocation47_spill] sm:$0xff] }
 0x2b8   : > { %v1411_v61 = vmul.f32 1.442695, %v1381_v41  ;;  %v1459_v52 = vmul.f32 1.442695, %v1429_v14  ;;  %v1507_v3 = vmul.f32 1.442695, %v1477_v9  ;;  %v2031_v50 = vmul.f32 %v2996_v55, %v5526_v2  ;;  %v3000_v53 = vpop.eup %2999 }
 0x2b9   : > { %v1983_v13 = vadd.f32 %v1967_v62, %v1951_v47  ;;  %v1555_v17 = vmul.f32 1.442695, %v1525_v8  ;;  %v1621_v22 = vsub.f32 %v4902_v45, %v1365_v63  ;;  %v1791_v6 = vadd.f32 %v2992_v48, %v1775_v38 }
 0x2ba   : > { %v4972_v28 = vpop.xlane.xlu2 %1109  ;;  %v1747_v35 = vmul.f32 1.442695, %v1717_v60  ;;  %3001 = vpow2.f32 %v1411_v61  ;;  %v1669_v18 = vsub.f32 %v4947_v46, %v1365_v63  ;;  %v1270_v54 = vmax.f32 %v5527_v25, %v4905_v29 }
 0x2bb   : > { %v2015_v7 = vadd.f32 %v1999_v20, %v1983_v13  ;;  %3003 = vpow2.f32 %v1459_v52  ;;  %v1603_v24 = vmul.f32 1.442695, %v1573_v51  ;;  %v2063_v42 = vmul.f32 %v2998_v40, %v5528_v43  ;;  %v5529_v52 = vld [vmem:[#allocation46_spill] sm:$0xff] }
 0x2bc   : > { %v4976_v19 = vpop.xlane.xlu1 %1163  ;;  %3005 = vpow2.f32 %v1507_v3  ;;  %v1807_v45 = vadd.f32 %v2994_v5, %v1791_v6  ;;  %v1312_v48 = vmax.f32 %v1296_v32, %v4945_v36  ;;  %v2095_v38 = vmul.f32 %v3000_v53, %v4463_v4  ;;  %v5530_v3 = vld [vmem:[#allocation44_spill] sm:$0xff] }
 0x2bd   : > { %v2047_v16 = vadd.f32 %v2031_v50, %v2015_v7  ;;  %3007 = vpow2.f32 %v1555_v17  ;;  %v1651_v62 = vmul.f32 1.442695, %v1621_v22  ;;  %v1699_v63 = vmul.f32 1.442695, %v1669_v18 }
 0x2be   : > { %3009 = vpow2.f32 %v1747_v35  ;;  %v1823_v41 = vadd.f32 %v2996_v55, %v1807_v45  ;;  %v1286_v14 = vmax.f32 %v1270_v54, %v4921_v30  ;;  %v1328_v60 = vmax.f32 %v1312_v48, %v4958_v1  ;;  %v5531_v54 = vld [vmem:[#allocation45_spill] sm:$0xff]  ;;  %v5532_v48 = vld [vmem:[#allocation96_spill] sm:$0xff] }
 0x2bf   : > { %v2079_v46 = vadd.f32 %v2063_v42, %v2047_v16  ;;  %3011 = vpow2.f32 %v1603_v24 }
 0x2c0   : > { %v3002_v47 = vpop.eup %3001  ;;  %v1839_v8 = vadd.f32 %v2998_v40, %v1823_v41  ;;  %v1302_v5 = vmax.f32 %v1286_v14, %v4941_v21  ;;  %v1344_v61 = vmax.f32 %v1328_v60, %v4976_v19  ;;  %3013 = vpow2.f32 %v1651_v62 }
 0x2c1   : > { %v2111_v9 = vadd.f32 %v2095_v38, %v2079_v46  ;;  %v3004_v23 = vpop.eup %3003  ;;  %v1893_v13 = vmul.f32 %v3002_v47, %v5529_v52  ;;  %3015 = vpow2.f32 %v1699_v63 }
 0x2c2   : > { %v3006_v20 = vpop.eup %3005  ;;  %v1909_v51 = vmul.f32 %v3004_v23, %v5530_v3  ;;  %v4992_v50 = vadd.f32 %v3000_v53, %v1839_v8  ;;  %v1765_v17 = vadd.f32 %v3004_v23, %v3002_v47  ;;  %v1318_v40 = vmax.f32 %v1302_v5, %v4955_v44  ;;  %v4995_v6 = vpop.xlane.xlu2 %1181  ;;  %v5533_v5 = vld [vmem:[#allocation99_spill] sm:$0xff] }
 0x2c3   : > { %2155 = vrot.lane.b32.xlu1 %v2111_v9, %s3332_s29  ;;  %v3008_v22 = vpop.eup %3007  ;;  %v1941_v32 = vmul.f32 %v3006_v20, %v5531_v54 }
 0x2c4   : > { %v1236_v55 = vpop.xlane.xlu1 %1235  ;;  %v4997_v7 = vpop.eup %3009  ;;  %v1925_v18 = vadd.f32 %v1909_v51, %v1893_v13  ;;  %v1781_v24 = vadd.f32 %v3006_v20, %v1765_v17  ;;  %v1334_v42 = vmax.f32 %v1318_v40, %v4972_v28  ;;  %v1973_v53 = vmul.f32 %v3008_v22, %v5532_v48 }
 0x2c5   : > { %v1360_v35 = vmax.f32 %v1344_v61, %v1236_v55  ;;  %v3012_v16 = vpop.eup %3011  ;;  %v2140_v45 = vpop.permute.xlu0 %2139  ;;  %v2101_v9 = vmul.f32 %v4997_v7, %v4547_v58 }
 0x2c6   : > { %2665 = vmatmul.msk.f32.vlgmr.msra.gmra.mxu2 %vm476_vm0, %v2140_v45  ;;  %v1957_v63 = vadd.f32 %v1941_v32, %v1925_v18  ;;  %v5007_v60 = vpop.eup %3013  ;;  %v1350_v47 = vmax.f32 %v1334_v42, %v4995_v6  ;;  %v2005_v61 = vmul.f32 %v3012_v16, %v5533_v5  ;;  %v1797_v51 = vadd.f32 %v3008_v22, %v1781_v24  ;;  %v5534_v45 = vld [vmem:[#allocation100_spill] sm:$0xff] }
 0x2c7   : > { %v1376_v38 = vsub.f32 %v5523_v11, %v1360_v35  ;;  %v1424_v62 = vsub.f32 %v5522_v0, %v1360_v35  ;;  %v1712_v46 = vsub.f32 %v1236_v55, %v1360_v35  ;;  %v1472_v41 = vsub.f32 %v4883_v31, %v1360_v35  ;;  %v5012_v11 = vpop.eup %3015 }
 0x2c8   : > { %v1520_v14 = vsub.f32 %v4927_v56, %v1360_v35  ;;  %v1989_v0 = vadd.f32 %v1973_v53, %v1957_v63  ;;  %v1568_v20 = vsub.f32 %v4945_v36, %v1360_v35  ;;  %v1616_v56 = vsub.f32 %v4958_v1, %v1360_v35 }
 0x2c9   : > { %v1401_v8 = vmul.f32 1.442695, %v1376_v38  ;;  %v1449_v23 = vmul.f32 1.442695, %v1424_v62  ;;  %v1497_v13 = vmul.f32 1.442695, %v1472_v41  ;;  %v1664_v55 = vsub.f32 %v4976_v19, %v1360_v35 }
 0x2ca   : > { %v1545_v31 = vmul.f32 1.442695, %v1520_v14  ;;  %v1737_v17 = vmul.f32 1.442695, %v1712_v46  ;;  %v2021_v18 = vadd.f32 %v2005_v61, %v1989_v0  ;;  %v2037_v32 = vmul.f32 %v5007_v60, %v4433_v57  ;;  %v2142_v22 = vpop.permute.xlu2 %2141 }
 0x2cb   : > { %3017 = vpow2.f32 %v1401_v8  ;;  %v2069_v53 = vmul.f32 %v5012_v11, %v5534_v45  ;;  %v1593_v36 = vmul.f32 1.442695, %v1568_v20  ;;  %v1641_v1 = vmul.f32 1.442695, %v1616_v56 }
 0x2cc   : > { %v5018_v40 = vpop.xlane.xlu1 %1253  ;;  %3019 = vpow2.f32 %v1449_v23  ;;  %v2053_v38 = vadd.f32 %v2037_v32, %v2021_v18  ;;  %v1813_v19 = vadd.f32 %v3012_v16, %v1797_v51  ;;  %v1689_v24 = vmul.f32 1.442695, %v1664_v55 }
 0x2cd   : > { %v1366_v42 = vmax.f32 %v1350_v47, %v5018_v40  ;;  %3021 = vpow2.f32 %v1497_v13  ;;  %v2144_v35 = vpop.permute.xlu0 %2143 }
 0x2ce   : > { %3023 = vpow2.f32 %v1545_v31  ;;  %2666 = vmatmul.msk.f32.gmra.mxu2 %vm476_vm0, %v2142_v22  ;;  %v2085_v63 = vadd.f32 %v2069_v53, %v2053_v38  ;;  %v1829_v38 = vadd.f32 %v5007_v60, %v1813_v19 }
 0x2cf   : > { %v1382_v62 = vsub.f32 %v5527_v25, %v1366_v42  ;;  %v1430_v46 = vsub.f32 %v4905_v29, %v1366_v42  ;;  %3025 = vpow2.f32 %v1737_v17  ;;  %v1478_v41 = vsub.f32 %v4921_v30, %v1366_v42 }
 0x2d0   : > { %v1526_v14 = vsub.f32 %v4941_v21, %v1366_v42  ;;  %3027 = vpow2.f32 %v1593_v36  ;;  %v2117_v23 = vadd.f32 %v2101_v9, %v2085_v63  ;;  %v1574_v13 = vsub.f32 %v4955_v44, %v1366_v42 }
 0x2d1   : > { %v1413_v47 = vmul.f32 1.442695, %v1382_v62  ;;  %v1461_v8 = vmul.f32 1.442695, %v1430_v46  ;;  %v3018_v16 = vpop.eup %3017  ;;  %3029 = vpow2.f32 %v1641_v1  ;;  %v1509_v0 = vmul.f32 1.442695, %v1478_v41 }
 0x2d2   : > { %v3020_v61 = vpop.eup %3019  ;;  %3031 = vpow2.f32 %v1689_v24  ;;  %v1888_v25 = vmul.f32 %v3018_v16, %v5519_v26  ;;  %v1557_v29 = vmul.f32 1.442695, %v1526_v14  ;;  %2167 = vrot.lane.b32.xlu0 %v2117_v23, %s3332_s29  ;;  %v1622_v21 = vsub.f32 %v4972_v28, %v1366_v42 }
 0x2d3   : > { %v3022_v20 = vpop.eup %3021  ;;  %v1904_v30 = vmul.f32 %v3020_v61, %v5520_v12  ;;  %3033 = vpow2.f32 %v1413_v47  ;;  %v1605_v9 = vmul.f32 1.442695, %v1574_v13  ;;  %v1670_v56 = vsub.f32 %v4995_v6, %v1366_v42 }
 0x2d4   : > { %v3024_v31 = vpop.eup %3023  ;;  %3035 = vpow2.f32 %v1461_v8  ;;  %v1760_v55 = vadd.f32 %v3020_v61, %v3018_v16  ;;  %v1718_v26 = vsub.f32 %v5018_v40, %v1366_v42  ;;  %v1936_v44 = vmul.f32 %v3022_v20, %v5521_v27 }
 0x2d5   : > { %v3026_v51 = vpop.eup %3025  ;;  %v1920_v17 = vadd.f32 %v1904_v30, %v1888_v25  ;;  %3037 = vpow2.f32 %v1509_v0  ;;  %v5038_v32 = vpop.permute.xlu0 %2147  ;;  %v1653_v12 = vmul.f32 1.442695, %v1622_v21  ;;  %v1968_v6 = vmul.f32 %v3024_v31, %v5524_v33 }
 0x2d6   : > { %v3028_v18 = vpop.eup %3027  ;;  %3039 = vpow2.f32 %v1557_v29  ;;  %v1776_v53 = vadd.f32 %v3022_v20, %v1760_v55  ;;  %2667 = vmatmul.msk.f32.gmra.mxu2 %vm476_vm0, %v2144_v35  ;;  %v1701_v40 = vmul.f32 1.442695, %v1670_v56  ;;  %v1749_v22 = vmul.f32 1.442695, %v1718_v26 }
 0x2d7   : > { %v3030_v28 = vpop.eup %3029  ;;  %v1952_v36 = vadd.f32 %v1936_v44, %v1920_v17  ;;  %3041 = vpow2.f32 %v1605_v9  ;;  %v2000_v62 = vmul.f32 %v3028_v18, %v5525_v49  ;;  %v1845_v46 = vadd.f32 %v5012_v11, %v1829_v38 }
 0x2d8   : > { %v3032_v1 = vpop.eup %3031  ;;  %v1792_v42 = vadd.f32 %v3024_v31, %v1776_v53  ;;  %v2032_v41 = vmul.f32 %v3030_v28, %v5526_v2  ;;  %3043 = vpow2.f32 %v1653_v12 }
 0x2d9   : > { %v3034_v27 = vpop.eup %3033  ;;  %v1984_v24 = vadd.f32 %v1968_v6, %v1952_v36  ;;  %v5049_v47 = vadd.f32 %v4997_v7, %v1845_v46  ;;  %3045 = vpow2.f32 %v1701_v40  ;;  %v2064_v11 = vmul.f32 %v3032_v1, %v5528_v43 }
 0x2da   : > { %v3036_v63 = vpop.eup %3035  ;;  %v1894_v35 = vmul.f32 %v3034_v27, %v5529_v52  ;;  %v1808_v33 = vadd.f32 %v3028_v18, %v1792_v42  ;;  %3047 = vpow2.f32 %v1749_v22  ;;  %v2096_v7 = vmul.f32 %v3026_v51, %v4463_v4  ;;  %v5535_v42 = vld [vmem:[#allocation20_spill] sm:$0xff] }
 0x2db   : > { %v3038_v14 = vpop.eup %3037  ;;  %v2016_v60 = vadd.f32 %v2000_v62, %v1984_v24  ;;  %v1910_v19 = vmul.f32 %v3036_v63, %v5530_v3  ;;  %v1766_v8 = vadd.f32 %v3036_v63, %v3034_v27  ;;  %3049 = vrcp.f32 %v5535_v42  ;;  %v2785_v27 = vld [vmem:[%s3543_s11] ss:$0 sm:$0xff] }
 0x2dc   : > { %v3040_v16 = vpop.eup %3039  ;;  %v1824_v49 = vadd.f32 %v3030_v28, %v1808_v33  ;;  %v1942_v2 = vmul.f32 %v3038_v14, %v5531_v54  ;;  %v3081_v24 = vld [vmem:[%s3537_s3] sm:$0xff]  ;;  %3051 = vrcp.f32 %v4767_v34 }
 0x2dd   : > { %v2048_v23 = vadd.f32 %v2032_v41, %v2016_v60  ;;  %v1926_v0 = vadd.f32 %v1910_v19, %v1894_v35  ;;  %v3042_v61 = vpop.eup %3041  ;;  %v2160_v52 = vpop.permute.xlu0 %2159  ;;  %v1782_v29 = vadd.f32 %v3038_v14, %v1766_v8  ;;  %v1974_v20 = vmul.f32 %v3040_v16, %v5532_v48  ;;  %v3082_v14 = vld [vmem:[%s3537_s3 + $0x8] sm:$0xff] }
 0x2de   : > { %v1840_v25 = vadd.f32 %v3032_v1, %v1824_v49  ;;  %2675 = vmatmul.msk.f32.vlgmr.msrb.gmra.mxu3 %vm476_vm0, %v2160_v52  ;;  %v3044_v30 = vpop.eup %3043  ;;  %v2006_v54 = vmul.f32 %v3042_v61, %v5533_v5  ;;  %v2316_v62 = vsub.f32 %v3081_v24, %v2785_v27  ;;  %v2317_v60 = vsub.f32 %v3082_v14, %v2785_v27 }
 0x2df   : > { %v2080_v3 = vadd.f32 %v2064_v11, %v2048_v23  ;;  %v1958_v13 = vadd.f32 %v1942_v2, %v1926_v0  ;;  %v1798_v43 = vadd.f32 %v3040_v16, %v1782_v29  ;;  %v3046_v56 = vpop.eup %3045  ;;  %v2038_v44 = vmul.f32 %v3044_v30, %v4433_v57  ;;  %v2150_v57 = vpop.permute.xlu2 %2149  ;;  %v5536_v23 = vld [vmem:[#allocation69_spill] sm:$0xff]  ;;  %v3083_v2 = vld [vmem:[%s3537_s3 + $0x10] sm:$0xff]  ;;  %v5537_v29 = vld [vmem:[#allocation19_spill] sm:$0xff] }
 0x2e0   : > { %v5056_v21 = vadd.f32 %v3026_v51, %v1840_v25  ;;  %v3048_v4 = vpop.eup %3047  ;;  %v2070_v51 = vmul.f32 %v3046_v56, %v5534_v45  ;;  %3053 = vrcp.f32 %v5536_v23  ;;  %v2783_v11 = vld [vmem:[%s3543_s11 + $0x1] ss:$0 sm:$0xff] }
 0x2e1   : > { %v2112_v31 = vadd.f32 %v2096_v7, %v2080_v3  ;;  %v1990_v9 = vadd.f32 %v1974_v20, %v1958_v13  ;;  %v1814_v55 = vadd.f32 %v3042_v61, %v1798_v43  ;;  %v2102_v28 = vmul.f32 %v3048_v4, %v4547_v58  ;;  %v3050_v46 = vpop.eup %3049  ;;  %v2788_v3 = vld [vmem:[%s3543_s11 + $0x5] ss:$0 sm:$0xff]  ;;  %v3084_v20 = vld [vmem:[%s3537_s3 + $0x50] sm:$0xff] }
 0x2e2   : > { %v3052_v8 = vpop.eup %3051  ;;  %v2318_v61 = vsub.f32 %v3083_v2, %v2783_v11  ;;  %3055 = vrcp.f32 %v5537_v29  ;;  %v5538_v43 = vld [vmem:[#allocation73_spill] sm:$0xff]  ;;  %v3089_v2 = vld [vmem:[%s3537_s3 + $0x30] sm:$0xff] }
 0x2e3   : > { %2157 = vrot.lane.b32.xlu2 %v2112_v31, %s3332_s29  ;;  %v2146_v26 = vpop.permute.xlu1 %2145  ;;  %v2022_v17 = vadd.f32 %v2006_v54, %v1990_v9  ;;  %v1830_v48 = vadd.f32 %v3044_v30, %v1814_v55  ;;  %v2326_v30 = vsub.f32 %v3084_v20, %v2788_v3  ;;  %3057 = vrcp.f32 %v5538_v43  ;;  %v3085_v55 = vld [vmem:[%s3537_s3 + $0x18] sm:$0xff] }
 0x2e4   : > { %2668 = vmatmul.msk.f32.gmra.mxu2 %vm476_vm0, %v2146_v26  ;;  %3059 = vrcp.f32 %v4837_v59  ;;  %v2319_v26 = vsub.f32 %v3085_v55, %v2783_v11  ;;  %v2789_v11 = vld [vmem:[%s3543_s11 + $0x6] ss:$0 sm:$0xff] }
 0x2e5   : > { %v2054_v18 = vadd.f32 %v2038_v44, %v2022_v17  ;;  %v2162_v12 = vpop.permute.xlu0 %2161  ;;  %v1846_v53 = vadd.f32 %v3046_v56, %v1830_v48 }
 0x2e6   : > { %2676 = vmatmul.msk.f32.gmra.mxu3 %vm476_vm0, %v2162_v12  ;;  %v3054_v52 = vpop.eup %3053 }
 0x2e7   : > { %v2086_v5 = vadd.f32 %v2070_v51, %v2054_v18  ;;  %v5065_v36 = vadd.f32 %v3048_v4, %v1846_v53  ;;  %v2152_v45 = vpop.permute.xlu2 %2151  ;;  %v3086_v18 = vld [vmem:[%s3537_s3 + $0x58] sm:$0xff] }
 0x2e8   : > { %v3056_v31 = vpop.eup %3055  ;;  %v2327_v51 = vsub.f32 %v3086_v18, %v2788_v3  ;;  %v5539_v53 = vld [vmem:[#allocation79_spill] sm:$0xff] }
 0x2e9   : > { %v2118_v6 = vadd.f32 %v2102_v28, %v2086_v5  ;;  %v3058_v17 = vpop.eup %3057  ;;  %3061 = vrcp.f32 %v5539_v53  ;;  %v2784_v28 = vld [vmem:[%s3543_s11 + $0x2] ss:$0 sm:$0xff] }
 0x2ea   : > { %v3060_v5 = vpop.eup %3059 }
 0x2eb   : > { %2169 = vrot.lane.b32.xlu1 %v2118_v6, %s3332_s29 }
 0x2ec   : > { %2669 = vmatmul.msk.f32.gmra.mxu2 %vm476_vm0, %v5038_v32 }
 0x2f4   : > { %2670 = vmatmul.msk.f32.gmra.mxu2 %vm476_vm0, %v2150_v57 }
 0x2fc   : > { %2671 = vmatmul.msk.f32.gmra.mxu2 %vm476_vm0, %v2152_v45 }
 0x2fd   : > { %v2164_v38 = vpop.permute.xlu1 %2163 }
 0x2fe   : > { %2677 = vmatmul.msk.f32.gmra.mxu3 %vm476_vm0, %v2164_v38 }
 0x304   : > { %v2166_v58 = vpop.permute.xlu2 %2165 }
 0x306   : > { %2678 = vmatmul.msk.f32.gmra.mxu3 %vm476_vm0, %v2166_v58  ;;  %v3087_v58 = vld [vmem:[%s3537_s3 + $0x20] sm:$0xff] }
 0x314   : > { %v2154_v1 = vpop.permute.xlu0 %2153 }
 0x315   : > { %2672 = vmatmul.msk.f32.gmra.mxu2 %vm476_vm0, %v2154_v1  ;;  %v2320_v1 = vsub.f32 %v3087_v58, %v2784_v28 }
 0x335   : > { %v2156_v40 = vpop.permute.xlu1 %2155 }
 0x336   : > { %2673 = vmatmul.msk.f32.gmra.mxu2 %vm476_vm0, %v2156_v40  ;;  %v3062_v40 = vpop.eup %3061 }
 0x33d   : > { %v2158_v32 = vpop.permute.xlu2 %2157 }
 0x33e   : > { %2674 = vmatmul.msk.f32.gmra.mxu2 %vm476_vm0, %v2158_v32 }
 0x344   : > { %v2168_v22 = vpop.permute.xlu0 %2167 }
 0x345   : > { %2679 = vmatmul.msk.f32.gmra.mxu3 %vm476_vm0, %v2168_v22 }
 0x349   : > { %v2220_v63 = vpop.f32.mrf.mxu2 }
 0x34a   : > { %v2268_v41 = vmul.f32 %v3050_v46, %v2220_v63 }
 0x34c   : > { %v2332_v35 = vsub.f32 %v2268_v41, %v2316_v62  ;;  %v5540_v62 = vld [vmem:[#allocation86_spill] sm:$0xff] }
 0x34d   : > { %3063 = vrcp.f32 %v5540_v62 }
 0x34e   : > { %v2348_v33 = vand.u32 2147483647, %v2332_v35  ;;  %v3088_v35 = vld [vmem:[%s3537_s3 + $0x28] sm:$0xff]  ;;  %3065 = vrcp.f32 %v4845_v39 }
 0x34f   : > { %3067 = vrcp.f32 %v4870_v15 }
 0x350   : > { %v2364_v19 = vsel %vm476_vm0, %v2348_v33, 0.0  ;;  %v2321_v33 = vsub.f32 %v3088_v35, %v2784_v28  ;;  %3069 = vrcp.f32 %v4950_v37  ;;  %v3092_v37 = vld [vmem:[%s3537_s3 + $0x38] sm:$0xff] }
 0x351   : > { %2365 = vadd.xlane.f32.xlu0 %v2364_v19  ;;  %v2223_v16 = vpop.f32.mrf.mxu2  ;;  %3071 = vrcp.f32 %v4924_v10 }
 0x352   : > { %v2269_v49 = vmul.f32 %v3052_v8, %v2223_v16  ;;  %3073 = vrcp.f32 %v4992_v50 }
 0x353   : > { %v3064_v14 = vpop.eup %3063  ;;  %3075 = vrcp.f32 %v5056_v21 }
 0x354   : > { %v2333_v0 = vsub.f32 %v2269_v49, %v2317_v60  ;;  %v2786_v49 = vld [vmem:[%s3543_s11 + $0x3] ss:$0 sm:$0xff]  ;;  %3077 = vrcp.f32 %v5049_v47  ;;  %v3096_v47 = vld [vmem:[%s3537_s3 + $0x78] sm:$0xff] }
 0x355   : > { %v2323_v18 = vsub.f32 %v3092_v37, %v2786_v49  ;;  %3079 = vrcp.f32 %v5065_v36 }
 0x356   : > { %v2349_v45 = vand.u32 2147483647, %v2333_v0 }
 0x358   : > { %v2367_v22 = vsel %vm476_vm0, %v2349_v45, 0.0  ;;  %v2787_v45 = vld [vmem:[%s3543_s11 + $0x4] ss:$0 sm:$0xff] }
 0x359   : > { %v2226_v34 = vpop.f32.mrf.mxu2 }
 0x35a   : > { %v2270_v25 = vmul.f32 %v3054_v52, %v2226_v34  ;;  %v3066_v52 = vpop.eup %3065 }
 0x35c   : > { %v2334_v7 = vsub.f32 %v2270_v25, %v2318_v61  ;;  %v2322_v61 = vsub.f32 %v3089_v2, %v2786_v49  ;;  %v3090_v25 = vld [vmem:[%s3537_s3 + $0x60] sm:$0xff] }
 0x35d   : > { %v2170_v13 = vpop.permute.xlu1 %2169  ;;  %v2328_v29 = vsub.f32 %v3090_v25, %v2789_v11 }
 0x35e   : > { %2680 = vmatmul.msk.f32.gmra.mxu3 %vm476_vm0, %v2170_v13  ;;  %v2350_v63 = vand.u32 2147483647, %v2334_v7  ;;  %v3068_v7 = vpop.eup %3067 }
 0x360   : > { %v2370_v16 = vsel %vm476_vm0, %v2350_v63, 0.0 }
 0x361   : > { %v2250_v9 = vpop.f32.mrf.mxu3 }
 0x362   : > { %v2278_v54 = vmul.f32 %v3056_v31, %v2250_v9  ;;  %v3091_v31 = vld [vmem:[%s3537_s3 + $0x68] sm:$0xff] }
 0x363   : > { %v2329_v9 = vsub.f32 %v3091_v31, %v2789_v11 }
 0x364   : > { %v2342_v56 = vsub.f32 %v2278_v54, %v2326_v30 }
 0x366   : > { %v2358_v4 = vand.u32 2147483647, %v2342_v56  ;;  %v3070_v56 = vpop.eup %3069 }
 0x367   : > { %v2229_v44 = vpop.f32.mrf.mxu2 }
 0x368   : > { %v2271_v48 = vmul.f32 %v3058_v17, %v2229_v44  ;;  %v2394_v12 = vsel %vm476_vm0, %v2358_v4, 0.0 }
 0x369   : > { %2395 = vadd.xlane.f32.xlu2 %v2394_v12  ;;  %v2253_v57 = vpop.f32.mrf.mxu3  ;;  %v3072_v12 = vpop.eup %3071 }
 0x36a   : > { %v2335_v6 = vsub.f32 %v2271_v48, %v2319_v26  ;;  %v2279_v59 = vmul.f32 %v3060_v5, %v2253_v57 }
 0x36c   : > { %v2343_v38 = vsub.f32 %v2279_v59, %v2327_v51  ;;  %v2351_v17 = vand.u32 2147483647, %v2335_v6 }
 0x36e   : > { %v2359_v42 = vand.u32 2147483647, %v2343_v38  ;;  %v2373_v4 = vsel %vm476_vm0, %v2351_v17, 0.0  ;;  %v3093_v38 = vld [vmem:[%s3537_s3 + $0x40] sm:$0xff] }
 0x36f   : > { %v2232_v32 = vpop.f32.mrf.mxu2  ;;  %v2324_v58 = vsub.f32 %v3093_v38, %v2787_v45 }
 0x370   : > { %v2272_v27 = vmul.f32 %v3062_v40, %v2232_v32  ;;  %v2397_v24 = vsel %vm476_vm0, %v2359_v42, 0.0 }
 0x371   : > { %2368 = vadd.xlane.f32.xlu2 %v2367_v22  ;;  %2398 = vadd.xlane.f32.xlu1 %v2397_v24  ;;  %v3094_v22 = vld [vmem:[%s3537_s3 + $0x48] sm:$0xff] }
 0x372   : > { %v2336_v46 = vsub.f32 %v2272_v27, %v2320_v1  ;;  %v3074_v1 = vpop.eup %3073  ;;  %v2325_v24 = vsub.f32 %v3094_v22, %v2787_v45 }
 0x374   : > { %v2352_v41 = vand.u32 2147483647, %v2336_v46  ;;  %v3076_v46 = vpop.eup %3075 }
 0x376   : > { %v2376_v8 = vsel %vm476_vm0, %v2352_v41, 0.0  ;;  %v2792_v41 = vld [vmem:[%s3543_s11 + $0x7] ss:$0 sm:$0xff] }
 0x377   : > { %v2235_v60 = vpop.f32.mrf.mxu2 }
 0x378   : > { %v2273_v19 = vmul.f32 %v3064_v14, %v2235_v60  ;;  %v3095_v14 = vld [vmem:[%s3537_s3 + $0x70] sm:$0xff] }
 0x379   : > { %2377 = vadd.xlane.f32.xlu2 %v2376_v8  ;;  %2371 = vadd.xlane.f32.xlu1 %v2370_v16  ;;  %v2330_v60 = vsub.f32 %v3095_v14, %v2792_v41 }
 0x37a   : > { %v2337_v23 = vsub.f32 %v2273_v19, %v2321_v33  ;;  %v3078_v19 = vpop.eup %3077 }
 0x37b   : > { %v3080_v2 = vpop.eup %3079 }
 0x37c   : > { %v2353_v0 = vand.u32 2147483647, %v2337_v23 }
 0x37e   : > { %v2379_v39 = vsel %vm476_vm0, %v2353_v0, 0.0  ;;  %v2331_v0 = vsub.f32 %v3096_v47, %v2792_v41 }
 0x37f   : > { %v2238_v34 = vpop.f32.mrf.mxu2 }
 0x380   : > { %v2274_v3 = vmul.f32 %v3066_v52, %v2238_v34 }
 0x381   : > { %v2256_v13 = vpop.f32.mrf.mxu3  ;;  %2380 = vadd.xlane.f32.xlu1 %v2379_v39 }
 0x382   : > { %v2338_v20 = vsub.f32 %v2274_v3, %v2322_v61  ;;  %v2280_v30 = vmul.f32 %v3068_v7, %v2256_v13 }
 0x384   : > { %v2344_v15 = vsub.f32 %v2280_v30, %v2328_v29  ;;  %v2354_v48 = vand.u32 2147483647, %v2338_v20 }
 0x386   : > { %v2360_v43 = vand.u32 2147483647, %v2344_v15  ;;  %v2382_v51 = vsel %vm476_vm0, %v2354_v48, 0.0 }
 0x388   : > { %v2400_v54 = vsel %vm476_vm0, %v2360_v43, 0.0  ;;  %v2420_v43 = vlaneseq }
 0x389   : > { %2401 = vadd.xlane.f32.xlu0 %v2400_v54  ;;  %v2259_v55 = vpop.f32.mrf.mxu3 }
 0x38a   : > { %v2281_v26 = vmul.f32 %v3070_v56, %v2259_v55  ;;  %v2421_v36 = vand.u32 127, %v2420_v43 }
 0x38c   : > { %v2345_v44 = vsub.f32 %v2281_v26, %v2329_v9 }
 0x38e   : > { %v2361_v59 = vand.u32 2147483647, %v2345_v44 }
 0x390   : > { %v2403_v10 = vsel %vm476_vm0, %v2361_v59, 0.0 }
 0x391   : > { %2374 = vadd.xlane.f32.xlu0 %v2373_v4 }
 0x398   : > { %v2241_v53 = vpop.f32.mrf.mxu2 }
 0x399   : > { %2383 = vadd.xlane.f32.xlu0 %v2382_v51  ;;  %v2275_v5 = vmul.f32 %v3072_v12, %v2241_v53 }
 0x39b   : > { %v2339_v28 = vsub.f32 %v2275_v5, %v2323_v18 }
 0x39d   : > { %v2355_v57 = vand.u32 2147483647, %v2339_v28 }
 0x39f   : > { %v2385_v6 = vsel %vm476_vm0, %v2355_v57, 0.0 }
 0x3a0   : > { %2386 = vadd.xlane.f32.xlu2 %v2385_v6 }
 0x3a8   : > { %2404 = vadd.xlane.f32.xlu2 %v2403_v10 }
 0x3b9   : > { %v2244_v40 = vpop.f32.mrf.mxu2 }
 0x3ba   : > { %v2276_v32 = vmul.f32 %v3074_v1, %v2244_v40 }
 0x3bc   : > { %v2340_v42 = vsub.f32 %v2276_v32, %v2324_v58 }
 0x3be   : > { %v2356_v27 = vand.u32 2147483647, %v2340_v42 }
 0x3c0   : > { %v2388_v62 = vsel %vm476_vm0, %v2356_v27, 0.0 }
 0x3c1   : > { %2389 = vadd.xlane.f32.xlu1 %v2388_v62  ;;  %v2247_v63 = vpop.f32.mrf.mxu2 }
 0x3c2   : > { %v2277_v50 = vmul.f32 %v3076_v46, %v2247_v63 }
 0x3c4   : > { %v2341_v35 = vsub.f32 %v2277_v50, %v2325_v24  ;;  %v2366_v3 = vpop.xlane.xlu0 %2365 }
 0x3c5   : > { %v2422_v55 = vperm.slane %v2366_v3, %v2421_v36 }
 0x3c6   : > { %v2357_v33 = vand.u32 2147483647, %v2341_v35 }
 0x3c8   : > { %v2391_v21 = vsel %vm476_vm0, %v2357_v33, 0.0  ;;  %v2262_v8 = vpop.f32.mrf.mxu3 }
 0x3c9   : > { %2392 = vadd.xlane.f32.xlu0 %v2391_v21  ;;  %v2282_v16 = vmul.f32 %v3078_v19, %v2262_v8 }
 0x3cb   : > { %v2346_v49 = vsub.f32 %v2282_v16, %v2330_v60 }
 0x3cd   : > { %v2362_v23 = vand.u32 2147483647, %v2346_v49 }
 0x3cf   : > { %v2406_v11 = vsel %vm476_vm0, %v2362_v23, 0.0 }
 0x3d0   : > { %2407 = vadd.xlane.f32.xlu1 %v2406_v11 }
 0x3dc   : > { %v2396_v13 = vpop.xlane.xlu2 %2395 }
 0x3dd   : > { %v2427_v12 = vperm.slane %v2396_v13, %v2421_v36 }
 0x3e1   : > { %v2265_v61 = vpop.f32.mrf.mxu3 }
 0x3e2   : > { %v2283_v52 = vmul.f32 %v3080_v2, %v2265_v61 }
 0x3e4   : > { %v2347_v34 = vsub.f32 %v2283_v52, %v2331_v0  ;;  %v2399_v7 = vpop.xlane.xlu1 %2398  ;;  %v2369_v30 = vpop.xlane.xlu2 %2368 }
 0x3e5   : > { %v2457_v58 = vperm.slane %v2369_v30, %v2421_v36  ;;  %v2462_v46 = vperm.slane %v2399_v7, %v2421_v36 }
 0x3e6   : > { %v2363_v25 = vand.u32 2147483647, %v2347_v34 }
 0x3e8   : > { %v2409_v29 = vsel %vm476_vm0, %v2363_v25, 0.0 }
 0x3e9   : > { %2410 = vadd.xlane.f32.xlu0 %v2409_v29 }
 0x3ec   : > { %v2372_v20 = vpop.xlane.xlu1 %2371  ;;  %v2378_v9 = vpop.xlane.xlu2 %2377 }
 0x3ed   : > { %v2423_v54 = vperm.slane %v2372_v20, %v2421_v36  ;;  %v2424_v17 = vperm.slane %v2378_v9, %v2421_v36 }
 0x3ef   : > { %v2431_v44 = vsel %vm2430_vm1, %v2423_v54, %v2422_v55 }
 0x3f0   : > { %v2433_v37 = vsel %vm2432_vm2, %v2424_v17, %v2431_v44 }
 0x3f4   : > { %v2381_v31 = vpop.xlane.xlu1 %2380 }
 0x3f5   : > { %v2459_v42 = vperm.slane %v2381_v31, %v2421_v36 }
 0x3fc   : > { %v2402_v39 = vpop.xlane.xlu0 %2401 }
 0x3fd   : > { %v2428_v5 = vperm.slane %v2402_v39, %v2421_v36 }
 0x404   : > { %v2375_v15 = vpop.xlane.xlu0 %2374 }
 0x405   : > { %v2458_v45 = vperm.slane %v2375_v15, %v2421_v36 }
 0x407   : > { %v2465_v40 = vsel %vm2430_vm1, %v2458_v45, %v2457_v58 }
 0x408   : > { %v2466_v22 = vsel %vm2432_vm2, %v2459_v42, %v2465_v40 }
 0x40c   : > { %v2384_v56 = vpop.xlane.xlu0 %2383 }
 0x40d   : > { %v2425_v4 = vperm.slane %v2384_v56, %v2421_v36 }
 0x40f   : > { %v2435_v18 = vsel %vm2434_vm3, %v2425_v4, %v2433_v37 }
 0x413   : > { %v2387_v38 = vpop.xlane.xlu2 %2386 }
 0x414   : > { %v2460_v32 = vperm.slane %v2387_v38, %v2421_v36 }
 0x416   : > { %v2467_v24 = vsel %vm2434_vm3, %v2460_v32, %v2466_v22 }
 0x41b   : > { %v2405_v63 = vpop.xlane.xlu2 %2404 }
 0x41c   : > { %v2463_v41 = vperm.slane %v2405_v63, %v2421_v36 }
 0x434   : > { %v2390_v26 = vpop.xlane.xlu1 %2389 }
 0x435   : > { %v2426_v48 = vperm.slane %v2390_v26, %v2421_v36 }
 0x437   : > { %v2437_v51 = vsel %vm2436_vm4, %v2426_v48, %v2435_v18 }
 0x438   : > { %v2439_v53 = vsel %vm2438_vm5, %v2427_v12, %v2437_v51 }
 0x439   : > { %v2441_v6 = vsel %vm2440_vm6, %v2428_v5, %v2439_v53 }
 0x43c   : > { %v2393_v1 = vpop.xlane.xlu0 %2392 }
 0x43d   : > { %v2461_v27 = vperm.slane %v2393_v1, %v2421_v36 }
 0x43f   : > { %v2468_v62 = vsel %vm2436_vm4, %v2461_v27, %v2467_v24 }
 0x440   : > { %v2469_v50 = vsel %vm2438_vm5, %v2462_v46, %v2468_v62 }
 0x441   : > { %v2470_v14 = vsel %vm2440_vm6, %v2463_v41, %v2469_v50 }
 0x443   : > { %v2408_v28 = vpop.xlane.xlu1 %2407 }
 0x444   : > { %v2429_v57 = vperm.slane %v2408_v28, %v2421_v36 }
 0x446   : > { %v2443_v59 = vsel %vm2442_vm7, %v2429_v57, %v2441_v6 }
 0x447   : > { %v2446_v10 = vsel %vm2445_vm8, %v2443_v59, -inf }
 0x448   : > { %2447 = vmax.xlane.f32.xlu2 %v2446_v10 }
 0x45c   : > { %v2411_v35 = vpop.xlane.xlu0 %2410 }
 0x45d   : > { %v2464_v33 = vperm.slane %v2411_v35, %v2421_v36 }
 0x45f   : > { %v2471_v60 = vsel %vm2442_vm7, %v2464_v33, %v2470_v14 }
 0x460   : > { %v2473_v21 = vsel %vm2445_vm8, %v2471_v60, inf }
 0x461   : > { %2474 = vmin.xlane.f32.xlu1 %v2473_v21 }
 0x4bb   : > { %v2448_v19 = vpop.xlane.xlu2 %2447 }
 0x4d4   : > { %v2475_v8 = vpop.xlane.xlu1 %2474 }
 0x4d5   : > { %v2476_v16 = vsub.f32 %v2448_v19, %v2475_v8 }
 0x4d7   : > { %v2477_v49 = vadd.f32 1.0, %v2476_v16 }
 0x4d9   : > { %v2478_v23 = vmax.f32 %v2477_v49, 0.0 }
 0x4db   : > { %2480 = vst.msk [vmem:[%s459_s5] sm:$0xff] %vm2479_vm9, %v2478_v23 }
 0x4dc PF: > { %s5541_s30 = sld [smem:[#allocation16_spill]]  ;;  %p23_p4 = scmp.ge.s32.totalorder %s3425_s18, 4  }
 0x4dd   : > { %s5542_s29 = sld [smem:[#allocation17_spill]]  ;;  %s5543_s27 = smov %s3315_s28 }
 0x4de   :  { %25 = sbr.rel (!%p23_p4) target bundleno = 12 (0xc), region = 128 }
 0x4e2   : > { %s5544_s28 = smov %s5541_s30  ;;  %s5545_s30 = smov %s3425_s18 }
 0x4e3   :  { %2500 = vsyncpa [#allocation3], 1 }
 0x4e4   :  { %2502 = vsyncpa [#allocation3 + $0x1], 1 }
 0x4e5   :  { %2503 = vsyncpa [#allocation5], 1 }
 0x4e6   :  { %2505 = vsyncpa [#allocation5 + $0x1], 1 }
 0x4e7   :  { %2506 = vsyncpa [#allocation8], 1 }
 0x4e8   :  { %2507 = vsyncpa [#allocation11], 1 }

</bundles_post_ra>
